<compile_context>
chip_gen: v7x
topology: tpu7x:2x2x1
jax: 0.10.0
libtpu: 0.0.40
codegen_flags: <defaults>
</compile_context>

<pallas_src>
import functools

import numpy as np
import jax
import jax.numpy as jnp
from jax.experimental import pallas as pl
from jax.experimental.pallas import tpu as pltpu


# ----------------------------------------------------------------------------
# small helpers
# ----------------------------------------------------------------------------
def _round_up(x, m):
    return ((x + m - 1) // m) * m


def _pick_row_tile(hf, wf, max_rows=512):
    """Largest divisor of hf with tr*wf <= max_rows (matmul M-tile sizing)."""
    cap = max(1, max_rows // max(wf, 1))
    t = max(1, min(hf, cap))
    while hf % t:
        t -= 1
    return max(t, 1)


def _interp_matrix(out_size, in_size):
    """Row-stochastic 1D bilinear interpolation matrix, align_corners=True."""
    mat = np.zeros((out_size, in_size), dtype=np.float32)
    if in_size == 1 or out_size == 1:
        mat[:, 0] = 1.0
        return mat
    idx = np.arange(out_size)
    src = idx * (in_size - 1) / (out_size - 1)
    i0 = np.clip(np.floor(src).astype(np.int64), 0, in_size - 1)
    i1 = np.minimum(i0 + 1, in_size - 1)
    frac = (src - i0).astype(np.float32)
    mat[idx, i0] += 1.0 - frac
    mat[idx, i1] += frac
    return mat


def im2col(x, kh, kw, stride, padding, dilation):
    """x: NHWC -> patches (N*Ho*Wo, kh*kw*C); tap order (kh, kw, C).  Backbone stub only."""
    N, H, W, C = x.shape
    xp = jnp.pad(x, ((0, 0), (padding, padding), (padding, padding), (0, 0)))
    Ho = (H + 2 * padding - dilation * (kh - 1) - 1) // stride + 1
    Wo = (W + 2 * padding - dilation * (kw - 1) - 1) // stride + 1
    cols = []
    for i in range(kh):
        for j in range(kw):
            patch = xp[:,
                       i * dilation: i * dilation + stride * (Ho - 1) + 1: stride,
                       j * dilation: j * dilation + stride * (Wo - 1) + 1: stride,
                       :]
            cols.append(patch)
    patches = jnp.concatenate(cols, axis=-1)
    return patches.reshape(N * Ho * Wo, kh * kw * C), Ho, Wo


def kaiming_normal(key, kh, kw, cin, cout):
    """kaiming_normal_(mode='fan_out', nonlinearity='relu'), HWIO layout."""
    fan_out = kh * kw * cout
    std = (2.0 / fan_out) ** 0.5
    return std * jax.random.normal(key, (kh, kw, cin, cout), dtype=jnp.float32)


# ----------------------------------------------------------------------------
# backbone-stub matmul (im2col'd 3x3 stride-2 conv + ReLU), bf16 lane-dense out
# ----------------------------------------------------------------------------
def matmul_shift_kernel(x_ref, w_ref, shift_ref, o_ref, *, apply_relu):
    acc = jnp.dot(x_ref[...], w_ref[...], preferred_element_type=jnp.float32)
    acc = acc + shift_ref[...]
    if apply_relu:
        acc = jnp.maximum(acc, 0.0)
    o_ref[...] = acc.astype(o_ref.dtype)


def matmul_shift(x, w, shift, *, apply_relu, tm=128, out_dtype=jnp.bfloat16):
    """x: (M, K) bf16, w: (K, N) bf16, shift: (N,) f32 -> (M, N) bf16."""
    M, K = x.shape
    _, Nn = w.shape
    gm = pl.cdiv(M, tm)
    Mp = gm * tm
    if Mp != M:
        x = jnp.pad(x, ((0, Mp - M), (0, 0)))
    out = pl.pallas_call(
        functools.partial(matmul_shift_kernel, apply_relu=apply_relu),
        out_shape=jax.ShapeDtypeStruct((Mp, Nn), out_dtype),
        grid=(gm,),
        in_specs=[
            pl.BlockSpec((tm, K), lambda i: (i, 0)),
            pl.BlockSpec((K, Nn), lambda i: (0, 0)),
            pl.BlockSpec((1, Nn), lambda i: (0, 0)),
        ],
        out_specs=pl.BlockSpec((tm, Nn), lambda i: (i, 0)),
        compiler_params=pltpu.CompilerParams(dimension_semantics=("parallel",)),
    )(x, w, shift.reshape(1, Nn).astype(jnp.float32))
    return out[:M]


# ----------------------------------------------------------------------------
# fused head: dilated conv_fov (+BN+ReLU) -> conv_fov2 (+BN+ReLU) -> cls_conv
# ----------------------------------------------------------------------------
def head_kernel(feat_hbm, w1_ref, s1_ref, w2_ref, s2_ref, w3_ref, b3_ref,
                o_ref, buf, sem, *, tr, Wf, dil):
    """Per (batch, row-tile): DMA a (tr+2*dil)-row window of the padded feature,
    accumulate the 9 dilation taps on the MXU, then the two 1x1 convs, all in VMEM."""
    n = pl.program_id(0)
    r = pl.program_id(1)
    R = pl.num_programs(1)
    nsteps = pl.num_programs(0) * R
    step = n * R + r
    slot = step % 2
    win = tr + 2 * dil

    def start_fetch(nn, rr, sl):
        pltpu.make_async_copy(
            feat_hbm.at[nn, pl.ds(rr * tr, win)],
            buf.at[sl], sem.at[sl]).start()

    @pl.when(step == 0)
    def _():
        start_fetch(n, r, slot)

    # wait for the current window
    pltpu.make_async_copy(
        feat_hbm.at[n, pl.ds(r * tr, win)], buf.at[slot], sem.at[slot]).wait()

    # prefetch the next grid step's window into the other slot
    @pl.when(step + 1 < nsteps)
    def _():
        nr = r + 1
        nn = jnp.where(nr == R, n + 1, n)
        nr = jnp.where(nr == R, 0, nr)
        start_fetch(nn, nr, 1 - slot)

    window = buf[slot]                        # (win, Wf + 2*dil, Cp) bf16
    Cp = window.shape[-1]
    M = tr * Wf

    # dilated 3x3 conv: 9 tap matmuls accumulated in f32 (no im2col duplication)
    acc = None
    for i in range(3):
        for j in range(3):
            tap = window[i * dil:i * dil + tr, j * dil:j * dil + Wf, :]
            tap = tap.reshape(M, Cp)
            part = jnp.dot(tap, w1_ref[i * 3 + j],
                           preferred_element_type=jnp.float32)
            acc = part if acc is None else acc + part

    f1 = jnp.maximum(acc + s1_ref[...], 0.0).astype(jnp.bfloat16)
    a2 = jnp.dot(f1, w2_ref[...], preferred_element_type=jnp.float32)
    f2 = jnp.maximum(a2 + s2_ref[...], 0.0).astype(jnp.bfloat16)
    a3 = jnp.dot(f2, w3_ref[...], preferred_element_type=jnp.float32) + b3_ref[...]
    o_ref[0] = a3.reshape(tr, Wf, -1).astype(o_ref.dtype)


def fused_head(feat_pad, w1, s1, w2, s2, w3, b3, *, Hf, Wf, dil=12):
    """feat_pad: (N, Hf+2*dil, Wf+2*dil, Cp) bf16 -> logits (N, Hf, Wf, Nout) bf16."""
    N, Hp, Wp, Cp = feat_pad.shape
    Nmid = w2.shape[0]
    Nout = w3.shape[1]
    tr = _pick_row_tile(Hf, Wf)
    R = Hf // tr
    win = tr + 2 * dil

    kernel = functools.partial(head_kernel, tr=tr, Wf=Wf, dil=dil)
    return pl.pallas_call(
        kernel,
        out_shape=jax.ShapeDtypeStruct((N, Hf, Wf, Nout), jnp.bfloat16),
        grid=(N, R),
        in_specs=[
            pl.BlockSpec(memory_space=pl.ANY),                    # padded feature (HBM)
            pl.BlockSpec((9, Cp, Nmid), lambda n, r: (0, 0, 0)),  # 9 tap weights (resident)
            pl.BlockSpec((1, Nmid), lambda n, r: (0, 0)),         # bn1 shift
            pl.BlockSpec((Nmid, Nmid), lambda n, r: (0, 0)),      # w_fov2 (resident)
            pl.BlockSpec((1, Nmid), lambda n, r: (0, 0)),         # bn2 shift
            pl.BlockSpec((Nmid, Nout), lambda n, r: (0, 0)),      # w_cls (padded to 128)
            pl.BlockSpec((1, Nout), lambda n, r: (0, 0)),         # b_cls (padded)
        ],
        out_specs=pl.BlockSpec((1, tr, Wf, Nout), lambda n, r: (n, r, 0, 0)),
        scratch_shapes=[
            pltpu.VMEM((2, win, Wp, Cp), jnp.bfloat16),           # double-buffered window
            pltpu.SemaphoreType.DMA((2,)),
        ],
        compiler_params=pltpu.CompilerParams(
            dimension_semantics=("arbitrary", "arbitrary")),
    )(feat_pad,
      w1,
      s1.reshape(1, Nmid).astype(jnp.float32),
      w2,
      s2.reshape(1, Nmid).astype(jnp.float32),
      w3,
      b3.reshape(1, Nout).astype(jnp.float32))


# ----------------------------------------------------------------------------
# fused separable bilinear resize (align_corners=True), one pallas_call
# ----------------------------------------------------------------------------
def resize_kernel(x_ref, rh_ref, rw_ref, o_ref, *, Hf, Wf):
    """x: (1, Hf, Wf, C) bf16; rh: (th, Hf) f32; rw: (w_out, Wf) f32
    -> o: (1, w_out, th, C) bf16   (W-major; one small final transpose in wrapper)."""
    C = x_ref.shape[-1]
    th = rh_ref.shape[0]
    xf = x_ref[0].astype(jnp.float32).reshape(Hf, Wf * C)
    t = jnp.dot(rh_ref[...], xf, preferred_element_type=jnp.float32)   # (th, Wf*C)
    t = t.reshape(th, Wf, C)
    t = jnp.transpose(t, (1, 0, 2)).reshape(Wf, th * C)                # minor dim kept
    o = jnp.dot(rw_ref[...], t, preferred_element_type=jnp.float32)    # (w_out, th*C)
    o_ref[0] = o.reshape(-1, th, C).astype(o_ref.dtype)


def bilinear_resize(logits, h_out, w_out):
    """logits: (N, Hf, Wf, C) bf16 -> (N, w_out, h_out, C) bf16, no HBM intermediate."""
    N, Hf, Wf, C = logits.shape
    rh = jnp.asarray(_interp_matrix(h_out, Hf), jnp.float32)
    rw = jnp.asarray(_interp_matrix(w_out, Wf), jnp.float32)
    # tile the output-height axis so real-sized outputs pipeline / shard across cores
    th = 128 if (h_out % 128 == 0) else h_out
    gh = h_out // th
    # TODO(synk): at very large h_out*w_out the (1, w_out, th, C) output block should
    # also be tiled along w_out; not needed at these sizes.
    return pl.pallas_call(
        functools.partial(resize_kernel, Hf=Hf, Wf=Wf),
        out_shape=jax.ShapeDtypeStruct((N, w_out, h_out, C), jnp.bfloat16),
        grid=(N, gh),
        in_specs=[
            pl.BlockSpec((1, Hf, Wf, C), lambda n, hb: (n, 0, 0, 0)),
            pl.BlockSpec((th, Hf), lambda n, hb: (hb, 0)),
            pl.BlockSpec((w_out, Wf), lambda n, hb: (0, 0)),
        ],
        out_specs=pl.BlockSpec((1, w_out, th, C), lambda n, hb: (n, 0, hb, 0)),
        compiler_params=pltpu.CompilerParams(
            dimension_semantics=("parallel", "parallel")),
    )(logits, rh, rw)


# ----------------------------------------------------------------------------
# deeplabv1 forward
# ----------------------------------------------------------------------------
def deeplabv1_forward(x_nchw, params):
    N, C, H, W = x_nchw.shape
    num_classes = params["w_cls"].shape[-1]
    bn_eps = 1e-5
    dil = 12

    x = jnp.transpose(x_nchw, (0, 2, 3, 1))  # -> NHWC

    # --- backbone stub: 3x3 conv stride 2 pad 1 + ReLU -> (N, H/2, W/2, Cp) bf16
    out_dim = params["w_bb"].shape[-1]
    cp = _round_up(out_dim, 128)                      # lane-dense channels
    p_bb, Ho, Wo = im2col(x, 3, 3, stride=2, padding=1, dilation=1)
    Kb = p_bb.shape[1]
    Kb_pad = _round_up(Kb, 128)
    p_bb = jnp.pad(p_bb, ((0, 0), (0, Kb_pad - Kb))).astype(jnp.bfloat16)
    w_bb = jnp.pad(params["w_bb"].reshape(Kb, out_dim),
                   ((0, Kb_pad - Kb), (0, cp - out_dim))).astype(jnp.bfloat16)
    bb = matmul_shift(p_bb, w_bb, jnp.zeros((cp,), jnp.float32), apply_relu=True)
    bb = bb.reshape(N, Ho, Wo, cp)

    # spatial zero-pad for the dilated conv (padding = dilation = 12)
    feat_pad = jnp.pad(bb, ((0, 0), (dil, dil), (dil, dil), (0, 0)))

    # --- fold eval-mode BN into the conv weights (scale) + per-channel shifts
    bn1_scale = params["bn1_gamma"] / jnp.sqrt(params["bn1_var"] + bn_eps)
    bn1_shift = params["bn1_beta"] - params["bn1_mean"] * bn1_scale
    bn2_scale = params["bn2_gamma"] / jnp.sqrt(params["bn2_var"] + bn_eps)
    bn2_shift = params["bn2_beta"] - params["bn2_mean"] * bn2_scale

    w1 = params["w_fov"] * bn1_scale[None, None, None, :]             # (3,3,Cin,512)
    w1 = jnp.pad(w1, ((0, 0), (0, 0), (0, cp - out_dim), (0, 0)))
    w1 = w1.reshape(9, cp, 512).astype(jnp.bfloat16)                  # per-tap (Cp, 512)
    w2 = (params["w_fov2"].reshape(512, 512) * bn2_scale[None, :]).astype(jnp.bfloat16)

    nc_pad = _round_up(num_classes, 128)                              # lane-dense cls out
    w3 = jnp.pad(params["w_cls"].reshape(512, num_classes),
                 ((0, 0), (0, nc_pad - num_classes))).astype(jnp.bfloat16)
    b3 = jnp.pad(params["b_cls"], (0, nc_pad - num_classes)).astype(jnp.float32)

    # conv_fov(+BN+ReLU) -> conv_fov2(+BN+ReLU) -> dropout(eval id) -> cls_conv
    logits = fused_head(feat_pad, w1, bn1_shift, w2, bn2_shift, w3, b3,
                        Hf=Ho, Wf=Wo, dil=dil)                        # (N,Ho,Wo,nc_pad) bf16

    # --- fused bilinear upsample to (H, W), align_corners=True
    up = bilinear_resize(logits, H, W)                                # (N, W, H, nc_pad) bf16
    up = up[..., :num_classes]                                        # drop padded classes
    out = jnp.transpose(up, (0, 3, 2, 1))                             # -> NCHW
    return out.astype(jnp.float32)


# ----------------------------------------------------------------------------
# main
# ----------------------------------------------------------------------------
if __name__ == "__main__":
    key = jax.random.PRNGKey(0)
    k_x, k_bb, k_fov, k_fov2, k_cls, k_bias = jax.random.split(key, 6)

    N, Cin, H, W = 2, 4, 16, 16          # input
    OUT_DIM = 64                         # backbone stub OUTPUT_DIM
    NUM_CLASSES = 8                      # cfg.MODEL_NUM_CLASSES

    x = jax.random.normal(k_x, (N, Cin, H, W), dtype=jnp.float32)    # NCHW like PyTorch

    params = dict(
        w_bb=kaiming_normal(k_bb, 3, 3, Cin, OUT_DIM),
        w_fov=kaiming_normal(k_fov, 3, 3, OUT_DIM, 512),
        bn1_gamma=jnp.ones((512,), jnp.float32),
        bn1_beta=jnp.zeros((512,), jnp.float32),
        bn1_mean=jnp.zeros((512,), jnp.float32),
        bn1_var=jnp.ones((512,), jnp.float32),
        w_fov2=kaiming_normal(k_fov2, 1, 1, 512, 512),
        bn2_gamma=jnp.ones((512,), jnp.float32),
        bn2_beta=jnp.zeros((512,), jnp.float32),
        bn2_mean=jnp.zeros((512,), jnp.float32),
        bn2_var=jnp.ones((512,), jnp.float32),
        w_cls=kaiming_normal(k_cls, 1, 1, 512, NUM_CLASSES),
        b_cls=0.01 * jax.random.normal(k_bias, (NUM_CLASSES,), dtype=jnp.float32),
    )

    out = jax.jit(deeplabv1_forward)(x, params)
    out = jax.block_until_ready(out)
    assert out.shape == (N, NUM_CLASSES, H, W), out.shape
    assert bool(jnp.all(jnp.isfinite(out)))
    print("KERNEL_OK")
</pallas_src>

<mosaic_0001>
module attributes {stable_mosaic.version = 11 : i64} {
  func.func @matmul_shift_kernel(%arg0: i32, %arg1: memref<128x128xbf16, #tpu.memory_space<vmem>>, %arg2: memref<128x128xbf16, #tpu.memory_space<vmem>>, %arg3: memref<1x128xf32, #tpu.memory_space<vmem>>, %arg4: memref<128x128xbf16, #tpu.memory_space<vmem>>) attributes {dimension_semantics = [#tpu.dimension_semantics<parallel>], iteration_bounds = array<i64: 1>, scalar_prefetch = 0 : i64, scratch_operands = 0 : i64, tpu.core_type = #tpu.core_type<tc>, window_params = [{transform_indices = @transform_0, window_bounds = array<i64: 128, 128>}, {pipeline_mode = #tpu.pipeline_mode<synchronous>, transform_indices = @transform_1, window_bounds = array<i64: 128, 128>}, {pipeline_mode = #tpu.pipeline_mode<synchronous>, transform_indices = @transform_2, window_bounds = array<i64: 1, 128>}, {transform_indices = @transform_3, window_bounds = array<i64: 128, 128>}]} {
    %c0 = arith.constant 0 : index
    %c0_0 = arith.constant 0 : index
    %0 = vector.load %arg1[%c0, %c0_0] : memref<128x128xbf16, #tpu.memory_space<vmem>>, vector<128x128xbf16>
    %c0_1 = arith.constant 0 : index
    %c0_2 = arith.constant 0 : index
    %1 = vector.load %arg2[%c0_1, %c0_2] : memref<128x128xbf16, #tpu.memory_space<vmem>>, vector<128x128xbf16>
    %cst = arith.constant dense<0.000000e+00> : vector<128x128xf32>
    %2 = tpu.matmul %0, %1, %cst {dimension_numbers = #tpu.dot_dimension_numbers<[1], [0], [0], [1], [0, 0, 1, 1], [], []>} : vector<128x128xbf16>, vector<128x128xbf16>, vector<128x128xf32> -> vector<128x128xf32>
    %c0_3 = arith.constant 0 : index
    %c0_4 = arith.constant 0 : index
    %3 = vector.load %arg3[%c0_3, %c0_4] : memref<1x128xf32, #tpu.memory_space<vmem>>, vector<1x128xf32>
    %4 = vector.broadcast %3 : vector<1x128xf32> to vector<128x128xf32>
    %5 = arith.addf %2, %4 : vector<128x128xf32>
    %cst_5 = arith.constant 0.000000e+00 : f32
    %6 = vector.broadcast %cst_5 : f32 to vector<128x128xf32>
    %7 = arith.maximumf %5, %6 : vector<128x128xf32>
    %8 = arith.truncf %7 : vector<128x128xf32> to vector<128x128xbf16>
    %c0_6 = arith.constant 0 : index
    %c0_7 = arith.constant 0 : index
    %9 = vector.load %arg4[%c0_6, %c0_7] : memref<128x128xbf16, #tpu.memory_space<vmem>>, vector<128x128xbf16>
    tpu.vector_store %arg4[%c0_6, %c0_7], %8 {strides = array<i32>} : memref<128x128xbf16, #tpu.memory_space<vmem>>, vector<128x128xbf16>,
    return
  }
  func.func @transform_0(%arg0: i32) -> (i32, i32) {
    %c0_i32 = arith.constant 0 : i32
    %c0_i32_0 = arith.constant 0 : i32
    return %arg0, %c0_i32 : i32, i32
  }
  func.func @transform_1(%arg0: i32) -> (i32, i32) {
    %c0_i32 = arith.constant 0 : i32
    %c0_i32_0 = arith.constant 0 : i32
    %c0_i32_1 = arith.constant 0 : i32
    return %c0_i32, %c0_i32_0 : i32, i32
  }
  func.func @transform_2(%arg0: i32) -> (i32, i32) {
    %c0_i32 = arith.constant 0 : i32
    %c0_i32_0 = arith.constant 0 : i32
    %c0_i32_1 = arith.constant 0 : i32
    return %c0_i32, %c0_i32_0 : i32, i32
  }
  func.func @transform_3(%arg0: i32) -> (i32, i32) {
    %c0_i32 = arith.constant 0 : i32
    %c0_i32_0 = arith.constant 0 : i32
    return %arg0, %c0_i32 : i32, i32
  }
}

module attributes {stable_mosaic.version = 11 : i64} {
  func.func @head_kernel(%arg0: i32, %arg1: i32, %arg2: memref<2x32x32x128xbf16, #tpu.memory_space<any>>, %arg3: memref<9x128x512xbf16, #tpu.memory_space<vmem>>, %arg4: memref<1x512xf32, #tpu.memory_space<vmem>>, %arg5: memref<512x512xbf16, #tpu.memory_space<vmem>>, %arg6: memref<1x512xf32, #tpu.memory_space<vmem>>, %arg7: memref<512x128xbf16, #tpu.memory_space<vmem>>, %arg8: memref<1x128xf32, #tpu.memory_space<vmem>>, %arg9: memref<1x8x8x128xbf16, #tpu.memory_space<vmem>>, %arg10: memref<2x32x32x128xbf16, #tpu.memory_space<vmem>>, %arg11: memref<2x!tpu.dma_semaphore, #tpu.memory_space<semaphore_mem>>) attributes {dimension_semantics = [#tpu.dimension_semantics<arbitrary>, #tpu.dimension_semantics<arbitrary>], iteration_bounds = array<i64: 2, 1>, scalar_prefetch = 0 : i64, scratch_operands = 2 : i64, tpu.core_type = #tpu.core_type<tc>, window_params = [{}, {pipeline_mode = #tpu.pipeline_mode<synchronous>, transform_indices = @transform_1, window_bounds = array<i64: 9, 128, 512>}, {pipeline_mode = #tpu.pipeline_mode<synchronous>, transform_indices = @transform_2, window_bounds = array<i64: 1, 512>}, {pipeline_mode = #tpu.pipeline_mode<synchronous>, transform_indices = @transform_3, window_bounds = array<i64: 512, 512>}, {pipeline_mode = #tpu.pipeline_mode<synchronous>, transform_indices = @transform_4, window_bounds = array<i64: 1, 512>}, {pipeline_mode = #tpu.pipeline_mode<synchronous>, transform_indices = @transform_5, window_bounds = array<i64: 512, 128>}, {pipeline_mode = #tpu.pipeline_mode<synchronous>, transform_indices = @transform_6, window_bounds = array<i64: 1, 128>}, {transform_indices = @transform_7, window_bounds = array<i64: 1, 8, 8, 128>}]} {
    %c1_i32 = arith.constant 1 : i32
    %0 = arith.muli %arg0, %c1_i32 : i32
    %1 = arith.addi %0, %arg1 : i32
    %c2_i32 = arith.constant 2 : i32
    %c0_i32 = arith.constant 0 : i32
    %2 = arith.cmpi eq, %c2_i32, %c0_i32 : i32
    %c1_i32_0 = arith.constant 1 : i32
    %3 = arith.select %2, %c1_i32_0, %c2_i32 : i32
    %4 = arith.remsi %1, %3 : i32
    %c0_i32_1 = arith.constant 0 : i32
    %5 = arith.cmpi ne, %4, %c0_i32_1 : i32
    %c0_i32_2 = arith.constant 0 : i32
    %6 = arith.cmpi slt, %4, %c0_i32_2 : i32
    %c0_i32_3 = arith.constant 0 : i32
    %7 = arith.cmpi slt, %3, %c0_i32_3 : i32
    %8 = arith.xori %6, %7 : i1
    %9 = arith.andi %8, %5 : i1
    %10 = arith.addi %4, %3 : i32
    %11 = arith.select %9, %10, %4 : i32
    %c0_i32_4 = arith.constant 0 : i32
    %12 = arith.cmpi eq, %1, %c0_i32_4 : i32
    %13 = arith.extui %12 : i1 to i32
    %c0_i32_5 = arith.constant 0 : i32
    %14 = arith.cmpi ne, %13, %c0_i32_5 : i32
    scf.if %14 {
      %c8_i32_61 = arith.constant 8 : i32
      %106 = arith.muli %arg1, %c8_i32_61 : i32
      %c0_i32_62 = arith.constant 0 : i32
      %c0_i32_63 = arith.constant 0 : i32
      %107 = tpu.memref_slice %arg2[%arg0, %106, %c0_i32_62, %c0_i32_63] : memref<2x32x32x128xbf16, #tpu.memory_space<any>> -> memref<1x32x32x128xbf16, #tpu.memory_space<any>>
      %108 = tpu.memref_squeeze %107 : memref<1x32x32x128xbf16, #tpu.memory_space<any>> -> memref<32x32x128xbf16, #tpu.memory_space<any>>
      %c0_i32_64 = arith.constant 0 : i32
      %c0_i32_65 = arith.constant 0 : i32
      %c0_i32_66 = arith.constant 0 : i32
      %109 = tpu.memref_slice %arg10[%11, %c0_i32_64, %c0_i32_65, %c0_i32_66] : memref<2x32x32x128xbf16, #tpu.memory_space<vmem>> -> memref<1x32x32x128xbf16, #tpu.memory_space<vmem>>
      %110 = tpu.memref_squeeze %109 : memref<1x32x32x128xbf16, #tpu.memory_space<vmem>> -> memref<32x32x128xbf16, #tpu.memory_space<vmem>>
      %111 = tpu.memref_slice %arg11[%11] : memref<2x!tpu.dma_semaphore, #tpu.memory_space<semaphore_mem>> -> memref<1x!tpu.dma_semaphore, #tpu.memory_space<semaphore_mem>>
      %112 = tpu.memref_squeeze %111 : memref<1x!tpu.dma_semaphore, #tpu.memory_space<semaphore_mem>> -> memref<!tpu.dma_semaphore, #tpu.memory_space<semaphore_mem>>
      tpu.enqueue_dma source(%108 : memref<32x32x128xbf16, #tpu.memory_space<any>>) target(%110 : memref<32x32x128xbf16, #tpu.memory_space<vmem>>) target_semaphore(%112 : memref<!tpu.dma_semaphore, #tpu.memory_space<semaphore_mem>>)
    } else {
    }
    %c8_i32 = arith.constant 8 : i32
    %15 = arith.muli %arg1, %c8_i32 : i32
    %c0_i32_6 = arith.constant 0 : i32
    %c0_i32_7 = arith.constant 0 : i32
    %16 = tpu.memref_slice %arg2[%arg0, %15, %c0_i32_6, %c0_i32_7] : memref<2x32x32x128xbf16, #tpu.memory_space<any>> -> memref<1x32x32x128xbf16, #tpu.memory_space<any>>
    %17 = tpu.memref_squeeze %16 : memref<1x32x32x128xbf16, #tpu.memory_space<any>> -> memref<32x32x128xbf16, #tpu.memory_space<any>>
    %c0_i32_8 = arith.constant 0 : i32
    %c0_i32_9 = arith.constant 0 : i32
    %c0_i32_10 = arith.constant 0 : i32
    %18 = tpu.memref_slice %arg10[%11, %c0_i32_8, %c0_i32_9, %c0_i32_10] : memref<2x32x32x128xbf16, #tpu.memory_space<vmem>> -> memref<1x32x32x128xbf16, #tpu.memory_space<vmem>>
    %19 = tpu.memref_squeeze %18 : memref<1x32x32x128xbf16, #tpu.memory_space<vmem>> -> memref<32x32x128xbf16, #tpu.memory_space<vmem>>
    %20 = tpu.memref_slice %arg11[%11] : memref<2x!tpu.dma_semaphore, #tpu.memory_space<semaphore_mem>> -> memref<1x!tpu.dma_semaphore, #tpu.memory_space<semaphore_mem>>
    %21 = tpu.memref_squeeze %20 : memref<1x!tpu.dma_semaphore, #tpu.memory_space<semaphore_mem>> -> memref<!tpu.dma_semaphore, #tpu.memory_space<semaphore_mem>>
    tpu.wait_dma2 semaphore(%21 : memref<!tpu.dma_semaphore, #tpu.memory_space<semaphore_mem>>) src(%17 : memref<32x32x128xbf16, #tpu.memory_space<any>>) dst(%19 : memref<32x32x128xbf16, #tpu.memory_space<vmem>>)
    %c1_i32_11 = arith.constant 1 : i32
    %22 = arith.addi %1, %c1_i32_11 : i32
    %c2_i32_12 = arith.constant 2 : i32
    %23 = arith.cmpi slt, %22, %c2_i32_12 : i32
    %24 = arith.extui %23 : i1 to i32
    %c0_i32_13 = arith.constant 0 : i32
    %25 = arith.cmpi ne, %24, %c0_i32_13 : i32
    scf.if %25 {
      %c1_i32_61 = arith.constant 1 : i32
      %106 = arith.addi %arg1, %c1_i32_61 : i32
      %c1_i32_62 = arith.constant 1 : i32
      %107 = arith.cmpi eq, %106, %c1_i32_62 : i32
      %c1_i32_63 = arith.constant 1 : i32
      %108 = arith.addi %arg0, %c1_i32_63 : i32
      %109 = arith.select %107, %108, %arg0 : i32
      %c1_i32_64 = arith.constant 1 : i32
      %110 = arith.cmpi eq, %106, %c1_i32_64 : i32
      %c0_i32_65 = arith.constant 0 : i32
      %111 = arith.select %110, %c0_i32_65, %106 : i32
      %c1_i32_66 = arith.constant 1 : i32
      %112 = arith.subi %c1_i32_66, %11 : i32
      %c8_i32_67 = arith.constant 8 : i32
      %113 = arith.muli %111, %c8_i32_67 : i32
      %c0_i32_68 = arith.constant 0 : i32
      %c0_i32_69 = arith.constant 0 : i32
      %114 = tpu.memref_slice %arg2[%109, %113, %c0_i32_68, %c0_i32_69] : memref<2x32x32x128xbf16, #tpu.memory_space<any>> -> memref<1x32x32x128xbf16, #tpu.memory_space<any>>
      %115 = tpu.memref_squeeze %114 : memref<1x32x32x128xbf16, #tpu.memory_space<any>> -> memref<32x32x128xbf16, #tpu.memory_space<any>>
      %c0_i32_70 = arith.constant 0 : i32
      %c0_i32_71 = arith.constant 0 : i32
      %c0_i32_72 = arith.constant 0 : i32
      %116 = tpu.memref_slice %arg10[%112, %c0_i32_70, %c0_i32_71, %c0_i32_72] : memref<2x32x32x128xbf16, #tpu.memory_space<vmem>> -> memref<1x32x32x128xbf16, #tpu.memory_space<vmem>>
      %117 = tpu.memref_squeeze %116 : memref<1x32x32x128xbf16, #tpu.memory_space<vmem>> -> memref<32x32x128xbf16, #tpu.memory_space<vmem>>
      %118 = tpu.memref_slice %arg11[%112] : memref<2x!tpu.dma_semaphore, #tpu.memory_space<semaphore_mem>> -> memref<1x!tpu.dma_semaphore, #tpu.memory_space<semaphore_mem>>
      %119 = tpu.memref_squeeze %118 : memref<1x!tpu.dma_semaphore, #tpu.memory_space<semaphore_mem>> -> memref<!tpu.dma_semaphore, #tpu.memory_space<semaphore_mem>>
      tpu.enqueue_dma source(%115 : memref<32x32x128xbf16, #tpu.memory_space<any>>) target(%117 : memref<32x32x128xbf16, #tpu.memory_space<vmem>>) target_semaphore(%119 : memref<!tpu.dma_semaphore, #tpu.memory_space<semaphore_mem>>)
    } else {
    }
    %26 = arith.index_cast %11 : i32 to index
    %c0 = arith.constant 0 : index
    %c0_14 = arith.constant 0 : index
    %c0_15 = arith.constant 0 : index
    %27 = vector.load %arg10[%26, %c0, %c0_14, %c0_15] : memref<2x32x32x128xbf16, #tpu.memory_space<vmem>>, vector<1x32x32x128xbf16>
    %28 = vector.shape_cast %27 : vector<1x32x32x128xbf16> to vector<32x32x128xbf16>
    %29 = vector.extract_strided_slice %28 {offsets = [0, 0, 0], sizes = [8, 8, 128], strides = [1, 1, 1]} : vector<32x32x128xbf16> to vector<8x8x128xbf16>
    %30 = vector.shape_cast %29 : vector<8x8x128xbf16> to vector<64x128xbf16>
    %c0_16 = arith.constant 0 : index
    %c0_17 = arith.constant 0 : index
    %c0_18 = arith.constant 0 : index
    %31 = vector.load %arg3[%c0_16, %c0_17, %c0_18] : memref<9x128x512xbf16, #tpu.memory_space<vmem>>, vector<1x128x512xbf16>
    %32 = vector.shape_cast %31 : vector<1x128x512xbf16> to vector<128x512xbf16>
    %cst = arith.constant dense<0.000000e+00> : vector<64x512xf32>
    %33 = tpu.matmul %30, %32, %cst {dimension_numbers = #tpu.dot_dimension_numbers<[1], [0], [0], [1], [0, 0, 1, 1], [], []>} : vector<64x128xbf16>, vector<128x512xbf16>, vector<64x512xf32> -> vector<64x512xf32>
    %34 = vector.extract_strided_slice %28 {offsets = [0, 12, 0], sizes = [8, 8, 128], strides = [1, 1, 1]} : vector<32x32x128xbf16> to vector<8x8x128xbf16>
    %35 = vector.shape_cast %34 : vector<8x8x128xbf16> to vector<64x128xbf16>
    %c1 = arith.constant 1 : index
    %c0_19 = arith.constant 0 : index
    %c0_20 = arith.constant 0 : index
    %36 = vector.load %arg3[%c1, %c0_19, %c0_20] : memref<9x128x512xbf16, #tpu.memory_space<vmem>>, vector<1x128x512xbf16>
    %37 = vector.shape_cast %36 : vector<1x128x512xbf16> to vector<128x512xbf16>
    %cst_21 = arith.constant dense<0.000000e+00> : vector<64x512xf32>
    %38 = tpu.matmul %35, %37, %cst_21 {dimension_numbers = #tpu.dot_dimension_numbers<[1], [0], [0], [1], [0, 0, 1, 1], [], []>} : vector<64x128xbf16>, vector<128x512xbf16>, vector<64x512xf32> -> vector<64x512xf32>
    %39 = arith.addf %33, %38 : vector<64x512xf32>
    %40 = vector.extract_strided_slice %28 {offsets = [0, 24, 0], sizes = [8, 8, 128], strides = [1, 1, 1]} : vector<32x32x128xbf16> to vector<8x8x128xbf16>
    %41 = vector.shape_cast %40 : vector<8x8x128xbf16> to vector<64x128xbf16>
    %c2 = arith.constant 2 : index
    %c0_22 = arith.constant 0 : index
    %c0_23 = arith.constant 0 : index
    %42 = vector.load %arg3[%c2, %c0_22, %c0_23] : memref<9x128x512xbf16, #tpu.memory_space<vmem>>, vector<1x128x512xbf16>
    %43 = vector.shape_cast %42 : vector<1x128x512xbf16> to vector<128x512xbf16>
    %cst_24 = arith.constant dense<0.000000e+00> : vector<64x512xf32>
    %44 = tpu.matmul %41, %43, %cst_24 {dimension_numbers = #tpu.dot_dimension_numbers<[1], [0], [0], [1], [0, 0, 1, 1], [], []>} : vector<64x128xbf16>, vector<128x512xbf16>, vector<64x512xf32> -> vector<64x512xf32>
    %45 = arith.addf %39, %44 : vector<64x512xf32>
    %46 = vector.extract_strided_slice %28 {offsets = [12, 0, 0], sizes = [8, 8, 128], strides = [1, 1, 1]} : vector<32x32x128xbf16> to vector<8x8x128xbf16>
    %47 = vector.shape_cast %46 : vector<8x8x128xbf16> to vector<64x128xbf16>
    %c3 = arith.constant 3 : index
    %c0_25 = arith.constant 0 : index
    %c0_26 = arith.constant 0 : index
    %48 = vector.load %arg3[%c3, %c0_25, %c0_26] : memref<9x128x512xbf16, #tpu.memory_space<vmem>>, vector<1x128x512xbf16>
    %49 = vector.shape_cast %48 : vector<1x128x512xbf16> to vector<128x512xbf16>
    %cst_27 = arith.constant dense<0.000000e+00> : vector<64x512xf32>
    %50 = tpu.matmul %47, %49, %cst_27 {dimension_numbers = #tpu.dot_dimension_numbers<[1], [0], [0], [1], [0, 0, 1, 1], [], []>} : vector<64x128xbf16>, vector<128x512xbf16>, vector<64x512xf32> -> vector<64x512xf32>
    %51 = arith.addf %45, %50 : vector<64x512xf32>
    %52 = vector.extract_strided_slice %28 {offsets = [12, 12, 0], sizes = [8, 8, 128], strides = [1, 1, 1]} : vector<32x32x128xbf16> to vector<8x8x128xbf16>
    %53 = vector.shape_cast %52 : vector<8x8x128xbf16> to vector<64x128xbf16>
    %c4 = arith.constant 4 : index
    %c0_28 = arith.constant 0 : index
    %c0_29 = arith.constant 0 : index
    %54 = vector.load %arg3[%c4, %c0_28, %c0_29] : memref<9x128x512xbf16, #tpu.memory_space<vmem>>, vector<1x128x512xbf16>
    %55 = vector.shape_cast %54 : vector<1x128x512xbf16> to vector<128x512xbf16>
    %cst_30 = arith.constant dense<0.000000e+00> : vector<64x512xf32>
    %56 = tpu.matmul %53, %55, %cst_30 {dimension_numbers = #tpu.dot_dimension_numbers<[1], [0], [0], [1], [0, 0, 1, 1], [], []>} : vector<64x128xbf16>, vector<128x512xbf16>, vector<64x512xf32> -> vector<64x512xf32>
    %57 = arith.addf %51, %56 : vector<64x512xf32>
    %58 = vector.extract_strided_slice %28 {offsets = [12, 24, 0], sizes = [8, 8, 128], strides = [1, 1, 1]} : vector<32x32x128xbf16> to vector<8x8x128xbf16>
    %59 = vector.shape_cast %58 : vector<8x8x128xbf16> to vector<64x128xbf16>
    %c5 = arith.constant 5 : index
    %c0_31 = arith.constant 0 : index
    %c0_32 = arith.constant 0 : index
    %60 = vector.load %arg3[%c5, %c0_31, %c0_32] : memref<9x128x512xbf16, #tpu.memory_space<vmem>>, vector<1x128x512xbf16>
    %61 = vector.shape_cast %60 : vector<1x128x512xbf16> to vector<128x512xbf16>
    %cst_33 = arith.constant dense<0.000000e+00> : vector<64x512xf32>
    %62 = tpu.matmul %59, %61, %cst_33 {dimension_numbers = #tpu.dot_dimension_numbers<[1], [0], [0], [1], [0, 0, 1, 1], [], []>} : vector<64x128xbf16>, vector<128x512xbf16>, vector<64x512xf32> -> vector<64x512xf32>
    %63 = arith.addf %57, %62 : vector<64x512xf32>
    %64 = vector.extract_strided_slice %28 {offsets = [24, 0, 0], sizes = [8, 8, 128], strides = [1, 1, 1]} : vector<32x32x128xbf16> to vector<8x8x128xbf16>
    %65 = vector.shape_cast %64 : vector<8x8x128xbf16> to vector<64x128xbf16>
    %c6 = arith.constant 6 : index
    %c0_34 = arith.constant 0 : index
    %c0_35 = arith.constant 0 : index
    %66 = vector.load %arg3[%c6, %c0_34, %c0_35] : memref<9x128x512xbf16, #tpu.memory_space<vmem>>, vector<1x128x512xbf16>
    %67 = vector.shape_cast %66 : vector<1x128x512xbf16> to vector<128x512xbf16>
    %cst_36 = arith.constant dense<0.000000e+00> : vector<64x512xf32>
    %68 = tpu.matmul %65, %67, %cst_36 {dimension_numbers = #tpu.dot_dimension_numbers<[1], [0], [0], [1], [0, 0, 1, 1], [], []>} : vector<64x128xbf16>, vector<128x512xbf16>, vector<64x512xf32> -> vector<64x512xf32>
    %69 = arith.addf %63, %68 : vector<64x512xf32>
    %70 = vector.extract_strided_slice %28 {offsets = [24, 12, 0], sizes = [8, 8, 128], strides = [1, 1, 1]} : vector<32x32x128xbf16> to vector<8x8x128xbf16>
    %71 = vector.shape_cast %70 : vector<8x8x128xbf16> to vector<64x128xbf16>
    %c7 = arith.constant 7 : index
    %c0_37 = arith.constant 0 : index
    %c0_38 = arith.constant 0 : index
    %72 = vector.load %arg3[%c7, %c0_37, %c0_38] : memref<9x128x512xbf16, #tpu.memory_space<vmem>>, vector<1x128x512xbf16>
    %73 = vector.shape_cast %72 : vector<1x128x512xbf16> to vector<128x512xbf16>
    %cst_39 = arith.constant dense<0.000000e+00> : vector<64x512xf32>
    %74 = tpu.matmul %71, %73, %cst_39 {dimension_numbers = #tpu.dot_dimension_numbers<[1], [0], [0], [1], [0, 0, 1, 1], [], []>} : vector<64x128xbf16>, vector<128x512xbf16>, vector<64x512xf32> -> vector<64x512xf32>
    %75 = arith.addf %69, %74 : vector<64x512xf32>
    %76 = vector.extract_strided_slice %28 {offsets = [24, 24, 0], sizes = [8, 8, 128], strides = [1, 1, 1]} : vector<32x32x128xbf16> to vector<8x8x128xbf16>
    %77 = vector.shape_cast %76 : vector<8x8x128xbf16> to vector<64x128xbf16>
    %c8 = arith.constant 8 : index
    %c0_40 = arith.constant 0 : index
    %c0_41 = arith.constant 0 : index
    %78 = vector.load %arg3[%c8, %c0_40, %c0_41] : memref<9x128x512xbf16, #tpu.memory_space<vmem>>, vector<1x128x512xbf16>
    %79 = vector.shape_cast %78 : vector<1x128x512xbf16> to vector<128x512xbf16>
    %cst_42 = arith.constant dense<0.000000e+00> : vector<64x512xf32>
    %80 = tpu.matmul %77, %79, %cst_42 {dimension_numbers = #tpu.dot_dimension_numbers<[1], [0], [0], [1], [0, 0, 1, 1], [], []>} : vector<64x128xbf16>, vector<128x512xbf16>, vector<64x512xf32> -> vector<64x512xf32>
    %81 = arith.addf %75, %80 : vector<64x512xf32>
    %c0_43 = arith.constant 0 : index
    %c0_44 = arith.constant 0 : index
    %82 = vector.load %arg4[%c0_43, %c0_44] : memref<1x512xf32, #tpu.memory_space<vmem>>, vector<1x512xf32>
    %83 = vector.broadcast %82 : vector<1x512xf32> to vector<64x512xf32>
    %84 = arith.addf %81, %83 : vector<64x512xf32>
    %cst_45 = arith.constant 0.000000e+00 : f32
    %85 = vector.broadcast %cst_45 : f32 to vector<64x512xf32>
    %86 = arith.maximumf %84, %85 : vector<64x512xf32>
    %87 = arith.truncf %86 : vector<64x512xf32> to vector<64x512xbf16>
    %c0_46 = arith.constant 0 : index
    %c0_47 = arith.constant 0 : index
    %88 = vector.load %arg5[%c0_46, %c0_47] : memref<512x512xbf16, #tpu.memory_space<vmem>>, vector<512x512xbf16>
    %cst_48 = arith.constant dense<0.000000e+00> : vector<64x512xf32>
    %89 = tpu.matmul %87, %88, %cst_48 {dimension_numbers = #tpu.dot_dimension_numbers<[1], [0], [0], [1], [0, 0, 1, 1], [], []>} : vector<64x512xbf16>, vector<512x512xbf16>, vector<64x512xf32> -> vector<64x512xf32>
    %c0_49 = arith.constant 0 : index
    %c0_50 = arith.constant 0 : index
    %90 = vector.load %arg6[%c0_49, %c0_50] : memref<1x512xf32, #tpu.memory_space<vmem>>, vector<1x512xf32>
    %91 = vector.broadcast %90 : vector<1x512xf32> to vector<64x512xf32>
    %92 = arith.addf %89, %91 : vector<64x512xf32>
    %cst_51 = arith.constant 0.000000e+00 : f32
    %93 = vector.broadcast %cst_51 : f32 to vector<64x512xf32>
    %94 = arith.maximumf %92, %93 : vector<64x512xf32>
    %95 = arith.truncf %94 : vector<64x512xf32> to vector<64x512xbf16>
    %c0_52 = arith.constant 0 : index
    %c0_53 = arith.constant 0 : index
    %96 = vector.load %arg7[%c0_52, %c0_53] : memref<512x128xbf16, #tpu.memory_space<vmem>>, vector<512x128xbf16>
    %cst_54 = arith.constant dense<0.000000e+00> : vector<64x128xf32>
    %97 = tpu.matmul %95, %96, %cst_54 {dimension_numbers = #tpu.dot_dimension_numbers<[1], [0], [0], [1], [0, 0, 1, 1], [], []>} : vector<64x512xbf16>, vector<512x128xbf16>, vector<64x128xf32> -> vector<64x128xf32>
    %c0_55 = arith.constant 0 : index
    %c0_56 = arith.constant 0 : index
    %98 = vector.load %arg8[%c0_55, %c0_56] : memref<1x128xf32, #tpu.memory_space<vmem>>, vector<1x128xf32>
    %99 = vector.broadcast %98 : vector<1x128xf32> to vector<64x128xf32>
    %100 = arith.addf %97, %99 : vector<64x128xf32>
    %101 = vector.shape_cast %100 : vector<64x128xf32> to vector<8x8x128xf32>
    %102 = arith.truncf %101 : vector<8x8x128xf32> to vector<8x8x128xbf16>
    %c0_57 = arith.constant 0 : index
    %c0_58 = arith.constant 0 : index
    %c0_59 = arith.constant 0 : index
    %c0_60 = arith.constant 0 : index
    %103 = vector.load %arg9[%c0_57, %c0_58, %c0_59, %c0_60] : memref<1x8x8x128xbf16, #tpu.memory_space<vmem>>, vector<1x8x8x128xbf16>
    %104 = vector.shape_cast %103 : vector<1x8x8x128xbf16> to vector<8x8x128xbf16>
    %105 = vector.shape_cast %102 : vector<8x8x128xbf16> to vector<1x8x8x128xbf16>
    tpu.vector_store %arg9[%c0_57, %c0_58, %c0_59, %c0_60], %105 {strides = array<i32>} : memref<1x8x8x128xbf16, #tpu.memory_space<vmem>>, vector<1x8x8x128xbf16>,
    return
  }
  func.func @transform_1(%arg0: i32, %arg1: i32) -> (i32, i32, i32) {
    %c0_i32 = arith.constant 0 : i32
    %c0_i32_0 = arith.constant 0 : i32
    %c0_i32_1 = arith.constant 0 : i32
    %c0_i32_2 = arith.constant 0 : i32
    return %c0_i32, %c0_i32_0, %c0_i32_1 : i32, i32, i32
  }
  func.func @transform_2(%arg0: i32, %arg1: i32) -> (i32, i32) {
    %c0_i32 = arith.constant 0 : i32
    %c0_i32_0 = arith.constant 0 : i32
    %c0_i32_1 = arith.constant 0 : i32
    return %c0_i32, %c0_i32_0 : i32, i32
  }
  func.func @transform_3(%arg0: i32, %arg1: i32) -> (i32, i32) {
    %c0_i32 = arith.constant 0 : i32
    %c0_i32_0 = arith.constant 0 : i32
    %c0_i32_1 = arith.constant 0 : i32
    return %c0_i32, %c0_i32_0 : i32, i32
  }
  func.func @transform_4(%arg0: i32, %arg1: i32) -> (i32, i32) {
    %c0_i32 = arith.constant 0 : i32
    %c0_i32_0 = arith.constant 0 : i32
    %c0_i32_1 = arith.constant 0 : i32
    return %c0_i32, %c0_i32_0 : i32, i32
  }
  func.func @transform_5(%arg0: i32, %arg1: i32) -> (i32, i32) {
    %c0_i32 = arith.constant 0 : i32
    %c0_i32_0 = arith.constant 0 : i32
    %c0_i32_1 = arith.constant 0 : i32
    return %c0_i32, %c0_i32_0 : i32, i32
  }
  func.func @transform_6(%arg0: i32, %arg1: i32) -> (i32, i32) {
    %c0_i32 = arith.constant 0 : i32
    %c0_i32_0 = arith.constant 0 : i32
    %c0_i32_1 = arith.constant 0 : i32
    return %c0_i32, %c0_i32_0 : i32, i32
  }
  func.func @transform_7(%arg0: i32, %arg1: i32) -> (i32, i32, i32, i32) {
    %c0_i32 = arith.constant 0 : i32
    %c0_i32_0 = arith.constant 0 : i32
    %c0_i32_1 = arith.constant 0 : i32
    return %arg0, %arg1, %c0_i32, %c0_i32_0 : i32, i32, i32, i32
  }
}

module attributes {stable_mosaic.version = 11 : i64} {
  func.func @resize_kernel(%arg0: i32, %arg1: i32, %arg2: memref<1x8x8x128xbf16, #tpu.memory_space<vmem>>, %arg3: memref<16x8xf32, #tpu.memory_space<vmem>>, %arg4: memref<16x8xf32, #tpu.memory_space<vmem>>, %arg5: memref<1x16x16x128xbf16, #tpu.memory_space<vmem>>) attributes {dimension_semantics = [#tpu.dimension_semantics<parallel>, #tpu.dimension_semantics<parallel>], iteration_bounds = array<i64: 2, 1>, scalar_prefetch = 0 : i64, scratch_operands = 0 : i64, tpu.core_type = #tpu.core_type<tc>, window_params = [{transform_indices = @transform_0, window_bounds = array<i64: 1, 8, 8, 128>}, {transform_indices = @transform_1, window_bounds = array<i64: 16, 8>}, {pipeline_mode = #tpu.pipeline_mode<synchronous>, transform_indices = @transform_2, window_bounds = array<i64: 16, 8>}, {transform_indices = @transform_3, window_bounds = array<i64: 1, 16, 16, 128>}]} {
    %c0 = arith.constant 0 : index
    %c0_0 = arith.constant 0 : index
    %c0_1 = arith.constant 0 : index
    %c0_2 = arith.constant 0 : index
    %0 = vector.load %arg2[%c0, %c0_0, %c0_1, %c0_2] : memref<1x8x8x128xbf16, #tpu.memory_space<vmem>>, vector<1x8x8x128xbf16>
    %1 = vector.shape_cast %0 : vector<1x8x8x128xbf16> to vector<8x8x128xbf16>
    %2 = arith.extf %1 : vector<8x8x128xbf16> to vector<8x8x128xf32>
    %3 = vector.shape_cast %2 : vector<8x8x128xf32> to vector<8x1024xf32>
    %c0_3 = arith.constant 0 : index
    %c0_4 = arith.constant 0 : index
    %4 = vector.load %arg3[%c0_3, %c0_4] : memref<16x8xf32, #tpu.memory_space<vmem>>, vector<16x8xf32>
    %cst = arith.constant dense<0.000000e+00> : vector<16x1024xf32>
    %5 = tpu.matmul %4, %3, %cst {dimension_numbers = #tpu.dot_dimension_numbers<[1], [0], [0], [1], [0, 0, 1, 1], [], []>} : vector<16x8xf32>, vector<8x1024xf32>, vector<16x1024xf32> -> vector<16x1024xf32>
    %6 = vector.shape_cast %5 : vector<16x1024xf32> to vector<16x8x128xf32>
    %7 = tpu.transpose %6, [1, 0, 2] : vector<16x8x128xf32> -> vector<8x16x128xf32>
    %8 = vector.shape_cast %7 : vector<8x16x128xf32> to vector<8x2048xf32>
    %c0_5 = arith.constant 0 : index
    %c0_6 = arith.constant 0 : index
    %9 = vector.load %arg4[%c0_5, %c0_6] : memref<16x8xf32, #tpu.memory_space<vmem>>, vector<16x8xf32>
    %cst_7 = arith.constant dense<0.000000e+00> : vector<16x2048xf32>
    %10 = tpu.matmul %9, %8, %cst_7 {dimension_numbers = #tpu.dot_dimension_numbers<[1], [0], [0], [1], [0, 0, 1, 1], [], []>} : vector<16x8xf32>, vector<8x2048xf32>, vector<16x2048xf32> -> vector<16x2048xf32>
    %11 = vector.shape_cast %10 : vector<16x2048xf32> to vector<16x16x128xf32>
    %12 = arith.truncf %11 : vector<16x16x128xf32> to vector<16x16x128xbf16>
    %c0_8 = arith.constant 0 : index
    %c0_9 = arith.constant 0 : index
    %c0_10 = arith.constant 0 : index
    %c0_11 = arith.constant 0 : index
    %13 = vector.load %arg5[%c0_8, %c0_9, %c0_10, %c0_11] : memref<1x16x16x128xbf16, #tpu.memory_space<vmem>>, vector<1x16x16x128xbf16>
    %14 = vector.shape_cast %13 : vector<1x16x16x128xbf16> to vector<16x16x128xbf16>
    %15 = vector.shape_cast %12 : vector<16x16x128xbf16> to vector<1x16x16x128xbf16>
    tpu.vector_store %arg5[%c0_8, %c0_9, %c0_10, %c0_11], %15 {strides = array<i32>} : memref<1x16x16x128xbf16, #tpu.memory_space<vmem>>, vector<1x16x16x128xbf16>,
    return
  }
  func.func @transform_0(%arg0: i32, %arg1: i32) -> (i32, i32, i32, i32) {
    %c0_i32 = arith.constant 0 : i32
    %c0_i32_0 = arith.constant 0 : i32
    %c0_i32_1 = arith.constant 0 : i32
    %c0_i32_2 = arith.constant 0 : i32
    return %arg0, %c0_i32, %c0_i32_0, %c0_i32_1 : i32, i32, i32, i32
  }
  func.func @transform_1(%arg0: i32, %arg1: i32) -> (i32, i32) {
    %c0_i32 = arith.constant 0 : i32
    %c0_i32_0 = arith.constant 0 : i32
    return %arg1, %c0_i32 : i32, i32
  }
  func.func @transform_2(%arg0: i32, %arg1: i32) -> (i32, i32) {
    %c0_i32 = arith.constant 0 : i32
    %c0_i32_0 = arith.constant 0 : i32
    %c0_i32_1 = arith.constant 0 : i32
    return %c0_i32, %c0_i32_0 : i32, i32
  }
  func.func @transform_3(%arg0: i32, %arg1: i32) -> (i32, i32, i32, i32) {
    %c0_i32 = arith.constant 0 : i32
    %c0_i32_0 = arith.constant 0 : i32
    %c0_i32_1 = arith.constant 0 : i32
    return %arg0, %c0_i32, %arg1, %c0_i32_0 : i32, i32, i32, i32
  }
}

</mosaic_0001>

<bundles_post_ra>
// kernel: deeplabv1_forward.3
= control target key start
LH: loop header
LB: loop body
LE: loop exit
PB: predicated region body
PF: predicated region fallthrough
CT: control target
= control target key end

     0   :  { %s618_s1 = inlined_call_operand.vmem [shape: bf16[128,128], index: 1, kind: input, shape index: {}]   ;;  %s619_s0 = inlined_call_operand.vmem [shape: bf16[128,128], index: 0, kind: input, shape index: {}]   ;;  %s620_s2 = inlined_call_operand.vmem [shape: f32[1,128], index: 2, kind: input, shape index: {}]   ;;  %s621_s3 = inlined_call_operand.vmem [shape: bf16[128,128], index: 3, kind: output, shape index: {}]  }
   0x1   :  { %v507_v0 = vld [vmem:[%s618_s1] sm:$0xff]   ;;  %v508_v1 = vld [vmem:[%s618_s1 + $0x8] sm:$0xff]   ;;  %v509_v2 = vld [vmem:[%s618_s1 + $0x10] sm:$0xff]  }
   0x2   :  { %459 = vmatprep.subr.bf16.mxu0 %v507_v0  ;;  %491 = vmatprep.subr.bf16.mxu1 %v507_v0  ;;  %v510_v3 = vld [vmem:[%s618_s1 + $0x18] sm:$0xff]   ;;  %v515_v4 = vld [vmem:[%s619_s0] sm:$0xff]   ;;  %v512_v7 = vld [vmem:[%s618_s1 + $0x28] sm:$0xff]  }
   0x3   :  { %460 = vmatpush3.bf16.msra.mxu0 %v507_v0  ;;  %499 = vmatpush3.bf16.msra.mxu1 %v507_v0  ;;  %v516_v5 = vld [vmem:[%s619_s0 + $0x20] sm:$0xff]   ;;  %v513_v8 = vld [vmem:[%s618_s1 + $0x30] sm:$0xff]   ;;  %v514_v9 = vld [vmem:[%s618_s1 + $0x38] sm:$0xff]  }
   0x4   :  { %461 = vmatprep.subr.bf16.mxu0 %v508_v1  ;;  %492 = vmatprep.subr.bf16.mxu1 %v508_v1  ;;  %v511_v6 = vld [vmem:[%s618_s1 + $0x20] sm:$0xff]   ;;  %v517_v10 = vld [vmem:[%s619_s0 + $0x8] sm:$0xff]   ;;  %v519_v12 = vld [vmem:[%s619_s0 + $0x10] sm:$0xff]  }
   0x5   :  { %475 = vmatprep.mubr.bf16.mxu0 %v515_v4  ;;  %483 = vmatprep.mubr.bf16.mxu1 %v516_v5  ;;  %v518_v11 = vld [vmem:[%s619_s0 + $0x28] sm:$0xff]   ;;  %v520_v13 = vld [vmem:[%s619_s0 + $0x30] sm:$0xff]   ;;  %v521_v14 = vld [vmem:[%s619_s0 + $0x18] sm:$0xff]  }
   0x6   :  { %v522_v15 = vld [vmem:[%s619_s0 + $0x38] sm:$0xff]   ;;  %v347_v16 = vld [vmem:[%s620_s2] ss:$0 sm:$0xff] }
   0x7   :  { %462 = vmatpush3.bf16.msra.mxu0 %v508_v1  ;;  %500 = vmatpush3.bf16.msra.mxu1 %v508_v1 }
   0x8   :  { %463 = vmatprep.subr.bf16.mxu0 %v509_v2  ;;  %493 = vmatprep.subr.bf16.mxu1 %v509_v2 }
   0xb   :  { %464 = vmatpush3.bf16.msra.mxu0 %v509_v2  ;;  %501 = vmatpush3.bf16.msra.mxu1 %v509_v2 }
   0xc   :  { %465 = vmatprep.subr.bf16.mxu0 %v510_v3  ;;  %494 = vmatprep.subr.bf16.mxu1 %v510_v3 }
   0xf   :  { %466 = vmatpush3.bf16.msra.mxu0 %v510_v3  ;;  %502 = vmatpush3.bf16.msra.mxu1 %v510_v3 }
  0x10   :  { %467 = vmatprep.subr.bf16.mxu0 %v511_v6  ;;  %495 = vmatprep.subr.bf16.mxu1 %v511_v6 }
  0x13   :  { %468 = vmatpush3.bf16.msra.mxu0 %v511_v6  ;;  %503 = vmatpush3.bf16.msra.mxu1 %v511_v6 }
  0x14   :  { %469 = vmatprep.subr.bf16.mxu0 %v512_v7  ;;  %496 = vmatprep.subr.bf16.mxu1 %v512_v7 }
  0x17   :  { %470 = vmatpush3.bf16.msra.mxu0 %v512_v7  ;;  %504 = vmatpush3.bf16.msra.mxu1 %v512_v7 }
  0x18   :  { %471 = vmatprep.subr.bf16.mxu0 %v513_v8  ;;  %497 = vmatprep.subr.bf16.mxu1 %v513_v8 }
  0x1b   :  { %472 = vmatpush3.bf16.msra.mxu0 %v513_v8  ;;  %505 = vmatpush3.bf16.msra.mxu1 %v513_v8 }
  0x1c   :  { %473 = vmatprep.subr.bf16.mxu0 %v514_v9  ;;  %498 = vmatprep.subr.bf16.mxu1 %v514_v9 }
  0x1f   :  { %474 = vmatpush3.bf16.msra.mxu0 %v514_v9  ;;  %506 = vmatpush3.bf16.msra.mxu1 %v514_v9 }
  0x22   :  { %476 = vmatmul.mubr.bf16.vlgmr.msra.gmra.mrb[0].mxu0 %v517_v10  ;;  %484 = vmatmul.mubr.bf16.vlgmr.msra.gmra.mrb[0].mxu1 %v518_v11 }
  0x23   :  { %479 = vmatprep.mubr.bf16.mxu0 %v519_v12  ;;  %487 = vmatprep.mubr.bf16.mxu1 %v520_v13 }
  0x2a   :  { %480 = vmatmul.mubr.bf16.gmra.mrb[4].mxu0 %v521_v14  ;;  %488 = vmatmul.mubr.bf16.gmra.mrb[4].mxu1 %v522_v15 }
  0xf5   :  { %v477_v17 = vpop.f32.mrb[0].mxu0  ;;  %v485_v18 = vpop.f32.mrb[0].mxu1 }
  0xf6   :  { %v193_v19 = vadd.f32 %v477_v17, %v347_v16  ;;  %v225_v20 = vadd.f32 %v485_v18, %v347_v16  ;;  %v184_v21 = vpop.f32.mrb[1].mxu0  ;;  %v216_v22 = vpop.f32.mrb[1].mxu1 }
  0xf7   :  { %v185_v23 = vadd.f32 %v347_v16, %v184_v21  ;;  %v217_v24 = vadd.f32 %v347_v16, %v216_v22  ;;  %v478_v25 = vpop.f32.mrb[2].mxu0  ;;  %v486_v26 = vpop.f32.mrb[2].mxu1 }
  0xf8   :  { %v196_v27 = vadd.f32 %v478_v25, %v347_v16  ;;  %v228_v28 = vadd.f32 %v486_v26, %v347_v16  ;;  %v187_v29 = vpop.f32.mrb[3].mxu0  ;;  %v219_v30 = vpop.f32.mrb[3].mxu1  ;;  %v249_v33 = vmax.f32 %v193_v19, 0.0  ;;  %v257_v34 = vmax.f32 %v225_v20, 0.0 }
  0xf9   :  { %v188_v31 = vadd.f32 %v347_v16, %v187_v29  ;;  %v220_v32 = vadd.f32 %v347_v16, %v219_v30  ;;  %v247_v37 = vmax.f32 %v185_v23, 0.0  ;;  %v255_v38 = vmax.f32 %v217_v24, 0.0 }
  0xfa   :  { %v250_v35 = vmax.f32 %v196_v27, 0.0  ;;  %v258_v36 = vmax.f32 %v228_v28, 0.0 }
  0xfb   :  { %v248_v39 = vmax.f32 %v188_v31, 0.0  ;;  %v256_v40 = vmax.f32 %v220_v32, 0.0 }
  0xfc   :  { %v404_v41 = vpack.c.bf16 %v250_v35, %v249_v33  ;;  %v424_v42 = vpack.c.bf16 %v258_v36, %v257_v34 }
  0xfd   :  { %v399_v43 = vpack.c.bf16 %v248_v39, %v247_v37  ;;  %v419_v44 = vpack.c.bf16 %v256_v40, %v255_v38  ;;  %v481_v45 = vpop.f32.mrb[4].mxu0  ;;  %v489_v46 = vpop.f32.mrb[4].mxu1 }
  0xfe   :  { %436 = vst [vmem:[%s621_s3 + $0x8] sm:$0xff] %v404_v41   ;;  %440 = vst [vmem:[%s621_s3 + $0x28] sm:$0xff] %v424_v42   ;;  %v209_v47 = vadd.f32 %v481_v45, %v347_v16  ;;  %v241_v48 = vadd.f32 %v489_v46, %v347_v16  ;;  %v200_v49 = vpop.f32.mrb[5].mxu0  ;;  %v232_v50 = vpop.f32.mrb[5].mxu1 }
  0xff   :  { %400 = vst [vmem:[%s621_s3] sm:$0xff] %v399_v43   ;;  %439 = vst [vmem:[%s621_s3 + $0x20] sm:$0xff] %v419_v44   ;;  %v201_v51 = vadd.f32 %v347_v16, %v200_v49  ;;  %v233_v52 = vadd.f32 %v347_v16, %v232_v50  ;;  %v482_v53 = vpop.f32.mrb[6].mxu0  ;;  %v490_v54 = vpop.f32.mrb[6].mxu1 }
 0x100   :  { %v212_v55 = vadd.f32 %v482_v53, %v347_v16  ;;  %v244_v56 = vadd.f32 %v490_v54, %v347_v16  ;;  %v203_v57 = vpop.f32.mrb[7].mxu0  ;;  %v235_v58 = vpop.f32.mrb[7].mxu1  ;;  %v253_v61 = vmax.f32 %v209_v47, 0.0  ;;  %v261_v62 = vmax.f32 %v241_v48, 0.0 }
 0x101   :  { %v204_v59 = vadd.f32 %v347_v16, %v203_v57  ;;  %v236_v60 = vadd.f32 %v347_v16, %v235_v58  ;;  %v251_v1 = vmax.f32 %v201_v51, 0.0  ;;  %v259_v2 = vmax.f32 %v233_v52, 0.0 }
 0x102   :  { %v254_v63 = vmax.f32 %v212_v55, 0.0  ;;  %v262_v0 = vmax.f32 %v244_v56, 0.0 }
 0x103   :  { %v252_v3 = vmax.f32 %v204_v59, 0.0  ;;  %v260_v4 = vmax.f32 %v236_v60, 0.0 }
 0x104   :  { %v414_v5 = vpack.c.bf16 %v254_v63, %v253_v61  ;;  %v434_v6 = vpack.c.bf16 %v262_v0, %v261_v62 }
 0x105   :  { %v409_v7 = vpack.c.bf16 %v252_v3, %v251_v1  ;;  %v429_v8 = vpack.c.bf16 %v260_v4, %v259_v2 }
 0x106   :  { %438 = vst [vmem:[%s621_s3 + $0x18] sm:$0xff] %v414_v5   ;;  %442 = vst [vmem:[%s621_s3 + $0x38] sm:$0xff] %v434_v6  }
 0x107   :  { %437 = vst [vmem:[%s621_s3 + $0x10] sm:$0xff] %v409_v7   ;;  %441 = vst [vmem:[%s621_s3 + $0x30] sm:$0xff] %v429_v8  }

// kernel: deeplabv1_forward.5
= control target key start
LH: loop header
LB: loop body
LE: loop exit
PB: predicated region body
PF: predicated region fallthrough
CT: control target
= control target key end

     0   :  { %s3247_s12 = smov 0   ;;  %s3249_s13 = smov 0   ;;  %s3746_s0 = inlined_call_operand.vmem [shape: bf16[2,8,8,128], index: 0, kind: input, shape index: {}]   ;;  %s3747_s1 = inlined_call_operand.vmem [shape: f32[16,8], index: 1, kind: input, shape index: {}, may-alias: {1,2}]   ;;  %s3748_s2 = inlined_call_operand.vmem [shape: f32[16,8], index: 2, kind: input, shape index: {}, may-alias: {1,2}]   ;;  %s3749_s3 = inlined_call_operand.vmem [shape: bf16[2,16,16,128], index: 3, kind: output, shape index: {}]  }
   0x1   :  { %s3251_s14 = smov 0  }
   0x2 LB: > { %s25_s15 = sadd.s32 1, %s3218_s13  ;;  %p2930_p0 = scmp.ge.s32.totalorder %s3222_s14, 1  ;;  %s3222_s14 = sphi %s3251_s14, %s13_s14   ;;  %s3218_s13 = sphi %s3249_s13, %s3751_s13   ;;  %s3214_s12 = sphi %s3247_s12, %s3750_s12  }
   0x3   : > { %p27_p1 = scmp.ge.s32.totalorder %s25_s15, 2  ;;  %p162_p2 = scmp.lt.s32.totalorder %s3222_s14, 3 }
   0x5   : > { %s3753_s15 = smov (%p27_p1, %s25_s15), 0  ;;  %p163_p3 = pnand %p2930_p0, %p162_p2 }
   0x6   : > { %p195_p4 = scmp.lt.s32.totalorder (!%p163_p3), %s3214_s12, 1  ;;  %v237_v0 = vlaneseq (!%p163_p3)  ;;  %v3224_v1 = vmov (!%p163_p3), 1983009808   ;;  %v3225_v3 = vmov (!%p163_p3), 1934713408   ;;  %v3226_v5 = vmov (!%p163_p3), 0.0  }
   0x7   : > { %166 = sbr.rel (%p163_p3) target bundleno = 554 (0x22a), region = 32  ;;  %v235_v2 = vunpack.c.l.s4 (!%p163_p3), %v3224_v1  ;;  %v299_v4 = vunpack.c.l.s4 (!%p163_p3), %v3225_v3  ;;  %441 = vmatprep.mubr.f32.mxu0 (!%p163_p3), %v3226_v5  ;;  %518 = vmatprep.mubr.f32.mxu1 (!%p163_p3), %v3226_v5  ;;  %v368_v59 = vld [vmem:[%s3747_s1] sm:$0xff] (!%p163_p3)  ;;  %vm370_vm0 = vcmask (!%p163_p3), 64512  }
   0x8   : > { %v238_v6 = vshrl.u32 (!%p163_p3), %v237_v0, 7  ;;  %v369_v0 = vld [vmem:[%s3747_s1 + $0x8] sm:$0xff] (!%p163_p3) }
   0x9   : > { %v236_v7 = vunpack.c.0.s8 (!%p163_p3), %v235_v2  ;;  %v300_v8 = vunpack.c.0.s8 (!%p163_p3), %v299_v4 }
   0xb   : > { %v3273_v12 = vsub.s32 (!%p163_p3), %v236_v7, %v238_v6  ;;  %v3275_v13 = vsub.s32 (!%p163_p3), %v300_v8, %v238_v6 }
   0xe   : > { %s3755_s12 = smov (!%p195_p4, %s3214_s12), 1 }
   0xf   : > { %s3025_s16 = sshll.u32 %s3755_s12, 5  ;;  %s3026_s28 = sshll.u32 %s3755_s12, 7 }
  0x10   : > { %s199_s19 = scalar_lea.vmem %s3746_s0, %s3025_s16  ;;  %s3663_s4 = scalar_lea.vmem %s3749_s3, %s3026_s28 }
  0x11   : > { %v3060_v9 = vld [vmem:[%s199_s19] sm:$0xff]   ;;  %v3155_v10 = vld [vmem:[%s199_s19 + $0x8] sm:$0xff]   ;;  %v3156_v11 = vld [vmem:[%s199_s19 + $0x10] sm:$0xff]  }
  0x12   : > { %v3061_v14 = vunpack.c.l.bf16 %v3060_v9  ;;  %v3062_v15 = vunpack.c.h.bf16 %v3060_v9  ;;  %v3065_v16 = vunpack.c.l.bf16 %v3155_v10  ;;  %v3066_v17 = vunpack.c.h.bf16 %v3155_v10  ;;  %v3157_v18 = vld [vmem:[%s199_s19 + $0x18] sm:$0xff]  }
  0x13   : > { %v3069_v19 = vunpack.c.l.bf16 %v3156_v11  ;;  %v3070_v20 = vunpack.c.h.bf16 %v3156_v11  ;;  %v3073_v21 = vunpack.c.l.bf16 %v3157_v18  ;;  %v3074_v22 = vunpack.c.h.bf16 %v3157_v18 }
  0x14   : > { %v232_v23 = vcombine.low %v3061_v14, %v3065_v16  ;;  %v248_v24 = vcombine.low %v3062_v15, %v3066_v17  ;;  %v233_v25 = vcombine.high %v3061_v14, %v3065_v16  ;;  %v249_v26 = vcombine.high %v3062_v15, %v3066_v17 }
  0x15   : > { %v264_v27 = vcombine.low %v3069_v19, %v3073_v21  ;;  %v280_v28 = vcombine.low %v3070_v20, %v3074_v22  ;;  %v265_v29 = vcombine.high %v3069_v19, %v3073_v21  ;;  %v281_v30 = vcombine.high %v3070_v20, %v3074_v22 }
  0x16   : > { %v240_v31 = vrot.slane %v232_v23, %v3273_v12  ;;  %v256_v32 = vrot.slane %v248_v24, %v3273_v12  ;;  %v247_v33 = vrot.slane %v233_v25, %v3273_v12  ;;  %v263_v34 = vrot.slane %v249_v26, %v3273_v12 }
  0x17   : > { %v272_v35 = vrot.slane %v264_v27, %v3273_v12  ;;  %v288_v36 = vrot.slane %v280_v28, %v3273_v12  ;;  %v279_v37 = vrot.slane %v265_v29, %v3273_v12  ;;  %v295_v38 = vrot.slane %v281_v30, %v3273_v12 }
  0x18   : > { %v296_v39 = vcombine.low %v240_v31, %v256_v32  ;;  %v297_v40 = vcombine.high %v240_v31, %v256_v32  ;;  %v312_v41 = vcombine.low %v247_v33, %v263_v34  ;;  %v313_v42 = vcombine.high %v247_v33, %v263_v34 }
  0x19   : > { %v328_v43 = vcombine.low %v272_v35, %v288_v36  ;;  %v329_v44 = vcombine.high %v272_v35, %v288_v36  ;;  %v344_v45 = vcombine.low %v279_v37, %v295_v38  ;;  %v345_v46 = vcombine.high %v279_v37, %v295_v38 }
  0x1a   : > { %v304_v47 = vrot.slane %v296_v39, %v3275_v13  ;;  %v311_v48 = vrot.slane %v297_v40, %v3275_v13  ;;  %v320_v49 = vrot.slane %v312_v41, %v3275_v13  ;;  %v327_v50 = vrot.slane %v313_v42, %v3275_v13 }
  0x1b   : > { %v336_v51 = vrot.slane %v328_v43, %v3275_v13  ;;  %v343_v52 = vrot.slane %v329_v44, %v3275_v13  ;;  %v352_v53 = vrot.slane %v344_v45, %v3275_v13  ;;  %v359_v54 = vrot.slane %v345_v46, %v3275_v13 }
  0x1d   : > { %v361_v55 = vcombine.high %v304_v47, %v336_v51  ;;  %v363_v56 = vcombine.high %v311_v48, %v343_v52  ;;  %v360_v57 = vcombine.low %v304_v47, %v336_v51  ;;  %v362_v58 = vcombine.low %v311_v48, %v343_v52 }
  0x1e   : > { %v365_v60 = vcombine.high %v320_v49, %v352_v53  ;;  %v367_v61 = vcombine.high %v327_v50, %v359_v54  ;;  %v364_v62 = vcombine.low %v320_v49, %v352_v53  ;;  %v366_v63 = vcombine.low %v327_v50, %v359_v54 }
  0x1f   : > { %377 = vmatprep.subr.mxu0 %v361_v55  ;;  %454 = vmatprep.subr.mxu1 %v363_v56 }
  0x20   : > { %378 = vmatpush1.msra.mxu0 %v360_v57  ;;  %455 = vmatpush1.msra.mxu1 %v362_v58 }
  0x21   : > { %2935 = vmatmul.mubr.msk.f32.vlgmr.msra.gmra.mrb[0].mxu0 %vm370_vm0, %v368_v59  ;;  %2937 = vmatmul.mubr.msk.f32.vlgmr.msra.gmra.mrb[0].mxu1 %vm370_vm0, %v368_v59 }
  0x22   : > { %447 = vmatprep.mubr.f32.mxu0 %v3226_v5  ;;  %524 = vmatprep.mubr.f32.mxu1 %v3226_v5 }
  0x23   : > { %531 = vmatprep.subr.mxu0 %v365_v60  ;;  %608 = vmatprep.subr.mxu1 %v367_v61 }
  0x24   : > { %532 = vmatpush1.msra.mxu0 %v364_v62  ;;  %609 = vmatpush1.msra.mxu1 %v366_v63 }
  0x25   : > { %2936 = vmatmul.mubr.msk.f32.gmra.mrb[2].mxu0 %vm370_vm0, %v369_v0  ;;  %2938 = vmatmul.mubr.msk.f32.gmra.mrb[2].mxu1 %vm370_vm0, %v369_v0 }
  0x26   : > { %595 = vmatprep.mubr.f32.mxu0 %v3226_v5  ;;  %672 = vmatprep.mubr.f32.mxu1 %v3226_v5 }
  0x29   : > { %2939 = vmatmul.mubr.msk.f32.vlgmr.msra.gmra.mrb[4].mxu0 %vm370_vm0, %v368_v59  ;;  %2941 = vmatmul.mubr.msk.f32.vlgmr.msra.gmra.mrb[4].mxu1 %vm370_vm0, %v368_v59 }
  0x2a   : > { %601 = vmatprep.mubr.f32.mxu0 %v3226_v5  ;;  %678 = vmatprep.mubr.f32.mxu1 %v3226_v5 }
  0x2d   : > { %2940 = vmatmul.mubr.msk.f32.gmra.mrb[6].mxu0 %vm370_vm0, %v369_v0  ;;  %2942 = vmatmul.mubr.msk.f32.gmra.mrb[6].mxu1 %vm370_vm0, %v369_v0 }
  0x2e   : > { %1573 = vmatprep.mubr.f32.mxu0 %v3226_v5  ;;  %1650 = vmatprep.mubr.f32.mxu1 %v3226_v5 }
  0xf4   : > { %v443_v1 = vpop.f32.mrb[0].mxu0  ;;  %v520_v2 = vpop.f32.mrb[0].mxu1 }
  0xf5   : > { %v685_v3 = vcombine.low %v443_v1, %v520_v2  ;;  %v686_v4 = vcombine.high %v443_v1, %v520_v2  ;;  %v445_v6 = vpop.f32.mrb[1].mxu0  ;;  %v522_v7 = vpop.f32.mrb[1].mxu1 }
  0xf6   : > { %v701_v8 = vcombine.low %v445_v6, %v522_v7  ;;  %v702_v9 = vcombine.high %v445_v6, %v522_v7 }
  0xf7   : > { %v693_v10 = vrot.slane %v685_v3, %v3273_v12  ;;  %v700_v11 = vrot.slane %v686_v4, %v3273_v12 }
  0xf8   : > { %v709_v14 = vrot.slane %v701_v8, %v3273_v12  ;;  %v716_v15 = vrot.slane %v702_v9, %v3273_v12  ;;  %v449_v16 = vpop.f32.mrb[2].mxu0  ;;  %v526_v17 = vpop.f32.mrb[2].mxu1 }
  0xf9   : > { %v821_v18 = vcombine.low %v449_v16, %v526_v17  ;;  %v822_v19 = vcombine.high %v449_v16, %v526_v17  ;;  %v451_v20 = vpop.f32.mrb[3].mxu0  ;;  %v528_v21 = vpop.f32.mrb[3].mxu1 }
  0xfa   : > { %v749_v22 = vcombine.low %v693_v10, %v709_v14  ;;  %v750_v23 = vcombine.high %v693_v10, %v709_v14  ;;  %v765_v24 = vcombine.low %v700_v11, %v716_v15  ;;  %v766_v25 = vcombine.high %v700_v11, %v716_v15 }
  0xfb   : > { %v829_v26 = vrot.slane %v821_v18, %v3273_v12  ;;  %v836_v27 = vrot.slane %v822_v19, %v3273_v12  ;;  %v837_v28 = vcombine.low %v451_v20, %v528_v21  ;;  %v838_v29 = vcombine.high %v451_v20, %v528_v21 }
  0xfc   : > { %v757_v30 = vrot.slane %v749_v22, %v3275_v13  ;;  %v764_v31 = vrot.slane %v750_v23, %v3275_v13  ;;  %v773_v32 = vrot.slane %v765_v24, %v3275_v13  ;;  %v780_v33 = vrot.slane %v766_v25, %v3275_v13  ;;  %v597_v34 = vpop.f32.mrb[4].mxu0  ;;  %v674_v35 = vpop.f32.mrb[4].mxu1 }
  0xfd   : > { %v845_v36 = vrot.slane %v837_v28, %v3273_v12  ;;  %v852_v37 = vrot.slane %v838_v29, %v3273_v12  ;;  %v717_v38 = vcombine.low %v597_v34, %v674_v35  ;;  %v718_v39 = vcombine.high %v597_v34, %v674_v35  ;;  %v599_v40 = vpop.f32.mrb[5].mxu0  ;;  %v676_v41 = vpop.f32.mrb[5].mxu1 }
  0xfe   : > { %v2943_v42 = vcombine.low %v757_v30, %v764_v31  ;;  %v2945_v43 = vcombine.high %v757_v30, %v764_v31  ;;  %v2947_v44 = vcombine.low %v773_v32, %v780_v33  ;;  %v2949_v45 = vcombine.high %v773_v32, %v780_v33 }
  0xff   : > { %v885_v46 = vcombine.low %v829_v26, %v845_v36  ;;  %v886_v47 = vcombine.high %v829_v26, %v845_v36  ;;  %v901_v48 = vcombine.low %v836_v27, %v852_v37  ;;  %v902_v49 = vcombine.high %v836_v27, %v852_v37 }
 0x100   : > { %v965_v50 = vrot.slane %v2943_v42, %v3273_v12  ;;  %v981_v51 = vrot.slane %v2945_v43, %v3273_v12  ;;  %v3330_v52 = vrot.slane %v2947_v44, %v3273_v12  ;;  %v3333_v53 = vrot.slane %v2949_v45, %v3273_v12  ;;  %v603_v54 = vpop.f32.mrb[6].mxu0  ;;  %v680_v55 = vpop.f32.mrb[6].mxu1 }
 0x101   : > { %v893_v56 = vrot.slane %v885_v46, %v3275_v13  ;;  %v900_v57 = vrot.slane %v886_v47, %v3275_v13  ;;  %v909_v58 = vrot.slane %v901_v48, %v3275_v13  ;;  %v916_v59 = vrot.slane %v902_v49, %v3275_v13  ;;  %v605_v60 = vpop.f32.mrb[7].mxu0  ;;  %v682_v61 = vpop.f32.mrb[7].mxu1 }
 0x102   : > { %v1021_v62 = vcombine.low %v965_v50, %v981_v51  ;;  %v1022_v63 = vcombine.high %v965_v50, %v981_v51  ;;  %v1053_v0 = vcombine.low %v3330_v52, %v3333_v53  ;;  %v1054_v1 = vcombine.high %v3330_v52, %v3333_v53 }
 0x103   : > { %v2951_v2 = vcombine.low %v893_v56, %v900_v57  ;;  %v2953_v3 = vcombine.high %v893_v56, %v900_v57  ;;  %v2955_v4 = vcombine.low %v909_v58, %v916_v59  ;;  %v2957_v6 = vcombine.high %v909_v58, %v916_v59 }
 0x104   : > { %v725_v7 = vrot.slane %v717_v38, %v3273_v12  ;;  %v732_v8 = vrot.slane %v718_v39, %v3273_v12  ;;  %v733_v9 = vcombine.low %v599_v40, %v676_v41  ;;  %v734_v10 = vcombine.high %v599_v40, %v676_v41 }
 0x105   : > { %v3346_v11 = vrot.slane %v2951_v2, %v3273_v12  ;;  %v3349_v14 = vrot.slane %v2953_v3, %v3273_v12  ;;  %v3352_v15 = vrot.slane %v2955_v4, %v3273_v12  ;;  %v3355_v16 = vrot.slane %v2957_v6, %v3273_v12 }
 0x106   : > { %v741_v17 = vrot.slane %v733_v9, %v3273_v12  ;;  %v748_v18 = vrot.slane %v734_v10, %v3273_v12  ;;  %v853_v19 = vcombine.low %v603_v54, %v680_v55  ;;  %v854_v20 = vcombine.high %v603_v54, %v680_v55 }
 0x107   : > { %v1157_v21 = vcombine.low %v3346_v11, %v3349_v14  ;;  %v1158_v22 = vcombine.high %v3346_v11, %v3349_v14  ;;  %v1189_v23 = vcombine.low %v3352_v15, %v3355_v16  ;;  %v1190_v24 = vcombine.high %v3352_v15, %v3355_v16 }
 0x108   : > { %v781_v25 = vcombine.low %v725_v7, %v741_v17  ;;  %v782_v26 = vcombine.high %v725_v7, %v741_v17  ;;  %v797_v27 = vcombine.low %v732_v8, %v748_v18  ;;  %v798_v28 = vcombine.high %v732_v8, %v748_v18 }
 0x109   : > { %v861_v29 = vrot.slane %v853_v19, %v3273_v12  ;;  %v868_v30 = vrot.slane %v854_v20, %v3273_v12  ;;  %v869_v31 = vcombine.low %v605_v60, %v682_v61  ;;  %v870_v32 = vcombine.high %v605_v60, %v682_v61 }
 0x10a   : > { %v789_v33 = vrot.slane %v781_v25, %v3275_v13  ;;  %v796_v34 = vrot.slane %v782_v26, %v3275_v13  ;;  %v805_v35 = vrot.slane %v797_v27, %v3275_v13  ;;  %v812_v36 = vrot.slane %v798_v28, %v3275_v13 }
 0x10b   : > { %v877_v37 = vrot.slane %v869_v31, %v3273_v12  ;;  %v884_v38 = vrot.slane %v870_v32, %v3273_v12  ;;  %v1029_v39 = vrot.slane %v1021_v62, %v3275_v13  ;;  %v1036_v40 = vrot.slane %v1022_v63, %v3275_v13 }
 0x10c   : > { %v2944_v41 = vcombine.low %v789_v33, %v796_v34  ;;  %v2946_v42 = vcombine.high %v789_v33, %v796_v34  ;;  %v2948_v43 = vcombine.low %v805_v35, %v812_v36  ;;  %v2950_v44 = vcombine.high %v805_v35, %v812_v36 }
 0x10d   : > { %v917_v45 = vcombine.low %v861_v29, %v877_v37  ;;  %v918_v46 = vcombine.high %v861_v29, %v877_v37  ;;  %v933_v47 = vcombine.low %v868_v30, %v884_v38  ;;  %v934_v48 = vcombine.high %v868_v30, %v884_v38 }
 0x10e   : > { %v972_v49 = vrot.slane %v2944_v41, %v3273_v12  ;;  %v988_v50 = vrot.slane %v2946_v42, %v3273_v12  ;;  %v1004_v51 = vrot.slane %v2948_v43, %v3273_v12  ;;  %v1020_v54 = vrot.slane %v2950_v44, %v3273_v12 }
 0x10f   : > { %v925_v55 = vrot.slane %v917_v45, %v3275_v13  ;;  %v932_v56 = vrot.slane %v918_v46, %v3275_v13  ;;  %v941_v57 = vrot.slane %v933_v47, %v3275_v13  ;;  %v948_v58 = vrot.slane %v934_v48, %v3275_v13 }
 0x110   : > { %v1037_v59 = vcombine.low %v972_v49, %v988_v50  ;;  %v1038_v60 = vcombine.high %v972_v49, %v988_v50  ;;  %v1069_v61 = vcombine.low %v1004_v51, %v1020_v54  ;;  %v1070_v62 = vcombine.high %v1004_v51, %v1020_v54 }
 0x111   : > { %v2952_v63 = vcombine.low %v925_v55, %v932_v56  ;;  %v2954_v2 = vcombine.high %v925_v55, %v932_v56  ;;  %v2956_v3 = vcombine.low %v941_v57, %v948_v58  ;;  %v2958_v4 = vcombine.high %v941_v57, %v948_v58 }
 0x112   : > { %v1045_v6 = vrot.slane %v1037_v59, %v3275_v13  ;;  %v1052_v7 = vrot.slane %v1038_v60, %v3275_v13  ;;  %v2959_v8 = vcombine.low %v1029_v39, %v1036_v40  ;;  %v2961_v9 = vcombine.high %v1029_v39, %v1036_v40 }
 0x113   : > { %v1108_v10 = vrot.slane %v2952_v63, %v3273_v12  ;;  %v1124_v17 = vrot.slane %v2954_v2, %v3273_v12  ;;  %v3390_v18 = vrot.slane %v2956_v3, %v3273_v12  ;;  %v3393_v19 = vrot.slane %v2958_v4, %v3273_v12 }
 0x114   : > { %v1237_v20 = vrot.slane %v2959_v8, %v3273_v12  ;;  %v1253_v25 = vrot.slane %v2961_v9, %v3273_v12  ;;  %v2963_v26 = vcombine.low %v1045_v6, %v1052_v7  ;;  %v2965_v27 = vcombine.high %v1045_v6, %v1052_v7 }
 0x115   : > { %v1173_v28 = vcombine.low %v1108_v10, %v1124_v17  ;;  %v1174_v29 = vcombine.high %v1108_v10, %v1124_v17  ;;  %v1205_v30 = vcombine.low %v3390_v18, %v3393_v19  ;;  %v1206_v31 = vcombine.high %v3390_v18, %v3393_v19 }
 0x116   : > { %v1269_v32 = vrot.slane %v2963_v26, %v3273_v12  ;;  %v1285_v33 = vrot.slane %v2965_v27, %v3273_v12  ;;  %v1293_v34 = vcombine.low %v1237_v20, %v1253_v25  ;;  %v1294_v35 = vcombine.high %v1237_v20, %v1253_v25  ;;  %v3451_v26 = vld [vmem:[%s3748_s2 + $0x8] sm:$0xff] }
 0x117   : > { %v1061_v36 = vrot.slane %v1053_v0, %v3275_v13  ;;  %v1068_v37 = vrot.slane %v1054_v1, %v3275_v13  ;;  %v1077_v38 = vrot.slane %v1069_v61, %v3275_v13  ;;  %v1084_v39 = vrot.slane %v1070_v62, %v3275_v13 }
 0x118   : > { %v1301_v40 = vrot.slane %v1293_v34, %v3275_v13  ;;  %v1325_v41 = vcombine.low %v1269_v32, %v1285_v33  ;;  %v1308_v42 = vrot.slane %v1294_v35, %v3275_v13  ;;  %v1326_v43 = vcombine.high %v1269_v32, %v1285_v33 }
 0x119   : > { %v2960_v44 = vcombine.low %v1061_v36, %v1068_v37  ;;  %v2962_v45 = vcombine.high %v1061_v36, %v1068_v37  ;;  %v2964_v46 = vcombine.low %v1077_v38, %v1084_v39  ;;  %v2966_v47 = vcombine.high %v1077_v38, %v1084_v39 }
 0x11a   : > { %v1333_v0 = vrot.slane %v1325_v41, %v3275_v13  ;;  %v1340_v48 = vrot.slane %v1326_v43, %v3275_v13  ;;  %v1165_v52 = vrot.slane %v1157_v21, %v3275_v13  ;;  %v1172_v53 = vrot.slane %v1158_v22, %v3275_v13  ;;  %v3432_v21 = vld [vmem:[%s3748_s2] sm:$0xff] }
 0x11b   : > { %v1244_v1 = vrot.slane %v2960_v44, %v3273_v12  ;;  %v1260_v49 = vrot.slane %v2962_v45, %v3273_v12  ;;  %v1276_v50 = vrot.slane %v2964_v46, %v3273_v12  ;;  %v1292_v51 = vrot.slane %v2966_v47, %v3273_v12 }
 0x11c   : > { %v1358_v54 = vcombine.high %v1301_v40, %v1333_v0  ;;  %v1360_v55 = vcombine.high %v1308_v42, %v1340_v48  ;;  %v1357_v56 = vcombine.low %v1301_v40, %v1333_v0  ;;  %v1359_v57 = vcombine.low %v1308_v42, %v1340_v48 }
 0x11d   : > { %v1309_v58 = vcombine.low %v1244_v1, %v1260_v49  ;;  %v1341_v11 = vcombine.low %v1276_v50, %v1292_v51  ;;  %v1310_v14 = vcombine.high %v1244_v1, %v1260_v49  ;;  %v1342_v22 = vcombine.high %v1276_v50, %v1292_v51 }
 0x11e   : > { %1509 = vmatprep.subr.mxu0 %v1358_v54  ;;  %1586 = vmatprep.subr.mxu1 %v1360_v55  ;;  %v1181_v59 = vrot.slane %v1173_v28, %v3275_v13  ;;  %v1188_v60 = vrot.slane %v1174_v29, %v3275_v13  ;;  %v2967_v61 = vcombine.low %v1165_v52, %v1172_v53 }
 0x11f   : > { %1510 = vmatpush1.msra.mxu0 %v1357_v56  ;;  %1587 = vmatpush1.msra.mxu1 %v1359_v57  ;;  %v1317_v62 = vrot.slane %v1309_v58, %v3275_v13  ;;  %v1349_v63 = vrot.slane %v1341_v11, %v3275_v13  ;;  %v1324_v2 = vrot.slane %v1310_v14, %v3275_v13 }
 0x120   : > { %2975 = vmatmul.mubr.msk.f32.vlgmr.msra.gmra.mrb[8].mxu0 %vm370_vm0, %v3432_v21  ;;  %2977 = vmatmul.mubr.msk.f32.vlgmr.msra.gmra.mrb[8].mxu1 %vm370_vm0, %v3432_v21  ;;  %v1356_v3 = vrot.slane %v1342_v22, %v3275_v13  ;;  %v1373_v4 = vrot.slane %v2967_v61, %v3273_v12  ;;  %v2969_v6 = vcombine.high %v1165_v52, %v1172_v53 }
 0x121   : > { %v1362_v7 = vcombine.high %v1317_v62, %v1349_v63  ;;  %v1361_v8 = vcombine.low %v1317_v62, %v1349_v63  ;;  %v2971_v9 = vcombine.low %v1181_v59, %v1188_v60  ;;  %v2973_v10 = vcombine.high %v1181_v59, %v1188_v60  ;;  %1579 = vmatprep.mubr.f32.mxu0 %v3226_v5 }
 0x122   : > { %v1364_v17 = vcombine.high %v1324_v2, %v1356_v3  ;;  %v1363_v20 = vcombine.low %v1324_v2, %v1356_v3  ;;  %v1389_v25 = vrot.slane %v2969_v6, %v3273_v12  ;;  %1656 = vmatprep.mubr.f32.mxu1 %v3226_v5  ;;  %v1197_v27 = vrot.slane %v1189_v23, %v3275_v13 }
 0x123   : > { %1663 = vmatprep.subr.mxu0 %v1362_v7  ;;  %v1405_v28 = vrot.slane %v2971_v9, %v3273_v12  ;;  %v1421_v29 = vrot.slane %v2973_v10, %v3273_v12  ;;  %v1204_v32 = vrot.slane %v1190_v24, %v3275_v13  ;;  %v1213_v33 = vrot.slane %v1205_v30, %v3275_v13 }
 0x124   : > { %1740 = vmatprep.subr.mxu1 %v1364_v17  ;;  %1664 = vmatpush1.msra.mxu0 %v1361_v8  ;;  %v1429_v34 = vcombine.low %v1373_v4, %v1389_v25  ;;  %v1430_v35 = vcombine.high %v1373_v4, %v1389_v25  ;;  %v1220_v23 = vrot.slane %v1206_v31, %v3275_v13 }
 0x125   : > { %1741 = vmatpush1.msra.mxu1 %v1363_v20  ;;  %v1461_v36 = vcombine.low %v1405_v28, %v1421_v29  ;;  %v1462_v37 = vcombine.high %v1405_v28, %v1421_v29  ;;  %2976 = vmatmul.mubr.msk.f32.gmra.mrb[10].mxu0 %vm370_vm0, %v3451_v26  ;;  %v2968_v15 = vcombine.low %v1197_v27, %v1204_v32 }
 0x126   : > { %v1437_v16 = vrot.slane %v1429_v34, %v3275_v13  ;;  %v1444_v24 = vrot.slane %v1430_v35, %v3275_v13  ;;  %2978 = vmatmul.mubr.msk.f32.gmra.mrb[10].mxu1 %vm370_vm0, %v3451_v26  ;;  %1727 = vmatprep.mubr.f32.mxu0 %v3226_v5  ;;  %v2970_v30 = vcombine.high %v1197_v27, %v1204_v32 }
 0x127   : > { %v1469_v18 = vrot.slane %v1461_v36, %v3275_v13  ;;  %v1476_v19 = vrot.slane %v1462_v37, %v3275_v13  ;;  %1804 = vmatprep.mubr.f32.mxu1 %v3226_v5  ;;  %v1380_v31 = vrot.slane %v2968_v15, %v3273_v12  ;;  %v2972_v38 = vcombine.low %v1213_v33, %v1220_v23 }
 0x128   : > { %v1396_v39 = vrot.slane %v2970_v30, %v3273_v12  ;;  %v2974_v40 = vcombine.high %v1213_v33, %v1220_v23 }
 0x129   : > { %v1494_v41 = vcombine.high %v1437_v16, %v1469_v18  ;;  %v1496_v42 = vcombine.high %v1444_v24, %v1476_v19  ;;  %2979 = vmatmul.mubr.msk.f32.vlgmr.msra.gmra.mrb[12].mxu0 %vm370_vm0, %v3432_v21  ;;  %v1493_v43 = vcombine.low %v1437_v16, %v1469_v18  ;;  %v1495_v44 = vcombine.low %v1444_v24, %v1476_v19 }
 0x12a   : > { %2981 = vmatmul.mubr.msk.f32.vlgmr.msra.gmra.mrb[12].mxu1 %vm370_vm0, %v3432_v21  ;;  %v1412_v45 = vrot.slane %v2972_v38, %v3273_v12  ;;  %v1428_v46 = vrot.slane %v2974_v40, %v3273_v12  ;;  %v1445_v47 = vcombine.low %v1380_v31, %v1396_v39  ;;  %v1446_v0 = vcombine.high %v1380_v31, %v1396_v39 }
 0x12b   : > { %1817 = vmatprep.subr.mxu0 %v1494_v41  ;;  %1894 = vmatprep.subr.mxu1 %v1496_v42 }
 0x12c   : > { %1818 = vmatpush1.msra.mxu0 %v1493_v43  ;;  %1895 = vmatpush1.msra.mxu1 %v1495_v44  ;;  %v1477_v48 = vcombine.low %v1412_v45, %v1428_v46  ;;  %v1478_v52 = vcombine.high %v1412_v45, %v1428_v46  ;;  %v1453_v53 = vrot.slane %v1445_v47, %v3275_v13 }
 0x12d   : > { %1733 = vmatprep.mubr.f32.mxu0 %v3226_v5  ;;  %1810 = vmatprep.mubr.f32.mxu1 %v3226_v5  ;;  %v1460_v49 = vrot.slane %v1446_v0, %v3275_v13 }
 0x12e   : > { %v1485_v1 = vrot.slane %v1477_v48, %v3275_v13  ;;  %2980 = vmatmul.mubr.msk.f32.gmra.mrb[14].mxu0 %vm370_vm0, %v3451_v26  ;;  %2982 = vmatmul.mubr.msk.f32.gmra.mrb[14].mxu1 %vm370_vm0, %v3451_v26  ;;  %v1492_v50 = vrot.slane %v1478_v52, %v3275_v13 }
 0x12f   : > { %1881 = vmatprep.mubr.f32.mxu0 %v3226_v5  ;;  %1958 = vmatprep.mubr.f32.mxu1 %v3226_v5 }
 0x130   : > { %v1498_v51 = vcombine.high %v1453_v53, %v1485_v1  ;;  %v1497_v54 = vcombine.low %v1453_v53, %v1485_v1  ;;  %v1500_v55 = vcombine.high %v1460_v49, %v1492_v50  ;;  %v1499_v56 = vcombine.low %v1460_v49, %v1492_v50 }
 0x132   : > { %1971 = vmatprep.subr.mxu0 %v1498_v51  ;;  %2983 = vmatmul.mubr.msk.f32.vlgmr.msra.gmra.mrb[16].mxu0 %vm370_vm0, %v3432_v21 }
 0x133   : > { %2048 = vmatprep.subr.mxu1 %v1500_v55  ;;  %2985 = vmatmul.mubr.msk.f32.vlgmr.msra.gmra.mrb[16].mxu1 %vm370_vm0, %v3432_v21 }
 0x134   : > { %1972 = vmatpush1.msra.mxu0 %v1497_v54  ;;  %2049 = vmatpush1.msra.mxu1 %v1499_v56 }
 0x135   : > { %1887 = vmatprep.mubr.f32.mxu0 %v3226_v5  ;;  %1964 = vmatprep.mubr.f32.mxu1 %v3226_v5 }
 0x136   : > { %2984 = vmatmul.mubr.msk.f32.gmra.mrb[18].mxu0 %vm370_vm0, %v3451_v26 }
 0x137   : > { %2986 = vmatmul.mubr.msk.f32.gmra.mrb[18].mxu1 %vm370_vm0, %v3451_v26  ;;  %2035 = vmatprep.mubr.f32.mxu0 %v3226_v5 }
 0x138   : > { %2112 = vmatprep.mubr.f32.mxu1 %v3226_v5 }
 0x13a   : > { %2987 = vmatmul.mubr.msk.f32.vlgmr.msra.gmra.mrb[20].mxu0 %vm370_vm0, %v3432_v21 }
 0x13b   : > { %2989 = vmatmul.mubr.msk.f32.vlgmr.msra.gmra.mrb[20].mxu1 %vm370_vm0, %v3432_v21  ;;  %2041 = vmatprep.mubr.f32.mxu0 %v3226_v5 }
 0x13c   : > { %2118 = vmatprep.mubr.f32.mxu1 %v3226_v5 }
 0x13e   : > { %2988 = vmatmul.mubr.msk.f32.gmra.mrb[22].mxu0 %vm370_vm0, %v3451_v26 }
 0x13f   : > { %2990 = vmatmul.mubr.msk.f32.gmra.mrb[22].mxu1 %vm370_vm0, %v3451_v26 }
 0x1f3   : > { %v1575_v57 = vpop.f32.mrb[8].mxu0  ;;  %v1652_v58 = vpop.f32.mrb[8].mxu1 }
 0x1f4   : > { %v2125_v11 = vcombine.low %v1575_v57, %v1652_v58  ;;  %v2126_v14 = vcombine.high %v1575_v57, %v1652_v58  ;;  %v1577_v22 = vpop.f32.mrb[9].mxu0  ;;  %v1654_v59 = vpop.f32.mrb[9].mxu1 }
 0x1f5   : > { %v2141_v60 = vcombine.low %v1577_v22, %v1654_v59  ;;  %v2142_v61 = vcombine.high %v1577_v22, %v1654_v59 }
 0x1f6   : > { %v2133_v21 = vrot.slane %v2125_v11, %v3273_v12  ;;  %v2140_v62 = vrot.slane %v2126_v14, %v3273_v12 }
 0x1f7   : > { %v2149_v5 = vrot.slane %v2141_v60, %v3273_v12  ;;  %v2156_v63 = vrot.slane %v2142_v61, %v3273_v12 }
 0x1f8   : > { %v1581_v2 = vpop.f32.mrb[10].mxu0 }
 0x1f9   : > { %v2189_v3 = vcombine.low %v2133_v21, %v2149_v5  ;;  %v2190_v4 = vcombine.high %v2133_v21, %v2149_v5  ;;  %v2205_v6 = vcombine.low %v2140_v62, %v2156_v63  ;;  %v2206_v7 = vcombine.high %v2140_v62, %v2156_v63  ;;  %v1658_v8 = vpop.f32.mrb[10].mxu1  ;;  %v1583_v9 = vpop.f32.mrb[11].mxu0 }
 0x1fa   : > { %v2397_v10 = vcombine.low %v1581_v2, %v1658_v8  ;;  %v2398_v17 = vcombine.high %v1581_v2, %v1658_v8  ;;  %v1660_v20 = vpop.f32.mrb[11].mxu1 }
 0x1fb   : > { %v2413_v27 = vcombine.low %v1583_v9, %v1660_v20  ;;  %v2414_v28 = vcombine.high %v1583_v9, %v1660_v20  ;;  %v3530_v32 = vrot.slane %v2189_v3, %v3275_v13  ;;  %v3533_v33 = vrot.slane %v2190_v4, %v3275_v13 }
 0x1fc   : > { %v2405_v25 = vrot.slane %v2397_v10, %v3273_v12  ;;  %v2412_v26 = vrot.slane %v2398_v17, %v3273_v12  ;;  %v1729_v29 = vpop.f32.mrb[12].mxu0  ;;  %v3538_v24 = vrot.slane %v2205_v6, %v3275_v13  ;;  %v3541_v30 = vrot.slane %v2206_v7, %v3275_v13 }
 0x1fd   : > { %v1806_v34 = vpop.f32.mrb[12].mxu1  ;;  %v1731_v35 = vpop.f32.mrb[13].mxu0  ;;  %v2421_v23 = vrot.slane %v2413_v27, %v3273_v12  ;;  %v2428_v36 = vrot.slane %v2414_v28, %v3273_v12 }
 0x1fe   : > { %v2157_v37 = vcombine.low %v1729_v29, %v1806_v34  ;;  %v2158_v15 = vcombine.high %v1729_v29, %v1806_v34  ;;  %v1808_v16 = vpop.f32.mrb[13].mxu1 }
 0x1ff   : > { %v2173_v18 = vcombine.low %v1731_v35, %v1808_v16  ;;  %v2174_v19 = vcombine.high %v1731_v35, %v1808_v16  ;;  %v2461_v31 = vcombine.low %v2405_v25, %v2421_v23  ;;  %v2462_v38 = vcombine.high %v2405_v25, %v2421_v23 }
 0x200   : > { %v2477_v39 = vcombine.low %v2412_v26, %v2428_v36  ;;  %v2478_v40 = vcombine.high %v2412_v26, %v2428_v36  ;;  %v2165_v41 = vrot.slane %v2157_v37, %v3273_v12  ;;  %v2172_v42 = vrot.slane %v2158_v15, %v3273_v12 }
 0x201   : > { %v2181_v43 = vrot.slane %v2173_v18, %v3273_v12  ;;  %v2188_v44 = vrot.slane %v2174_v19, %v3273_v12  ;;  %v1735_v45 = vpop.f32.mrb[14].mxu0  ;;  %v1812_v46 = vpop.f32.mrb[14].mxu1  ;;  %v3548_v47 = vrot.slane %v2461_v31, %v3275_v13  ;;  %v3551_v0 = vrot.slane %v2462_v38, %v3275_v13 }
 0x202   : > { %v3554_v48 = vrot.slane %v2477_v39, %v3275_v13  ;;  %v3557_v52 = vrot.slane %v2478_v40, %v3275_v13  ;;  %v1737_v53 = vpop.f32.mrb[15].mxu0  ;;  %v1814_v1 = vpop.f32.mrb[15].mxu1  ;;  %v2429_v55 = vcombine.low %v1735_v45, %v1812_v46  ;;  %v2430_v56 = vcombine.high %v1735_v45, %v1812_v46 }
 0x203   : > { %v2221_v49 = vcombine.low %v2165_v41, %v2181_v43  ;;  %v2222_v50 = vcombine.high %v2165_v41, %v2181_v43  ;;  %v2237_v51 = vcombine.low %v2172_v42, %v2188_v44  ;;  %v2238_v54 = vcombine.high %v2172_v42, %v2188_v44 }
 0x204   : > { %v2445_v57 = vcombine.low %v1737_v53, %v1814_v1  ;;  %v2446_v58 = vcombine.high %v1737_v53, %v1814_v1  ;;  %v2437_v61 = vrot.slane %v2429_v55, %v3273_v12  ;;  %v2444_v21 = vrot.slane %v2430_v56, %v3273_v12 }
 0x205   : > { %v3560_v11 = vrot.slane %v2221_v49, %v3275_v13  ;;  %v3563_v14 = vrot.slane %v2222_v50, %v3275_v13  ;;  %v3566_v22 = vrot.slane %v2237_v51, %v3275_v13  ;;  %v3569_v59 = vrot.slane %v2238_v54, %v3275_v13  ;;  %v1883_v60 = vpop.f32.mrb[16].mxu0 }
 0x206   : > { %v2453_v62 = vrot.slane %v2445_v57, %v3273_v12  ;;  %v2460_v5 = vrot.slane %v2446_v58, %v3273_v12  ;;  %v1960_v63 = vpop.f32.mrb[16].mxu1  ;;  %v1885_v2 = vpop.f32.mrb[17].mxu0 }
 0x207   : > { %v2253_v3 = vcombine.low %v3530_v32, %v3560_v11  ;;  %v2254_v4 = vcombine.high %v3530_v32, %v3560_v11  ;;  %v2255_v6 = vcombine.low %v3533_v33, %v3563_v14  ;;  %v2256_v7 = vcombine.high %v3533_v33, %v3563_v14  ;;  %v1962_v8 = vpop.f32.mrb[17].mxu1 }
 0x208   : > { %v2257_v9 = vcombine.low %v3538_v24, %v3566_v22  ;;  %v2258_v10 = vcombine.high %v3538_v24, %v3566_v22  ;;  %v2259_v17 = vcombine.low %v3541_v30, %v3569_v59  ;;  %v2260_v20 = vcombine.high %v3541_v30, %v3569_v59 }
 0x209   : > { %v2493_v25 = vcombine.low %v2437_v61, %v2453_v62  ;;  %v2494_v26 = vcombine.high %v2437_v61, %v2453_v62  ;;  %v2509_v27 = vcombine.low %v2444_v21, %v2460_v5  ;;  %v2510_v28 = vcombine.high %v2444_v21, %v2460_v5  ;;  %v1889_v29 = vpop.f32.mrb[18].mxu0 }
 0x20a   : > { %v2261_v34 = vcombine.low %v1883_v60, %v1960_v63  ;;  %v2262_v35 = vcombine.high %v1883_v60, %v1960_v63  ;;  %v2277_v23 = vcombine.low %v1885_v2, %v1962_v8  ;;  %v2278_v36 = vcombine.high %v1885_v2, %v1962_v8  ;;  %v1966_v37 = vpop.f32.mrb[18].mxu1  ;;  %v1891_v15 = vpop.f32.mrb[19].mxu0 }
 0x20b   : > { %v3592_v16 = vrot.slane %v2493_v25, %v3275_v13  ;;  %v3595_v18 = vrot.slane %v2494_v26, %v3275_v13  ;;  %v3598_v19 = vrot.slane %v2509_v27, %v3275_v13  ;;  %v3601_v31 = vrot.slane %v2510_v28, %v3275_v13  ;;  %v1968_v38 = vpop.f32.mrb[19].mxu1 }
 0x20c   : > { %v2269_v39 = vrot.slane %v2261_v34, %v3273_v12  ;;  %v2276_v40 = vrot.slane %v2262_v35, %v3273_v12  ;;  %v2285_v41 = vrot.slane %v2277_v23, %v3273_v12  ;;  %v2292_v42 = vrot.slane %v2278_v36, %v3273_v12 }
 0x20d   : > { %v2525_v43 = vcombine.low %v3548_v47, %v3592_v16  ;;  %v2526_v44 = vcombine.high %v3548_v47, %v3592_v16  ;;  %v2527_v45 = vcombine.low %v3551_v0, %v3595_v18  ;;  %v2528_v46 = vcombine.high %v3551_v0, %v3595_v18  ;;  %v2037_v53 = vpop.f32.mrb[20].mxu0 }
 0x20e   : > { %v2529_v1 = vcombine.low %v3554_v48, %v3598_v19  ;;  %v2530_v49 = vcombine.high %v3554_v48, %v3598_v19  ;;  %v2531_v50 = vcombine.low %v3557_v52, %v3601_v31  ;;  %v2532_v51 = vcombine.high %v3557_v52, %v3601_v31  ;;  %v2114_v54 = vpop.f32.mrb[20].mxu1  ;;  %v2039_v55 = vpop.f32.mrb[21].mxu0 }
 0x20f   : > { %v2325_v56 = vcombine.low %v2269_v39, %v2285_v41  ;;  %v2326_v57 = vcombine.high %v2269_v39, %v2285_v41  ;;  %v2341_v58 = vcombine.low %v2276_v40, %v2292_v42  ;;  %v2342_v60 = vcombine.high %v2276_v40, %v2292_v42  ;;  %v2116_v61 = vpop.f32.mrb[21].mxu1 }
 0x210   : > { %v2533_v21 = vcombine.low %v1889_v29, %v1966_v37  ;;  %v2534_v62 = vcombine.high %v1889_v29, %v1966_v37  ;;  %v2549_v5 = vcombine.low %v1891_v15, %v1968_v38  ;;  %v2550_v63 = vcombine.high %v1891_v15, %v1968_v38 }
 0x211   : > { %v2043_v2 = vpop.f32.mrb[22].mxu0  ;;  %v2293_v35 = vcombine.low %v2037_v53, %v2114_v54  ;;  %v2294_v23 = vcombine.high %v2037_v53, %v2114_v54  ;;  %v2309_v29 = vcombine.low %v2039_v55, %v2116_v61  ;;  %v2310_v36 = vcombine.high %v2039_v55, %v2116_v61 }
 0x212   : > { %v3624_v8 = vrot.slane %v2533_v21, %v3273_v12  ;;  %v3627_v25 = vrot.slane %v2534_v62, %v3273_v12  ;;  %v3630_v26 = vrot.slane %v2549_v5, %v3273_v12  ;;  %v3633_v27 = vrot.slane %v2550_v63, %v3273_v12  ;;  %v2120_v28 = vpop.f32.mrb[22].mxu1  ;;  %v2045_v34 = vpop.f32.mrb[23].mxu0 }
 0x213   : > { %v2122_v37 = vpop.f32.mrb[23].mxu1  ;;  %v2301_v41 = vrot.slane %v2293_v35, %v3273_v12  ;;  %v2308_v42 = vrot.slane %v2294_v23, %v3273_v12  ;;  %v2317_v53 = vrot.slane %v2309_v29, %v3273_v12  ;;  %v2324_v54 = vrot.slane %v2310_v36, %v3273_v12 }
 0x214   : > { %v2597_v15 = vcombine.low %v3624_v8, %v3630_v26  ;;  %v2598_v38 = vcombine.high %v3624_v8, %v3630_v26  ;;  %v2613_v39 = vcombine.low %v3627_v25, %v3633_v27  ;;  %v2614_v40 = vcombine.high %v3627_v25, %v3633_v27 }
 0x215   : > { %v2333_v55 = vrot.slane %v2325_v56, %v3275_v13  ;;  %v2340_v61 = vrot.slane %v2326_v57, %v3275_v13  ;;  %v2349_v21 = vrot.slane %v2341_v58, %v3275_v13  ;;  %v2356_v62 = vrot.slane %v2342_v60, %v3275_v13 }
 0x216   : > { %v2357_v5 = vcombine.low %v2301_v41, %v2317_v53  ;;  %v2358_v63 = vcombine.high %v2301_v41, %v2317_v53  ;;  %v2373_v8 = vcombine.low %v2308_v42, %v2324_v54  ;;  %v2374_v25 = vcombine.high %v2308_v42, %v2324_v54 }
 0x217   : > { %v2565_v26 = vcombine.low %v2043_v2, %v2120_v28  ;;  %v2566_v27 = vcombine.high %v2043_v2, %v2120_v28  ;;  %v2581_v35 = vcombine.low %v2045_v34, %v2122_v37  ;;  %v2582_v23 = vcombine.high %v2045_v34, %v2122_v37 }
 0x218   : > { %v2365_v29 = vrot.slane %v2357_v5, %v3275_v13  ;;  %v2372_v36 = vrot.slane %v2358_v63, %v3275_v13  ;;  %v2381_v56 = vrot.slane %v2373_v8, %v3275_v13  ;;  %v2388_v57 = vrot.slane %v2374_v25, %v3275_v13 }
 0x219   : > { %v2573_v58 = vrot.slane %v2565_v26, %v3273_v12  ;;  %v2580_v60 = vrot.slane %v2566_v27, %v3273_v12  ;;  %v2589_v41 = vrot.slane %v2581_v35, %v3273_v12  ;;  %v2596_v42 = vrot.slane %v2582_v23, %v3273_v12 }
 0x21a   : > { %v2389_v2 = vcombine.low %v2333_v55, %v2365_v29  ;;  %v2390_v28 = vcombine.high %v2333_v55, %v2365_v29  ;;  %v2391_v34 = vcombine.low %v2340_v61, %v2372_v36  ;;  %v2392_v37 = vcombine.high %v2340_v61, %v2372_v36 }
 0x21b   : > { %v2393_v53 = vcombine.low %v2349_v21, %v2381_v56  ;;  %v2394_v54 = vcombine.high %v2349_v21, %v2381_v56  ;;  %v2395_v5 = vcombine.low %v2356_v62, %v2388_v57  ;;  %v2396_v63 = vcombine.high %v2356_v62, %v2388_v57 }
 0x21c   : > { %v3078_v12 = vpack.c.bf16 %v2389_v2, %v2253_v3  ;;  %v3083_v55 = vpack.c.bf16 %v2390_v28, %v2254_v4  ;;  %v3088_v61 = vpack.c.bf16 %v2391_v34, %v2255_v6  ;;  %v3093_v8 = vpack.c.bf16 %v2392_v37, %v2256_v7 }
 0x21d   : > { %v3098_v21 = vpack.c.bf16 %v2393_v53, %v2257_v9  ;;  %v3103_v32 = vpack.c.bf16 %v2394_v54, %v2258_v10  ;;  %v3108_v11 = vpack.c.bf16 %v2395_v5, %v2259_v17  ;;  %v3113_v33 = vpack.c.bf16 %v2396_v63, %v2260_v20 }
 0x21e   : > { %3079 = vst [vmem:[%s3663_s4] sm:$0xff] %v3078_v12   ;;  %3158 = vst [vmem:[%s3663_s4 + $0x8] sm:$0xff] %v3083_v55   ;;  %v2629_v14 = vcombine.low %v2573_v58, %v2589_v41  ;;  %v2630_v3 = vcombine.high %v2573_v58, %v2589_v41  ;;  %v2645_v4 = vcombine.low %v2580_v60, %v2596_v42 }
 0x21f   : > { %3159 = vst [vmem:[%s3663_s4 + $0x10] sm:$0xff] %v3088_v61   ;;  %3160 = vst [vmem:[%s3663_s4 + $0x18] sm:$0xff] %v3093_v8   ;;  %v2646_v6 = vcombine.high %v2580_v60, %v2596_v42  ;;  %v2605_v24 = vrot.slane %v2597_v15, %v3275_v13  ;;  %v2612_v22 = vrot.slane %v2598_v38, %v3275_v13 }
 0x220   : > { %3161 = vst [vmem:[%s3663_s4 + $0x20] sm:$0xff] %v3098_v21   ;;  %3162 = vst [vmem:[%s3663_s4 + $0x28] sm:$0xff] %v3103_v32   ;;  %v2637_v7 = vrot.slane %v2629_v14, %v3275_v13  ;;  %v2644_v30 = vrot.slane %v2630_v3, %v3275_v13  ;;  %v2653_v59 = vrot.slane %v2645_v4, %v3275_v13 }
 0x221   : > { %3163 = vst [vmem:[%s3663_s4 + $0x30] sm:$0xff] %v3108_v11   ;;  %3164 = vst [vmem:[%s3663_s4 + $0x38] sm:$0xff] %v3113_v33   ;;  %v2660_v9 = vrot.slane %v2646_v6, %v3275_v13  ;;  %v2621_v10 = vrot.slane %v2613_v39, %v3275_v13  ;;  %v2628_v17 = vrot.slane %v2614_v40, %v3275_v13 }
 0x222   : > { %v2661_v20 = vcombine.low %v2605_v24, %v2637_v7  ;;  %v2662_v15 = vcombine.high %v2605_v24, %v2637_v7  ;;  %v2663_v38 = vcombine.low %v2612_v22, %v2644_v30  ;;  %v2664_v62 = vcombine.high %v2612_v22, %v2644_v30 }
 0x223   : > { %v2665_v25 = vcombine.low %v2621_v10, %v2653_v59  ;;  %v2666_v26 = vcombine.high %v2621_v10, %v2653_v59  ;;  %v2667_v27 = vcombine.low %v2628_v17, %v2660_v9  ;;  %v2668_v35 = vcombine.high %v2628_v17, %v2660_v9 }
 0x224   : > { %v3118_v13 = vpack.c.bf16 %v2661_v20, %v2525_v43  ;;  %v3123_v39 = vpack.c.bf16 %v2662_v15, %v2526_v44  ;;  %v3128_v40 = vpack.c.bf16 %v2663_v38, %v2527_v45  ;;  %v3133_v23 = vpack.c.bf16 %v2664_v62, %v2528_v46 }
 0x225   : > { %v3138_v29 = vpack.c.bf16 %v2665_v25, %v2529_v1  ;;  %v3143_v43 = vpack.c.bf16 %v2666_v26, %v2530_v49  ;;  %v3148_v47 = vpack.c.bf16 %v2667_v27, %v2531_v50  ;;  %v3153_v16 = vpack.c.bf16 %v2668_v35, %v2532_v51 }
 0x226   : > { %3165 = vst [vmem:[%s3663_s4 + $0x40] sm:$0xff] %v3118_v13   ;;  %3166 = vst [vmem:[%s3663_s4 + $0x48] sm:$0xff] %v3123_v39  }
 0x227   : > { %3167 = vst [vmem:[%s3663_s4 + $0x50] sm:$0xff] %v3128_v40   ;;  %3168 = vst [vmem:[%s3663_s4 + $0x58] sm:$0xff] %v3133_v23  }
 0x228   : > { %3169 = vst [vmem:[%s3663_s4 + $0x60] sm:$0xff] %v3138_v29   ;;  %3170 = vst [vmem:[%s3663_s4 + $0x68] sm:$0xff] %v3143_v43  }
 0x229   : > { %3171 = vst [vmem:[%s3663_s4 + $0x70] sm:$0xff] %v3148_v47   ;;  %3172 = vst [vmem:[%s3663_s4 + $0x78] sm:$0xff] %v3153_v16  }
 0x22a PF: > { %s13_s14 = sadd.s32 1, %s3222_s14   ;;  %s3750_s12 = smov %s3218_s13 }
 0x22b   : > { %p10_p5 = scmp.ge.s32.totalorder %s13_s14, 4   ;;  %s3751_s13 = smov %s3753_s15 }
 0x22d   :  { %12 = sbr.rel (!%p10_p5) target bundleno = 2 (0x2), region = 65 }

// kernel: deeplabv1_forward.4
= control target key start
LH: loop header
LB: loop body
LE: loop exit
PB: predicated region body
PF: predicated region fallthrough
CT: control target
= control target key end

     0   :  { %s8208_s24 = smov 0   ;;  %s8210_s25 = smov 0   ;;  %s10424_s0 = inlined_call_operand.vmem [shape: bf16[2,32,32,128], index: 0, kind: input, shape index: {}]   ;;  %s10425_s1 = inlined_call_operand.vmem [shape: bf16[9,128,512], index: 1, kind: input, shape index: {}]   ;;  %s10426_s2 = inlined_call_operand.vmem [shape: f32[1,512], index: 2, kind: input, shape index: {}]   ;;  %s10427_s3 = inlined_call_operand.vmem [shape: bf16[512,512], index: 3, kind: input, shape index: {}]   ;;  %s10428_s4 = inlined_call_operand.vmem [shape: f32[1,512], index: 4, kind: input, shape index: {}]   ;;  %s10429_s5 = inlined_call_operand.vmem [shape: bf16[512,128], index: 5, kind: input, shape index: {}]   ;;  %s10430_s6 = inlined_call_operand.vmem [shape: f32[1,128], index: 6, kind: input, shape index: {}]   ;;  %s10431_s7 = inlined_call_operand.vmem [shape: bf16[2,8,8,128], index: 7, kind: output, shape index: {}]  }
   0x1   :  { %s8212_s26 = smov 0  }
   0x2 LB: > { %s29_s27 = sadd.s32 1, %s8161_s25  ;;  %p6120_p0 = scmp.ge.s32.totalorder %s8165_s26, 1  ;;  %s8165_s26 = sphi %s8212_s26, %s17_s26   ;;  %s8161_s25 = sphi %s8210_s25, %s10435_s25   ;;  %s8157_s24 = sphi %s8208_s24, %s10434_s24  }
   0x3   : > { %p31_p1 = scmp.ge.s32.totalorder %s29_s27, 2  ;;  %p217_p2 = scmp.lt.s32.totalorder %s8165_s26, 3 }
   0x5   : > { %s10437_s27 = smov (%p31_p1, %s29_s27), 0  ;;  %p218_p3 = pnand %p6120_p0, %p217_p2 }
   0x6   : > { %p247_p4 = scmp.lt.s32.totalorder (!%p218_p3), %s8157_s24, 1  ;;  %p258_p5 = scmp.lt.s32.totalorder (!%p218_p3), %s8157_s24, 0 }
   0x7   : > { %221 = sbr.rel (%p218_p3) target bundleno = 1142 (0x476), region = 44  ;;  %s259_s28 = ssub.s32 (!%p218_p3), 0, %s8157_s24 }
   0x8   : > { %s6123_s30 = smin.u32 (!%p218_p3), %s8157_s24, %s259_s28  ;;  %p6126_p7 = scmp.ne.s32.totalorder (!%p218_p3), %s8157_s24, 0 }
   0x9   : > { %s261_s9 = sand.u32 (!%p218_p3), 1, %s6123_s30  }
   0xa   : > { %s262_s13 = ssub.s32 (!%p218_p3), 0, %s261_s9 }
   0xe   : > { %s248_s29 = scalar_select %p247_p4, %s8157_s24, 1 }
   0xf   : > { %s10439_s13 = smov (!%p258_p5, %s262_s13), %s261_s9  ;;  %273 = sbr.rel (%p6126_p7) target bundleno = 54 (0x36), region = 48 }
  0x10   : > { %s6955_s8 = sshll.u32 %s248_s29, 5  ;;  %p6125_p6 = scmp.lt.s32.totalorder %s10439_s13, 0 }
  0x11   : > { %s8236_s12 = scalar_lea.vmem %s10431_s7, %s6955_s8  ;;  %s268_s14 = sadd.s32 2, %s10439_s13 }
  0x12   : > { %s10441_s14 = smov (!%p6125_p6, %s268_s14), %s10439_s13  ;;  %s6956_s15 = sshll.u32 (!%p6126_p7), %s8157_s24, 9 }
  0x13   : > { %s6957_s16 = sshll.u32 (!%p6126_p7), %s10441_s14, 9  ;;  %s8246_s19 = scalar_lea.vmem (!%p6126_p7), %s10424_s0, %s6956_s15 }
  0x14   : > { %v316_v0 = vld [vmem:[%s8246_s19] sm:$0xff] (!%p6126_p7)  ;;  %v318_v1 = vld [vmem:[%s8246_s19 + $0x8] sm:$0xff] (!%p6126_p7)  ;;  %v320_v2 = vld [vmem:[%s8246_s19 + $0x10] sm:$0xff] (!%p6126_p7)  ;;  %s8251_s20 = scalar_lea.vmem (!%p6126_p7), [#allocation2], %s6957_s16  ;;  %s283_s21 = scalar_lea.sflag (!%p6126_p7), [#allocation3], %s10441_s14 }
  0x15   : > { %317 = vst [vmem:[%s8251_s20] sm:$0xff] (!%p6126_p7), %v316_v0  ;;  %319 = vst [vmem:[%s8251_s20 + $0x8] sm:$0xff] (!%p6126_p7), %v318_v1  ;;  %v322_v3 = vld [vmem:[%s8246_s19 + $0x18] sm:$0xff] (!%p6126_p7)  ;;  %v324_v4 = vld [vmem:[%s8246_s19 + $0x20] sm:$0xff] (!%p6126_p7) }
  0x16   : > { %321 = vst [vmem:[%s8251_s20 + $0x10] sm:$0xff] %v320_v2  ;;  %v326_v5 = vld [vmem:[%s8246_s19 + $0x28] sm:$0xff]  ;;  %323 = vst [vmem:[%s8251_s20 + $0x18] sm:$0xff] %v322_v3  ;;  %v328_v6 = vld [vmem:[%s8246_s19 + $0x30] sm:$0xff] }
  0x17   : > { %325 = vst [vmem:[%s8251_s20 + $0x20] sm:$0xff] %v324_v4  ;;  %327 = vst [vmem:[%s8251_s20 + $0x28] sm:$0xff] %v326_v5  ;;  %v330_v7 = vld [vmem:[%s8246_s19 + $0x38] sm:$0xff]  ;;  %v332_v8 = vld [vmem:[%s8246_s19 + $0x40] sm:$0xff] }
  0x18   : > { %329 = vst [vmem:[%s8251_s20 + $0x30] sm:$0xff] %v328_v6  ;;  %331 = vst [vmem:[%s8251_s20 + $0x38] sm:$0xff] %v330_v7  ;;  %v334_v9 = vld [vmem:[%s8246_s19 + $0x48] sm:$0xff]  ;;  %v336_v10 = vld [vmem:[%s8246_s19 + $0x50] sm:$0xff] }
  0x19   : > { %333 = vst [vmem:[%s8251_s20 + $0x40] sm:$0xff] %v332_v8  ;;  %v338_v11 = vld [vmem:[%s8246_s19 + $0x58] sm:$0xff]  ;;  %335 = vst [vmem:[%s8251_s20 + $0x48] sm:$0xff] %v334_v9  ;;  %v340_v12 = vld [vmem:[%s8246_s19 + $0x60] sm:$0xff] }
  0x1a   : > { %337 = vst [vmem:[%s8251_s20 + $0x50] sm:$0xff] %v336_v10  ;;  %339 = vst [vmem:[%s8251_s20 + $0x58] sm:$0xff] %v338_v11  ;;  %v342_v13 = vld [vmem:[%s8246_s19 + $0x68] sm:$0xff]  ;;  %v344_v14 = vld [vmem:[%s8246_s19 + $0x70] sm:$0xff] }
  0x1b   : > { %341 = vst [vmem:[%s8251_s20 + $0x60] sm:$0xff] %v340_v12  ;;  %343 = vst [vmem:[%s8251_s20 + $0x68] sm:$0xff] %v342_v13  ;;  %v346_v15 = vld [vmem:[%s8246_s19 + $0x78] sm:$0xff]  ;;  %v348_v16 = vld [vmem:[%s8246_s19 + $0x80] sm:$0xff] }
  0x1c   : > { %345 = vst [vmem:[%s8251_s20 + $0x70] sm:$0xff] %v344_v14  ;;  %v350_v17 = vld [vmem:[%s8246_s19 + $0x88] sm:$0xff]  ;;  %347 = vst [vmem:[%s8251_s20 + $0x78] sm:$0xff] %v346_v15  ;;  %v352_v18 = vld [vmem:[%s8246_s19 + $0x90] sm:$0xff] }
  0x1d   : > { %349 = vst [vmem:[%s8251_s20 + $0x80] sm:$0xff] %v348_v16  ;;  %351 = vst [vmem:[%s8251_s20 + $0x88] sm:$0xff] %v350_v17  ;;  %v354_v19 = vld [vmem:[%s8246_s19 + $0x98] sm:$0xff]  ;;  %v356_v20 = vld [vmem:[%s8246_s19 + $0xa0] sm:$0xff] }
  0x1e   : > { %353 = vst [vmem:[%s8251_s20 + $0x90] sm:$0xff] %v352_v18  ;;  %355 = vst [vmem:[%s8251_s20 + $0x98] sm:$0xff] %v354_v19  ;;  %v358_v21 = vld [vmem:[%s8246_s19 + $0xa8] sm:$0xff]  ;;  %v360_v22 = vld [vmem:[%s8246_s19 + $0xb0] sm:$0xff] }
  0x1f   : > { %357 = vst [vmem:[%s8251_s20 + $0xa0] sm:$0xff] %v356_v20  ;;  %v362_v23 = vld [vmem:[%s8246_s19 + $0xb8] sm:$0xff]  ;;  %359 = vst [vmem:[%s8251_s20 + $0xa8] sm:$0xff] %v358_v21  ;;  %v364_v24 = vld [vmem:[%s8246_s19 + $0xc0] sm:$0xff] }
  0x20   : > { %361 = vst [vmem:[%s8251_s20 + $0xb0] sm:$0xff] %v360_v22  ;;  %363 = vst [vmem:[%s8251_s20 + $0xb8] sm:$0xff] %v362_v23  ;;  %v366_v25 = vld [vmem:[%s8246_s19 + $0xc8] sm:$0xff]  ;;  %v368_v26 = vld [vmem:[%s8246_s19 + $0xd0] sm:$0xff] }
  0x21   : > { %365 = vst [vmem:[%s8251_s20 + $0xc0] sm:$0xff] %v364_v24  ;;  %367 = vst [vmem:[%s8251_s20 + $0xc8] sm:$0xff] %v366_v25  ;;  %v370_v27 = vld [vmem:[%s8246_s19 + $0xd8] sm:$0xff]  ;;  %v372_v28 = vld [vmem:[%s8246_s19 + $0xe0] sm:$0xff] }
  0x22   : > { %369 = vst [vmem:[%s8251_s20 + $0xd0] sm:$0xff] %v368_v26  ;;  %v374_v29 = vld [vmem:[%s8246_s19 + $0xe8] sm:$0xff]  ;;  %371 = vst [vmem:[%s8251_s20 + $0xd8] sm:$0xff] %v370_v27  ;;  %v376_v30 = vld [vmem:[%s8246_s19 + $0xf0] sm:$0xff] }
  0x23   : > { %373 = vst [vmem:[%s8251_s20 + $0xe0] sm:$0xff] %v372_v28  ;;  %375 = vst [vmem:[%s8251_s20 + $0xe8] sm:$0xff] %v374_v29  ;;  %v378_v31 = vld [vmem:[%s8246_s19 + $0xf8] sm:$0xff]  ;;  %v380_v32 = vld [vmem:[%s8246_s19 + $0x100] sm:$0xff] }
  0x24   : > { %377 = vst [vmem:[%s8251_s20 + $0xf0] sm:$0xff] %v376_v30  ;;  %379 = vst [vmem:[%s8251_s20 + $0xf8] sm:$0xff] %v378_v31  ;;  %v382_v33 = vld [vmem:[%s8246_s19 + $0x108] sm:$0xff]  ;;  %v384_v34 = vld [vmem:[%s8246_s19 + $0x110] sm:$0xff] }
  0x25   : > { %381 = vst [vmem:[%s8251_s20 + $0x100] sm:$0xff] %v380_v32  ;;  %v386_v35 = vld [vmem:[%s8246_s19 + $0x118] sm:$0xff]  ;;  %383 = vst [vmem:[%s8251_s20 + $0x108] sm:$0xff] %v382_v33  ;;  %v388_v36 = vld [vmem:[%s8246_s19 + $0x120] sm:$0xff] }
  0x26   : > { %385 = vst [vmem:[%s8251_s20 + $0x110] sm:$0xff] %v384_v34  ;;  %387 = vst [vmem:[%s8251_s20 + $0x118] sm:$0xff] %v386_v35  ;;  %v390_v37 = vld [vmem:[%s8246_s19 + $0x128] sm:$0xff]  ;;  %v392_v38 = vld [vmem:[%s8246_s19 + $0x130] sm:$0xff] }
  0x27   : > { %389 = vst [vmem:[%s8251_s20 + $0x120] sm:$0xff] %v388_v36  ;;  %391 = vst [vmem:[%s8251_s20 + $0x128] sm:$0xff] %v390_v37  ;;  %v394_v39 = vld [vmem:[%s8246_s19 + $0x138] sm:$0xff]  ;;  %v396_v40 = vld [vmem:[%s8246_s19 + $0x140] sm:$0xff] }
  0x28   : > { %393 = vst [vmem:[%s8251_s20 + $0x130] sm:$0xff] %v392_v38  ;;  %v398_v41 = vld [vmem:[%s8246_s19 + $0x148] sm:$0xff]  ;;  %395 = vst [vmem:[%s8251_s20 + $0x138] sm:$0xff] %v394_v39  ;;  %v400_v42 = vld [vmem:[%s8246_s19 + $0x150] sm:$0xff] }
  0x29   : > { %397 = vst [vmem:[%s8251_s20 + $0x140] sm:$0xff] %v396_v40  ;;  %399 = vst [vmem:[%s8251_s20 + $0x148] sm:$0xff] %v398_v41  ;;  %v402_v43 = vld [vmem:[%s8246_s19 + $0x158] sm:$0xff]  ;;  %v404_v44 = vld [vmem:[%s8246_s19 + $0x160] sm:$0xff] }
  0x2a   : > { %401 = vst [vmem:[%s8251_s20 + $0x150] sm:$0xff] %v400_v42  ;;  %403 = vst [vmem:[%s8251_s20 + $0x158] sm:$0xff] %v402_v43  ;;  %v406_v45 = vld [vmem:[%s8246_s19 + $0x168] sm:$0xff]  ;;  %v408_v46 = vld [vmem:[%s8246_s19 + $0x170] sm:$0xff] }
  0x2b   : > { %405 = vst [vmem:[%s8251_s20 + $0x160] sm:$0xff] %v404_v44  ;;  %v410_v47 = vld [vmem:[%s8246_s19 + $0x178] sm:$0xff]  ;;  %407 = vst [vmem:[%s8251_s20 + $0x168] sm:$0xff] %v406_v45  ;;  %v412_v48 = vld [vmem:[%s8246_s19 + $0x180] sm:$0xff] }
  0x2c   : > { %409 = vst [vmem:[%s8251_s20 + $0x170] sm:$0xff] %v408_v46  ;;  %411 = vst [vmem:[%s8251_s20 + $0x178] sm:$0xff] %v410_v47  ;;  %v414_v49 = vld [vmem:[%s8246_s19 + $0x188] sm:$0xff]  ;;  %v416_v50 = vld [vmem:[%s8246_s19 + $0x190] sm:$0xff] }
  0x2d   : > { %413 = vst [vmem:[%s8251_s20 + $0x180] sm:$0xff] %v412_v48  ;;  %415 = vst [vmem:[%s8251_s20 + $0x188] sm:$0xff] %v414_v49  ;;  %v418_v51 = vld [vmem:[%s8246_s19 + $0x198] sm:$0xff]  ;;  %v420_v52 = vld [vmem:[%s8246_s19 + $0x1a0] sm:$0xff] }
  0x2e   : > { %417 = vst [vmem:[%s8251_s20 + $0x190] sm:$0xff] %v416_v50  ;;  %v422_v53 = vld [vmem:[%s8246_s19 + $0x1a8] sm:$0xff]  ;;  %419 = vst [vmem:[%s8251_s20 + $0x198] sm:$0xff] %v418_v51  ;;  %v424_v54 = vld [vmem:[%s8246_s19 + $0x1b0] sm:$0xff] }
  0x2f   : > { %421 = vst [vmem:[%s8251_s20 + $0x1a0] sm:$0xff] %v420_v52  ;;  %423 = vst [vmem:[%s8251_s20 + $0x1a8] sm:$0xff] %v422_v53  ;;  %v426_v55 = vld [vmem:[%s8246_s19 + $0x1b8] sm:$0xff]  ;;  %v428_v56 = vld [vmem:[%s8246_s19 + $0x1c0] sm:$0xff] }
  0x30   : > { %425 = vst [vmem:[%s8251_s20 + $0x1b0] sm:$0xff] %v424_v54  ;;  %427 = vst [vmem:[%s8251_s20 + $0x1b8] sm:$0xff] %v426_v55  ;;  %v430_v57 = vld [vmem:[%s8246_s19 + $0x1c8] sm:$0xff]  ;;  %v432_v58 = vld [vmem:[%s8246_s19 + $0x1d0] sm:$0xff] }
  0x31   : > { %429 = vst [vmem:[%s8251_s20 + $0x1c0] sm:$0xff] %v428_v56  ;;  %v434_v59 = vld [vmem:[%s8246_s19 + $0x1d8] sm:$0xff]  ;;  %431 = vst [vmem:[%s8251_s20 + $0x1c8] sm:$0xff] %v430_v57  ;;  %v436_v60 = vld [vmem:[%s8246_s19 + $0x1e0] sm:$0xff] }
  0x32   : > { %433 = vst [vmem:[%s8251_s20 + $0x1d0] sm:$0xff] %v432_v58  ;;  %435 = vst [vmem:[%s8251_s20 + $0x1d8] sm:$0xff] %v434_v59  ;;  %v438_v61 = vld [vmem:[%s8246_s19 + $0x1e8] sm:$0xff]  ;;  %v440_v62 = vld [vmem:[%s8246_s19 + $0x1f0] sm:$0xff] }
  0x33   : > { %437 = vst [vmem:[%s8251_s20 + $0x1e0] sm:$0xff] %v436_v60  ;;  %439 = vst [vmem:[%s8251_s20 + $0x1e8] sm:$0xff] %v438_v61  ;;  %v442_v63 = vld [vmem:[%s8246_s19 + $0x1f8] sm:$0xff] }
  0x34   : > { %441 = vst [vmem:[%s8251_s20 + $0x1f0] sm:$0xff] %v440_v62  ;;  %443 = vst [vmem:[%s8251_s20 + $0x1f8] sm:$0xff] %v442_v63 }
  0x35   : > { %451 = vsyncadd %s283_s21, 8192 }
  0x36 PF: > { %s6958_s22 = sshll.u32 %s10441_s14, 9  ;;  %s455_s28 = scalar_lea.sflag [#allocation3], %s10441_s14 }
  0x37   : > { %s8380_s23 = scalar_lea.vmem [#allocation2], %s6958_s22 }
  0x38   : > { %8153 = dma.done.wait %s455_s28, 8192 }
  0x39   : > { %8154 = vsyncadd %s455_s28, 4294959104  ;;  %s461_s29 = sadd.s32 1, %s8157_s24 }
  0x3a   : > { %p6133_p8 = scmp.ge.s32.totalorder %s461_s29, 2 }
  0x3b   : > { %s471_s30 = ssub.s32 (!%p6133_p8), 1, %s10441_s14  ;;  %s6983_s8 = sshll.u32 (!%p6133_p8), %s8157_s24, 9 }
  0x3c   : > { %465 = sbr.rel (%p6133_p8) target bundleno = 96 (0x60), region = 86  ;;  %s6984_s9 = sadd.s32 (!%p6133_p8), 512, %s6983_s8 }
  0x3d   : > { %s6962_s10 = sshll.u32 (!%p6133_p8), %s471_s30, 9  ;;  %s8391_s15 = scalar_lea.vmem (!%p6133_p8), %s10424_s0, %s6984_s9 }
  0x3e   : > { %v514_v0 = vld [vmem:[%s8391_s15] sm:$0xff] (!%p6133_p8)  ;;  %v516_v1 = vld [vmem:[%s8391_s15 + $0x8] sm:$0xff] (!%p6133_p8)  ;;  %v518_v2 = vld [vmem:[%s8391_s15 + $0x10] sm:$0xff] (!%p6133_p8)  ;;  %s8396_s24 = scalar_lea.vmem (!%p6133_p8), [#allocation2], %s6962_s10  ;;  %s481_s16 = scalar_lea.sflag (!%p6133_p8), [#allocation3], %s471_s30 }
  0x3f   : > { %515 = vst [vmem:[%s8396_s24] sm:$0xff] (!%p6133_p8), %v514_v0  ;;  %517 = vst [vmem:[%s8396_s24 + $0x8] sm:$0xff] (!%p6133_p8), %v516_v1  ;;  %v520_v3 = vld [vmem:[%s8391_s15 + $0x18] sm:$0xff] (!%p6133_p8)  ;;  %v522_v4 = vld [vmem:[%s8391_s15 + $0x20] sm:$0xff] (!%p6133_p8) }
  0x40   : > { %519 = vst [vmem:[%s8396_s24 + $0x10] sm:$0xff] (!%p6133_p8), %v518_v2  ;;  %v524_v5 = vld [vmem:[%s8391_s15 + $0x28] sm:$0xff] (!%p6133_p8)  ;;  %521 = vst [vmem:[%s8396_s24 + $0x18] sm:$0xff] (!%p6133_p8), %v520_v3  ;;  %v526_v6 = vld [vmem:[%s8391_s15 + $0x30] sm:$0xff] (!%p6133_p8) }
  0x41   : > { %523 = vst [vmem:[%s8396_s24 + $0x20] sm:$0xff] (!%p6133_p8), %v522_v4  ;;  %525 = vst [vmem:[%s8396_s24 + $0x28] sm:$0xff] (!%p6133_p8), %v524_v5  ;;  %v528_v7 = vld [vmem:[%s8391_s15 + $0x38] sm:$0xff] (!%p6133_p8)  ;;  %v530_v8 = vld [vmem:[%s8391_s15 + $0x40] sm:$0xff] (!%p6133_p8) }
  0x42   : > { %527 = vst [vmem:[%s8396_s24 + $0x30] sm:$0xff] (!%p6133_p8), %v526_v6  ;;  %529 = vst [vmem:[%s8396_s24 + $0x38] sm:$0xff] (!%p6133_p8), %v528_v7  ;;  %v532_v9 = vld [vmem:[%s8391_s15 + $0x48] sm:$0xff] (!%p6133_p8)  ;;  %v534_v10 = vld [vmem:[%s8391_s15 + $0x50] sm:$0xff] (!%p6133_p8) }
  0x43   : > { %531 = vst [vmem:[%s8396_s24 + $0x40] sm:$0xff] %v530_v8  ;;  %v536_v11 = vld [vmem:[%s8391_s15 + $0x58] sm:$0xff]  ;;  %533 = vst [vmem:[%s8396_s24 + $0x48] sm:$0xff] %v532_v9  ;;  %v538_v12 = vld [vmem:[%s8391_s15 + $0x60] sm:$0xff] }
  0x44   : > { %535 = vst [vmem:[%s8396_s24 + $0x50] sm:$0xff] %v534_v10  ;;  %537 = vst [vmem:[%s8396_s24 + $0x58] sm:$0xff] %v536_v11  ;;  %v540_v13 = vld [vmem:[%s8391_s15 + $0x68] sm:$0xff]  ;;  %v542_v14 = vld [vmem:[%s8391_s15 + $0x70] sm:$0xff] }
  0x45   : > { %539 = vst [vmem:[%s8396_s24 + $0x60] sm:$0xff] %v538_v12  ;;  %541 = vst [vmem:[%s8396_s24 + $0x68] sm:$0xff] %v540_v13  ;;  %v544_v15 = vld [vmem:[%s8391_s15 + $0x78] sm:$0xff]  ;;  %v546_v16 = vld [vmem:[%s8391_s15 + $0x80] sm:$0xff] }
  0x46   : > { %543 = vst [vmem:[%s8396_s24 + $0x70] sm:$0xff] %v542_v14  ;;  %v548_v17 = vld [vmem:[%s8391_s15 + $0x88] sm:$0xff]  ;;  %545 = vst [vmem:[%s8396_s24 + $0x78] sm:$0xff] %v544_v15  ;;  %v550_v18 = vld [vmem:[%s8391_s15 + $0x90] sm:$0xff] }
  0x47   : > { %547 = vst [vmem:[%s8396_s24 + $0x80] sm:$0xff] %v546_v16  ;;  %549 = vst [vmem:[%s8396_s24 + $0x88] sm:$0xff] %v548_v17  ;;  %v552_v19 = vld [vmem:[%s8391_s15 + $0x98] sm:$0xff]  ;;  %v554_v20 = vld [vmem:[%s8391_s15 + $0xa0] sm:$0xff] }
  0x48   : > { %551 = vst [vmem:[%s8396_s24 + $0x90] sm:$0xff] %v550_v18  ;;  %553 = vst [vmem:[%s8396_s24 + $0x98] sm:$0xff] %v552_v19  ;;  %v556_v21 = vld [vmem:[%s8391_s15 + $0xa8] sm:$0xff]  ;;  %v558_v22 = vld [vmem:[%s8391_s15 + $0xb0] sm:$0xff] }
  0x49   : > { %555 = vst [vmem:[%s8396_s24 + $0xa0] sm:$0xff] %v554_v20  ;;  %v560_v23 = vld [vmem:[%s8391_s15 + $0xb8] sm:$0xff]  ;;  %557 = vst [vmem:[%s8396_s24 + $0xa8] sm:$0xff] %v556_v21  ;;  %v562_v24 = vld [vmem:[%s8391_s15 + $0xc0] sm:$0xff] }
  0x4a   : > { %559 = vst [vmem:[%s8396_s24 + $0xb0] sm:$0xff] %v558_v22  ;;  %561 = vst [vmem:[%s8396_s24 + $0xb8] sm:$0xff] %v560_v23  ;;  %v564_v25 = vld [vmem:[%s8391_s15 + $0xc8] sm:$0xff]  ;;  %v566_v26 = vld [vmem:[%s8391_s15 + $0xd0] sm:$0xff] }
  0x4b   : > { %563 = vst [vmem:[%s8396_s24 + $0xc0] sm:$0xff] %v562_v24  ;;  %565 = vst [vmem:[%s8396_s24 + $0xc8] sm:$0xff] %v564_v25  ;;  %v568_v27 = vld [vmem:[%s8391_s15 + $0xd8] sm:$0xff]  ;;  %v570_v28 = vld [vmem:[%s8391_s15 + $0xe0] sm:$0xff] }
  0x4c   : > { %567 = vst [vmem:[%s8396_s24 + $0xd0] sm:$0xff] %v566_v26  ;;  %v572_v29 = vld [vmem:[%s8391_s15 + $0xe8] sm:$0xff]  ;;  %569 = vst [vmem:[%s8396_s24 + $0xd8] sm:$0xff] %v568_v27  ;;  %v574_v30 = vld [vmem:[%s8391_s15 + $0xf0] sm:$0xff] }
  0x4d   : > { %571 = vst [vmem:[%s8396_s24 + $0xe0] sm:$0xff] %v570_v28  ;;  %573 = vst [vmem:[%s8396_s24 + $0xe8] sm:$0xff] %v572_v29  ;;  %v576_v31 = vld [vmem:[%s8391_s15 + $0xf8] sm:$0xff]  ;;  %v578_v32 = vld [vmem:[%s8391_s15 + $0x100] sm:$0xff] }
  0x4e   : > { %575 = vst [vmem:[%s8396_s24 + $0xf0] sm:$0xff] %v574_v30  ;;  %577 = vst [vmem:[%s8396_s24 + $0xf8] sm:$0xff] %v576_v31  ;;  %v580_v33 = vld [vmem:[%s8391_s15 + $0x108] sm:$0xff]  ;;  %v582_v34 = vld [vmem:[%s8391_s15 + $0x110] sm:$0xff] }
  0x4f   : > { %579 = vst [vmem:[%s8396_s24 + $0x100] sm:$0xff] %v578_v32  ;;  %v584_v35 = vld [vmem:[%s8391_s15 + $0x118] sm:$0xff]  ;;  %581 = vst [vmem:[%s8396_s24 + $0x108] sm:$0xff] %v580_v33  ;;  %v586_v36 = vld [vmem:[%s8391_s15 + $0x120] sm:$0xff] }
  0x50   : > { %583 = vst [vmem:[%s8396_s24 + $0x110] sm:$0xff] %v582_v34  ;;  %585 = vst [vmem:[%s8396_s24 + $0x118] sm:$0xff] %v584_v35  ;;  %v588_v37 = vld [vmem:[%s8391_s15 + $0x128] sm:$0xff]  ;;  %v590_v38 = vld [vmem:[%s8391_s15 + $0x130] sm:$0xff] }
  0x51   : > { %587 = vst [vmem:[%s8396_s24 + $0x120] sm:$0xff] %v586_v36  ;;  %589 = vst [vmem:[%s8396_s24 + $0x128] sm:$0xff] %v588_v37  ;;  %v592_v39 = vld [vmem:[%s8391_s15 + $0x138] sm:$0xff]  ;;  %v594_v40 = vld [vmem:[%s8391_s15 + $0x140] sm:$0xff] }
  0x52   : > { %591 = vst [vmem:[%s8396_s24 + $0x130] sm:$0xff] %v590_v38  ;;  %v596_v41 = vld [vmem:[%s8391_s15 + $0x148] sm:$0xff]  ;;  %593 = vst [vmem:[%s8396_s24 + $0x138] sm:$0xff] %v592_v39  ;;  %v598_v42 = vld [vmem:[%s8391_s15 + $0x150] sm:$0xff] }
  0x53   : > { %595 = vst [vmem:[%s8396_s24 + $0x140] sm:$0xff] %v594_v40  ;;  %597 = vst [vmem:[%s8396_s24 + $0x148] sm:$0xff] %v596_v41  ;;  %v600_v43 = vld [vmem:[%s8391_s15 + $0x158] sm:$0xff]  ;;  %v602_v44 = vld [vmem:[%s8391_s15 + $0x160] sm:$0xff] }
  0x54   : > { %599 = vst [vmem:[%s8396_s24 + $0x150] sm:$0xff] %v598_v42  ;;  %601 = vst [vmem:[%s8396_s24 + $0x158] sm:$0xff] %v600_v43  ;;  %v604_v45 = vld [vmem:[%s8391_s15 + $0x168] sm:$0xff]  ;;  %v606_v46 = vld [vmem:[%s8391_s15 + $0x170] sm:$0xff] }
  0x55   : > { %603 = vst [vmem:[%s8396_s24 + $0x160] sm:$0xff] %v602_v44  ;;  %v608_v47 = vld [vmem:[%s8391_s15 + $0x178] sm:$0xff]  ;;  %605 = vst [vmem:[%s8396_s24 + $0x168] sm:$0xff] %v604_v45  ;;  %v610_v48 = vld [vmem:[%s8391_s15 + $0x180] sm:$0xff] }
  0x56   : > { %607 = vst [vmem:[%s8396_s24 + $0x170] sm:$0xff] %v606_v46  ;;  %609 = vst [vmem:[%s8396_s24 + $0x178] sm:$0xff] %v608_v47  ;;  %v612_v49 = vld [vmem:[%s8391_s15 + $0x188] sm:$0xff]  ;;  %v614_v50 = vld [vmem:[%s8391_s15 + $0x190] sm:$0xff] }
  0x57   : > { %611 = vst [vmem:[%s8396_s24 + $0x180] sm:$0xff] %v610_v48  ;;  %613 = vst [vmem:[%s8396_s24 + $0x188] sm:$0xff] %v612_v49  ;;  %v616_v51 = vld [vmem:[%s8391_s15 + $0x198] sm:$0xff]  ;;  %v618_v52 = vld [vmem:[%s8391_s15 + $0x1a0] sm:$0xff] }
  0x58   : > { %615 = vst [vmem:[%s8396_s24 + $0x190] sm:$0xff] %v614_v50  ;;  %v620_v53 = vld [vmem:[%s8391_s15 + $0x1a8] sm:$0xff]  ;;  %617 = vst [vmem:[%s8396_s24 + $0x198] sm:$0xff] %v616_v51  ;;  %v622_v54 = vld [vmem:[%s8391_s15 + $0x1b0] sm:$0xff] }
  0x59   : > { %619 = vst [vmem:[%s8396_s24 + $0x1a0] sm:$0xff] %v618_v52  ;;  %621 = vst [vmem:[%s8396_s24 + $0x1a8] sm:$0xff] %v620_v53  ;;  %v624_v55 = vld [vmem:[%s8391_s15 + $0x1b8] sm:$0xff]  ;;  %v626_v56 = vld [vmem:[%s8391_s15 + $0x1c0] sm:$0xff] }
  0x5a   : > { %623 = vst [vmem:[%s8396_s24 + $0x1b0] sm:$0xff] %v622_v54  ;;  %625 = vst [vmem:[%s8396_s24 + $0x1b8] sm:$0xff] %v624_v55  ;;  %v628_v57 = vld [vmem:[%s8391_s15 + $0x1c8] sm:$0xff]  ;;  %v630_v58 = vld [vmem:[%s8391_s15 + $0x1d0] sm:$0xff] }
  0x5b   : > { %627 = vst [vmem:[%s8396_s24 + $0x1c0] sm:$0xff] %v626_v56  ;;  %v632_v59 = vld [vmem:[%s8391_s15 + $0x1d8] sm:$0xff]  ;;  %629 = vst [vmem:[%s8396_s24 + $0x1c8] sm:$0xff] %v628_v57  ;;  %v634_v60 = vld [vmem:[%s8391_s15 + $0x1e0] sm:$0xff] }
  0x5c   : > { %631 = vst [vmem:[%s8396_s24 + $0x1d0] sm:$0xff] %v630_v58  ;;  %633 = vst [vmem:[%s8396_s24 + $0x1d8] sm:$0xff] %v632_v59  ;;  %v636_v61 = vld [vmem:[%s8391_s15 + $0x1e8] sm:$0xff]  ;;  %v638_v62 = vld [vmem:[%s8391_s15 + $0x1f0] sm:$0xff] }
  0x5d   : > { %635 = vst [vmem:[%s8396_s24 + $0x1e0] sm:$0xff] %v634_v60  ;;  %637 = vst [vmem:[%s8396_s24 + $0x1e8] sm:$0xff] %v636_v61  ;;  %v640_v63 = vld [vmem:[%s8391_s15 + $0x1f8] sm:$0xff] }
  0x5e   : > { %639 = vst [vmem:[%s8396_s24 + $0x1f0] sm:$0xff] %v638_v62  ;;  %641 = vst [vmem:[%s8396_s24 + $0x1f8] sm:$0xff] %v640_v63 }
  0x5f   : > { %649 = vsyncadd %s481_s16, 8192 }
  0x60 PF: > { %v7413_v0 = vld [vmem:[%s10425_s1 + $0x104] ss:$16 sps:$4 sm:$0xff]   ;;  %v7415_v1 = vld [vmem:[%s10425_s1 + $0x10c] ss:$16 sps:$4 sm:$0xff]   ;;  %v8167_v2 = vmov 0   ;;  %vm778_vm0 = vcmask 1041408  }
  0x61   : > { %1054 = vmatprep.mubr.bf16.mxu0 %v8167_v2  ;;  %1127 = vmatprep.mubr.bf16.mxu1 %v8167_v2  ;;  %v7417_v3 = vld [vmem:[%s10425_s1 + $0x100] ss:$16 sps:$4 sm:$0xff]   ;;  %v7418_v4 = vld [vmem:[%s10425_s1 + $0x108] ss:$16 sps:$4 sm:$0xff]   ;;  %v7419_v5 = vld [vmem:[%s10425_s1 + $0x124] ss:$16 sps:$4 sm:$0xff]  }
  0x62   : > { %1022 = vmatprep.subr.bf16.mxu0 %v7413_v0  ;;  %1095 = vmatprep.subr.bf16.mxu1 %v7415_v1  ;;  %v7421_v6 = vld [vmem:[%s10425_s1 + $0x12c] ss:$16 sps:$4 sm:$0xff]   ;;  %v7423_v7 = vld [vmem:[%s10425_s1 + $0x120] ss:$16 sps:$4 sm:$0xff]   ;;  %v7424_v8 = vld [vmem:[%s10425_s1 + $0x128] ss:$16 sps:$4 sm:$0xff]  }
  0x63   : > { %1023 = vmatpush1.bf16.msra.mxu0 %v7417_v3  ;;  %1096 = vmatpush1.bf16.msra.mxu1 %v7418_v4  ;;  %v7425_v9 = vld [vmem:[%s10425_s1 + $0x144] ss:$16 sps:$4 sm:$0xff]   ;;  %v7427_v10 = vld [vmem:[%s10425_s1 + $0x14c] ss:$16 sps:$4 sm:$0xff]   ;;  %v7429_v11 = vld [vmem:[%s10425_s1 + $0x140] ss:$16 sps:$4 sm:$0xff]  }
  0x64   : > { %1024 = vmatprep.subr.bf16.mxu0 %v7419_v5  ;;  %1097 = vmatprep.subr.bf16.mxu1 %v7421_v6  ;;  %v7430_v12 = vld [vmem:[%s10425_s1 + $0x148] ss:$16 sps:$4 sm:$0xff]   ;;  %v7431_v13 = vld [vmem:[%s10425_s1 + $0x164] ss:$16 sps:$4 sm:$0xff]   ;;  %v7433_v14 = vld [vmem:[%s10425_s1 + $0x16c] ss:$16 sps:$4 sm:$0xff]  }
  0x65   : > { %v7435_v15 = vld [vmem:[%s10425_s1 + $0x160] ss:$16 sps:$4 sm:$0xff]   ;;  %v7436_v16 = vld [vmem:[%s10425_s1 + $0x168] ss:$16 sps:$4 sm:$0xff]   ;;  %v7437_v17 = vld [vmem:[%s10425_s1 + $0x184] ss:$16 sps:$4 sm:$0xff]  }
  0x66   : > { %v7439_v18 = vld [vmem:[%s10425_s1 + $0x18c] ss:$16 sps:$4 sm:$0xff]   ;;  %v7441_v19 = vld [vmem:[%s10425_s1 + $0x180] ss:$16 sps:$4 sm:$0xff]   ;;  %v7442_v20 = vld [vmem:[%s10425_s1 + $0x188] ss:$16 sps:$4 sm:$0xff]  }
  0x67   : > { %1025 = vmatpush1.bf16.msra.mxu0 %v7423_v7  ;;  %1098 = vmatpush1.bf16.msra.mxu1 %v7424_v8  ;;  %v7443_v21 = vld [vmem:[%s10425_s1 + $0x1a4] ss:$16 sps:$4 sm:$0xff]   ;;  %v7445_v22 = vld [vmem:[%s10425_s1 + $0x1ac] ss:$16 sps:$4 sm:$0xff]   ;;  %v7447_v23 = vld [vmem:[%s10425_s1 + $0x1a0] ss:$16 sps:$4 sm:$0xff]  }
  0x68   : > { %1026 = vmatprep.subr.bf16.mxu0 %v7425_v9  ;;  %1099 = vmatprep.subr.bf16.mxu1 %v7427_v10  ;;  %v7448_v24 = vld [vmem:[%s10425_s1 + $0x1a8] ss:$16 sps:$4 sm:$0xff]   ;;  %v7449_v25 = vld [vmem:[%s10425_s1 + $0x1c4] ss:$16 sps:$4 sm:$0xff]   ;;  %v7451_v26 = vld [vmem:[%s10425_s1 + $0x1cc] ss:$16 sps:$4 sm:$0xff]  }
  0x69   : > { %v8606_v27 = vld [vmem:[%s8380_s23] sm:$0xff]  ;;  %v651_v28 = vld [vmem:[%s8380_s23 + $0x8] sm:$0xff]  ;;  %v8610_v29 = vld [vmem:[%s8380_s23 + $0x10] sm:$0xff]  ;;  %vm779_vm1 = vcmask 1045508  }
  0x6a   : > { %v653_v30 = vld [vmem:[%s8380_s23 + $0x18] sm:$0xff]  ;;  %v6138_v31 = vcombine.high %v8606_v27, %v8606_v27  ;;  %v6139_v32 = vcombine.low %v651_v28, %v651_v28  ;;  %v7453_v33 = vld [vmem:[%s10425_s1 + $0x1c0] ss:$16 sps:$4 sm:$0xff]   ;;  %v6140_v34 = vcombine.high %v8610_v29, %v8610_v29  ;;  %v7455_v40 = vld [vmem:[%s10425_s1 + $0x1e4] ss:$16 sps:$4 sm:$0xff]  }
  0x6b   : > { %1027 = vmatpush1.bf16.msra.mxu0 %v7429_v11  ;;  %1100 = vmatpush1.bf16.msra.mxu1 %v7430_v12  ;;  %v6141_v35 = vcombine.low %v653_v30, %v653_v30  ;;  %v8620_v36 = vcombine.high %v651_v28, %v653_v30  ;;  %v7454_v37 = vld [vmem:[%s10425_s1 + $0x1c8] ss:$16 sps:$4 sm:$0xff]   ;;  %v7457_v41 = vld [vmem:[%s10425_s1 + $0x1ec] ss:$16 sps:$4 sm:$0xff]   ;;  %vm8632_vm2 = vmor %vm778_vm0, %vm779_vm1 }
  0x6c   : > { %1028 = vmatprep.subr.bf16.mxu0 %v7431_v13  ;;  %1101 = vmatprep.subr.bf16.mxu1 %v7433_v14  ;;  %v6154_v38 = vrot.slane %v6138_v31, 10  ;;  %v783_v39 = vrot.slane %v6139_v32, 6  ;;  %v6155_v43 = vrot.slane %v6140_v34, 10  ;;  %v7459_v45 = vld [vmem:[%s10425_s1 + $0x1e0] ss:$16 sps:$4 sm:$0xff]   ;;  %v655_v52 = vld [vmem:[%s8380_s23 + $0x28] sm:$0xff] }
  0x6d   : > { %v787_v44 = vrot.slane %v6141_v35, 6  ;;  %v7460_v46 = vld [vmem:[%s10425_s1 + $0x1e8] ss:$16 sps:$4 sm:$0xff]   ;;  %v7467_v49 = vld [vmem:[%s10425_s1 + $0x4] ss:$16 sps:$4 sm:$0xff]   ;;  %v6143_v56 = vcombine.low %v655_v52, %v655_v52 }
  0x6e   : > { %v784_v47 = vsel %vm8632_vm2, %v6154_v38, %v783_v39  ;;  %v7470_v50 = vld [vmem:[%s10425_s1 + $0xc] ss:$16 sps:$4 sm:$0xff]   ;;  %v8653_v51 = vld [vmem:[%s8380_s23 + $0x20] sm:$0xff]  ;;  %v8657_v53 = vld [vmem:[%s8380_s23 + $0x30] sm:$0xff] }
  0x6f   : > { %1029 = vmatpush1.bf16.msra.mxu0 %v7435_v15  ;;  %1102 = vmatpush1.bf16.msra.mxu1 %v7436_v16  ;;  %v788_v48 = vsel %vm8632_vm2, %v6155_v43, %v787_v44  ;;  %v657_v54 = vld [vmem:[%s8380_s23 + $0x38] sm:$0xff]  ;;  %v6142_v55 = vcombine.high %v8653_v51, %v8653_v51  ;;  %v6144_v57 = vcombine.high %v8657_v53, %v8657_v53  ;;  %v7465_v60 = vld [vmem:[%s10425_s1] ss:$16 sps:$4 sm:$0xff]   ;;  %v791_v0 = vrot.slane %v6143_v56, 6  ;;  %v7473_v4 = vld [vmem:[%s10425_s1 + $0x24] ss:$16 sps:$4 sm:$0xff]  }
  0x70   : > { %1030 = vmatprep.subr.bf16.mxu0 %v7437_v17  ;;  %1103 = vmatprep.subr.bf16.mxu1 %v7439_v18  ;;  %v6145_v58 = vcombine.low %v657_v54, %v657_v54  ;;  %v6194_v59 = vcombine.low %v784_v47, %v788_v48  ;;  %v8667_v62 = vcombine.high %v655_v52, %v657_v54  ;;  %v7468_v63 = vld [vmem:[%s10425_s1 + $0x8] ss:$16 sps:$4 sm:$0xff]   ;;  %v7476_v5 = vld [vmem:[%s10425_s1 + $0x2c] ss:$16 sps:$4 sm:$0xff]   ;;  %v7471_v6 = vld [vmem:[%s10425_s1 + $0x20] ss:$16 sps:$4 sm:$0xff]  }
  0x71   : > { %v6156_v61 = vrot.slane %v6142_v55, 10  ;;  %v6157_v1 = vrot.slane %v6144_v57, 10  ;;  %v7474_v7 = vld [vmem:[%s10425_s1 + $0x28] ss:$16 sps:$4 sm:$0xff]   ;;  %v7483_v10 = vld [vmem:[%s10425_s1 + $0x44] ss:$16 sps:$4 sm:$0xff]  }
  0x72   : > { %v795_v3 = vrot.slane %v6145_v58, 6  ;;  %v8692_v11 = vld [vmem:[%s8380_s23 + $0x40] sm:$0xff]  ;;  %v659_v12 = vld [vmem:[%s8380_s23 + $0x48] sm:$0xff]  ;;  %v8696_v13 = vld [vmem:[%s8380_s23 + $0x50] sm:$0xff] }
  0x73   : > { %1031 = vmatpush1.bf16.msra.mxu0 %v7441_v19  ;;  %1104 = vmatpush1.bf16.msra.mxu1 %v7442_v20  ;;  %v792_v8 = vsel %vm8632_vm2, %v6156_v61, %v791_v0  ;;  %v661_v14 = vld [vmem:[%s8380_s23 + $0x58] sm:$0xff]  ;;  %v6146_v15 = vcombine.high %v8692_v11, %v8692_v11  ;;  %v6147_v17 = vcombine.low %v659_v12, %v659_v12  ;;  %v7489_v30 = vld [vmem:[%s10425_s1 + $0x64] ss:$16 sps:$4 sm:$0xff]   ;;  %v7487_v32 = vld [vmem:[%s10425_s1 + $0x60] ss:$16 sps:$4 sm:$0xff]  }
  0x74   : > { %1032 = vmatprep.subr.bf16.mxu0 %v7443_v21  ;;  %1105 = vmatprep.subr.bf16.mxu1 %v7445_v22  ;;  %v796_v9 = vsel %vm8632_vm2, %v6157_v1, %v795_v3  ;;  %v7486_v16 = vld [vmem:[%s10425_s1 + $0x4c] ss:$16 sps:$4 sm:$0xff]   ;;  %v6148_v18 = vcombine.high %v8696_v13, %v8696_v13  ;;  %v6149_v19 = vcombine.low %v661_v14, %v661_v14  ;;  %v7481_v21 = vld [vmem:[%s10425_s1 + $0x40] ss:$16 sps:$4 sm:$0xff]   ;;  %v7484_v28 = vld [vmem:[%s10425_s1 + $0x48] ss:$16 sps:$4 sm:$0xff]  }
  0x75   : > { %v6195_v20 = vcombine.low %v792_v8, %v796_v9  ;;  %v8711_v22 = vcombine.high %v659_v12, %v661_v14  ;;  %v7492_v31 = vld [vmem:[%s10425_s1 + $0x6c] ss:$16 sps:$4 sm:$0xff]   ;;  %v8729_v34 = vld [vmem:[%s8380_s23 + $0x60] sm:$0xff]  ;;  %v8737_v39 = vld [vmem:[%s8380_s23 + $0x70] sm:$0xff] }
  0x76   : > { %v663_v38 = vld [vmem:[%s8380_s23 + $0x68] sm:$0xff]  ;;  %v7499_v43 = vld [vmem:[%s10425_s1 + $0x84] ss:$16 sps:$4 sm:$0xff]   ;;  %v7519_v9 = vld [vmem:[%s10425_s1 + $0xe0] ss:$16 sps:$4 sm:$0xff]  }
  0x77   : > { %1033 = vmatpush1.bf16.msra.mxu0 %v7447_v23  ;;  %1106 = vmatpush1.bf16.msra.mxu1 %v7448_v24  ;;  %v6158_v23 = vrot.slane %v6146_v15, 10  ;;  %v799_v24 = vrot.slane %v6147_v17, 6  ;;  %v6151_v44 = vcombine.low %v663_v38, %v663_v38  ;;  %v7502_v47 = vld [vmem:[%s10425_s1 + $0x8c] ss:$16 sps:$4 sm:$0xff]   ;;  %v7500_v52 = vld [vmem:[%s10425_s1 + $0x88] ss:$16 sps:$4 sm:$0xff]   ;;  %v6230_v15 = vcombine.low %v8606_v27, %v8610_v29 }
  0x78   : > { %1034 = vmatprep.subr.bf16.mxu0 %v7449_v25  ;;  %1107 = vmatprep.subr.bf16.mxu1 %v7451_v26  ;;  %v6159_v25 = vrot.slane %v6148_v18, 10  ;;  %v803_v26 = vrot.slane %v6149_v19, 6  ;;  %v7505_v58 = vld [vmem:[%s10425_s1 + $0xa4] ss:$16 sps:$4 sm:$0xff]   ;;  %v7506_v61 = vld [vmem:[%s10425_s1 + $0xa8] ss:$16 sps:$4 sm:$0xff]  }
  0x79   : > { %v800_v35 = vsel %vm8632_vm2, %v6158_v23, %v799_v24  ;;  %v807_v55 = vrot.slane %v6151_v44, 6  ;;  %v7515_v1 = vld [vmem:[%s10425_s1 + $0xc4] ss:$16 sps:$4 sm:$0xff]   ;;  %v7518_v3 = vld [vmem:[%s10425_s1 + $0xcc] ss:$16 sps:$4 sm:$0xff]   ;;  %v6231_v23 = vcombine.low %v8653_v51, %v8657_v53 }
  0x7a   : > { %v7524_v8 = vld [vmem:[%s10425_s1 + $0xec] ss:$16 sps:$4 sm:$0xff]   ;;  %v7528_v12 = vld [vmem:[%s10425_s1 + $0x204] ss:$16 sps:$4 sm:$0xff]   ;;  %v7529_v17 = vld [vmem:[%s10425_s1 + $0x208] ss:$16 sps:$4 sm:$0xff]  }
  0x7b   : > { %1035 = vmatpush1.bf16.msra.mxu0 %v7453_v33  ;;  %1108 = vmatpush1.bf16.msra.mxu1 %v7454_v37  ;;  %v7490_v33 = vld [vmem:[%s10425_s1 + $0x68] ss:$16 sps:$4 sm:$0xff]   ;;  %v804_v37 = vsel %vm8632_vm2, %v6159_v25, %v803_v26  ;;  %v7531_v14 = vld [vmem:[%s10425_s1 + $0x20c] ss:$16 sps:$4 sm:$0xff]   ;;  %v7534_v18 = vld [vmem:[%s10425_s1 + $0x224] ss:$16 sps:$4 sm:$0xff]  }
  0x7c   : > { %1036 = vmatprep.subr.bf16.mxu0 %v7455_v40  ;;  %1109 = vmatprep.subr.bf16.mxu1 %v7457_v41  ;;  %v665_v40 = vld [vmem:[%s8380_s23 + $0x78] sm:$0xff]  ;;  %v6150_v41 = vcombine.high %v8729_v34, %v8729_v34  ;;  %v7532_v29 = vld [vmem:[%s10425_s1 + $0x220] ss:$16 sps:$4 sm:$0xff]   ;;  %v7547_v26 = vld [vmem:[%s10425_s1 + $0x264] ss:$16 sps:$4 sm:$0xff]  }
  0x7d   : > { %v8750_v48 = vcombine.high %v663_v38, %v665_v40  ;;  %v7537_v27 = vld [vmem:[%s10425_s1 + $0x22c] ss:$16 sps:$4 sm:$0xff]   ;;  %v7535_v19 = vld [vmem:[%s10425_s1 + $0x228] ss:$16 sps:$4 sm:$0xff]   ;;  %v7539_v24 = vld [vmem:[%s10425_s1 + $0x240] ss:$16 sps:$4 sm:$0xff]  }
  0x7e   : > { %v6160_v54 = vrot.slane %v6150_v41, 10  ;;  %v7542_v25 = vld [vmem:[%s10425_s1 + $0x248] ss:$16 sps:$4 sm:$0xff]   ;;  %v7550_v51 = vld [vmem:[%s10425_s1 + $0x26c] ss:$16 sps:$4 sm:$0xff]  }
  0x7f   : > { %1037 = vmatpush1.bf16.msra.mxu0 %v7459_v45  ;;  %1110 = vmatpush1.bf16.msra.mxu1 %v7460_v46  ;;  %v6152_v45 = vcombine.high %v8737_v39, %v8737_v39  ;;  %v6153_v46 = vcombine.low %v665_v40, %v665_v40  ;;  %v7545_v53 = vld [vmem:[%s10425_s1 + $0x260] ss:$16 sps:$4 sm:$0xff]   ;;  %v7561_v38 = vld [vmem:[%s10425_s1 + $0x2a8] ss:$16 sps:$4 sm:$0xff]   ;;  %v7567_v40 = vld [vmem:[%s10425_s1 + $0x2c4] ss:$16 sps:$4 sm:$0xff]  }
  0x80   : > { %1344 = vmatprep.subr.bf16.mxu0 %v7467_v49  ;;  %1417 = vmatprep.subr.bf16.mxu1 %v7470_v50  ;;  %v6196_v49 = vcombine.low %v800_v35, %v804_v37  ;;  %v7497_v50 = vld [vmem:[%s10425_s1 + $0x80] ss:$16 sps:$4 sm:$0xff]   ;;  %v7555_v35 = vld [vmem:[%s10425_s1 + $0x288] ss:$16 sps:$4 sm:$0xff]   ;;  %v7560_v37 = vld [vmem:[%s10425_s1 + $0x2a4] ss:$16 sps:$4 sm:$0xff]  }
  0x81   : > { %v6161_v56 = vrot.slane %v6152_v45, 10  ;;  %v811_v57 = vrot.slane %v6153_v46, 6  ;;  %v7570_v41 = vld [vmem:[%s10425_s1 + $0x2cc] ss:$16 sps:$4 sm:$0xff]   ;;  %v7565_v44 = vld [vmem:[%s10425_s1 + $0x2c0] ss:$16 sps:$4 sm:$0xff]  }
  0x82   : > { %1055 = vmatmul.mubr.bf16.vlgmr.msra.gmra.mrb[0].mxu0 %v6194_v59  ;;  %1128 = vmatmul.mubr.bf16.vlgmr.msra.gmra.mrb[0].mxu1 %v6194_v59  ;;  %v7508_v59 = vld [vmem:[%s10425_s1 + $0xac] ss:$16 sps:$4 sm:$0xff]   ;;  %v7568_v45 = vld [vmem:[%s10425_s1 + $0x2c8] ss:$16 sps:$4 sm:$0xff]   ;;  %v7573_v46 = vld [vmem:[%s10425_s1 + $0x2e4] ss:$16 sps:$4 sm:$0xff]  }
  0x83   : > { %1345 = vmatpush1.bf16.msra.mxu0 %v7465_v60  ;;  %1418 = vmatpush1.bf16.msra.mxu1 %v7468_v63  ;;  %v7503_v60 = vld [vmem:[%s10425_s1 + $0xa0] ss:$16 sps:$4 sm:$0xff]   ;;  %v808_v63 = vsel %vm8632_vm2, %v6160_v54, %v807_v55  ;;  %v812_v0 = vsel %vm8632_vm2, %v6161_v56, %v811_v57  ;;  %v7581_v54 = vld [vmem:[%s10425_s1 + $0x308] ss:$16 sps:$4 sm:$0xff]   ;;  %v7586_v55 = vld [vmem:[%s10425_s1 + $0x324] ss:$16 sps:$4 sm:$0xff]  }
  0x84   : > { %1346 = vmatprep.subr.bf16.mxu0 %v7473_v4  ;;  %1419 = vmatprep.subr.bf16.mxu1 %v7476_v5  ;;  %v6197_v4 = vcombine.low %v808_v63, %v812_v0  ;;  %v7513_v5 = vld [vmem:[%s10425_s1 + $0xc0] ss:$16 sps:$4 sm:$0xff]   ;;  %v7589_v56 = vld [vmem:[%s10425_s1 + $0x32c] ss:$16 sps:$4 sm:$0xff]   ;;  %v7599_v63 = vld [vmem:[%s10425_s1 + $0x364] ss:$16 sps:$4 sm:$0xff]  }
  0x85   : > { %1064 = vmatprep.mubr.bf16.mxu0 %v8167_v2  ;;  %1137 = vmatprep.mubr.bf16.mxu1 %v8167_v2  ;;  %v7584_v57 = vld [vmem:[%s10425_s1 + $0x320] ss:$16 sps:$4 sm:$0xff]   ;;  %v7602_v0 = vld [vmem:[%s10425_s1 + $0x36c] ss:$16 sps:$4 sm:$0xff]   ;;  %v7909_v42 = vld [vmem:[%s10425_s1 + $0x8e4] ss:$16 sps:$4 sm:$0xff]  }
  0x87   : > { %1347 = vmatpush1.bf16.msra.mxu0 %v7471_v6  ;;  %1420 = vmatpush1.bf16.msra.mxu1 %v7474_v7  ;;  %v7516_v6 = vld [vmem:[%s10425_s1 + $0xc8] ss:$16 sps:$4 sm:$0xff]   ;;  %v7521_v7 = vld [vmem:[%s10425_s1 + $0xe4] ss:$16 sps:$4 sm:$0xff]  }
  0x88   : > { %1348 = vmatprep.subr.bf16.mxu0 %v7483_v10  ;;  %1421 = vmatprep.subr.bf16.mxu1 %v7486_v16  ;;  %v7522_v10 = vld [vmem:[%s10425_s1 + $0xe8] ss:$16 sps:$4 sm:$0xff]   ;;  %v7526_v16 = vld [vmem:[%s10425_s1 + $0x200] ss:$16 sps:$4 sm:$0xff]  }
  0x8a   : > { %1065 = vmatmul.mubr.bf16.gmra.mrb[4].mxu0 %v6195_v20  ;;  %1138 = vmatmul.mubr.bf16.gmra.mrb[4].mxu1 %v6195_v20  ;;  %v7541_v20 = vld [vmem:[%s10425_s1 + $0x244] ss:$16 sps:$4 sm:$0xff]  }
  0x8b   : > { %1349 = vmatpush1.bf16.msra.mxu0 %v7481_v21  ;;  %1422 = vmatpush1.bf16.msra.mxu1 %v7484_v28  ;;  %v7544_v21 = vld [vmem:[%s10425_s1 + $0x24c] ss:$16 sps:$4 sm:$0xff]   ;;  %v7548_v28 = vld [vmem:[%s10425_s1 + $0x268] ss:$16 sps:$4 sm:$0xff]  }
  0x8c   : > { %1350 = vmatprep.subr.bf16.mxu0 %v7489_v30  ;;  %1423 = vmatprep.subr.bf16.mxu1 %v7492_v31  ;;  %v7554_v30 = vld [vmem:[%s10425_s1 + $0x284] ss:$16 sps:$4 sm:$0xff]   ;;  %v7557_v31 = vld [vmem:[%s10425_s1 + $0x28c] ss:$16 sps:$4 sm:$0xff]  }
  0x8d   : > { %1074 = vmatprep.mubr.bf16.mxu0 %v8167_v2  ;;  %1147 = vmatprep.mubr.bf16.mxu1 %v8167_v2 }
  0x8f   : > { %1351 = vmatpush1.bf16.msra.mxu0 %v7487_v32  ;;  %1424 = vmatpush1.bf16.msra.mxu1 %v7490_v33  ;;  %v6232_v32 = vcombine.low %v8692_v11, %v8696_v13  ;;  %v7552_v33 = vld [vmem:[%s10425_s1 + $0x280] ss:$16 sps:$4 sm:$0xff]   ;;  %v7563_v11 = vld [vmem:[%s10425_s1 + $0x2ac] ss:$16 sps:$4 sm:$0xff]  }
  0x90   : > { %1352 = vmatprep.subr.bf16.mxu0 %v7499_v43  ;;  %1425 = vmatprep.subr.bf16.mxu1 %v7502_v47  ;;  %v7558_v13 = vld [vmem:[%s10425_s1 + $0x2a0] ss:$16 sps:$4 sm:$0xff]   ;;  %v6233_v43 = vcombine.low %v8729_v34, %v8737_v39  ;;  %v7576_v34 = vld [vmem:[%s10425_s1 + $0x2ec] ss:$16 sps:$4 sm:$0xff]   ;;  %v7574_v47 = vld [vmem:[%s10425_s1 + $0x2e8] ss:$16 sps:$4 sm:$0xff]  }
  0x91   : > { %v7571_v39 = vld [vmem:[%s10425_s1 + $0x2e0] ss:$16 sps:$4 sm:$0xff]  }
  0x92   : > { %1075 = vmatmul.mubr.bf16.gmra.mrb[8].mxu0 %v6196_v49  ;;  %1148 = vmatmul.mubr.bf16.gmra.mrb[8].mxu1 %v6196_v49  ;;  %v7580_v49 = vld [vmem:[%s10425_s1 + $0x304] ss:$16 sps:$4 sm:$0xff]  }
  0x93   : > { %1353 = vmatpush1.bf16.msra.mxu0 %v7497_v50  ;;  %1426 = vmatpush1.bf16.msra.mxu1 %v7500_v52  ;;  %v7583_v50 = vld [vmem:[%s10425_s1 + $0x30c] ss:$16 sps:$4 sm:$0xff]   ;;  %v7578_v52 = vld [vmem:[%s10425_s1 + $0x300] ss:$16 sps:$4 sm:$0xff]  }
  0x94   : > { %1354 = vmatprep.subr.bf16.mxu0 %v7505_v58  ;;  %1427 = vmatprep.subr.bf16.mxu1 %v7508_v59  ;;  %v7587_v58 = vld [vmem:[%s10425_s1 + $0x328] ss:$16 sps:$4 sm:$0xff]   ;;  %v7593_v59 = vld [vmem:[%s10425_s1 + $0x344] ss:$16 sps:$4 sm:$0xff]  }
  0x95   : > { %1084 = vmatprep.mubr.bf16.mxu0 %v8167_v2  ;;  %1157 = vmatprep.mubr.bf16.mxu1 %v8167_v2 }
  0x97   : > { %1355 = vmatpush1.bf16.msra.mxu0 %v7503_v60  ;;  %1428 = vmatpush1.bf16.msra.mxu1 %v7506_v61  ;;  %v7591_v60 = vld [vmem:[%s10425_s1 + $0x340] ss:$16 sps:$4 sm:$0xff]   ;;  %v7594_v61 = vld [vmem:[%s10425_s1 + $0x348] ss:$16 sps:$4 sm:$0xff]  }
  0x98   : > { %1356 = vmatprep.subr.bf16.mxu0 %v7515_v1  ;;  %1429 = vmatprep.subr.bf16.mxu1 %v7518_v3  ;;  %v7597_v1 = vld [vmem:[%s10425_s1 + $0x360] ss:$16 sps:$4 sm:$0xff]   ;;  %v7600_v3 = vld [vmem:[%s10425_s1 + $0x368] ss:$16 sps:$4 sm:$0xff]  }
  0x9a   : > { %1085 = vmatmul.mubr.bf16.gmra.mrb[12].mxu0 %v6197_v4  ;;  %1158 = vmatmul.mubr.bf16.gmra.mrb[12].mxu1 %v6197_v4  ;;  %v7606_v4 = vld [vmem:[%s10425_s1 + $0x384] ss:$16 sps:$4 sm:$0xff]  }
  0x9b   : > { %1357 = vmatpush1.bf16.msra.mxu0 %v7513_v5  ;;  %1430 = vmatpush1.bf16.msra.mxu1 %v7516_v6  ;;  %v7604_v5 = vld [vmem:[%s10425_s1 + $0x380] ss:$16 sps:$4 sm:$0xff]   ;;  %v7607_v6 = vld [vmem:[%s10425_s1 + $0x388] ss:$16 sps:$4 sm:$0xff]  }
  0x9c   : > { %1358 = vmatprep.subr.bf16.mxu0 %v7521_v7  ;;  %1431 = vmatprep.subr.bf16.mxu1 %v7524_v8  ;;  %v7612_v7 = vld [vmem:[%s10425_s1 + $0x3a4] ss:$16 sps:$4 sm:$0xff]   ;;  %v7615_v8 = vld [vmem:[%s10425_s1 + $0x3ac] ss:$16 sps:$4 sm:$0xff]  }
  0x9d   : > { %1376 = vmatprep.mubr.bf16.mxu0 %v8167_v2  ;;  %1449 = vmatprep.mubr.bf16.mxu1 %v8167_v2 }
  0x9f   : > { %1359 = vmatpush1.bf16.msra.mxu0 %v7519_v9  ;;  %1432 = vmatpush1.bf16.msra.mxu1 %v7522_v10  ;;  %v7610_v9 = vld [vmem:[%s10425_s1 + $0x3a0] ss:$16 sps:$4 sm:$0xff]   ;;  %v7613_v10 = vld [vmem:[%s10425_s1 + $0x3a8] ss:$16 sps:$4 sm:$0xff]  }
  0xa0   : > { %1699 = vmatprep.subr.bf16.mxu0 %v7528_v12  ;;  %1772 = vmatprep.subr.bf16.mxu1 %v7531_v14  ;;  %v7619_v12 = vld [vmem:[%s10425_s1 + $0x3c4] ss:$16 sps:$4 sm:$0xff]   ;;  %v7617_v14 = vld [vmem:[%s10425_s1 + $0x3c0] ss:$16 sps:$4 sm:$0xff]  }
  0xa2   : > { %1377 = vmatmul.mubr.bf16.vlgmr.msra.gmra.mrb[0].mxu0 %v6230_v15  ;;  %1450 = vmatmul.mubr.bf16.vlgmr.msra.gmra.mrb[0].mxu1 %v6230_v15  ;;  %v7620_v15 = vld [vmem:[%s10425_s1 + $0x3c8] ss:$16 sps:$4 sm:$0xff]  }
  0xa3   : > { %1700 = vmatpush1.bf16.msra.mxu0 %v7526_v16  ;;  %1773 = vmatpush1.bf16.msra.mxu1 %v7529_v17  ;;  %v7625_v16 = vld [vmem:[%s10425_s1 + $0x3e4] ss:$16 sps:$4 sm:$0xff]   ;;  %v7628_v17 = vld [vmem:[%s10425_s1 + $0x3ec] ss:$16 sps:$4 sm:$0xff]  }
  0xa4   : > { %1701 = vmatprep.subr.bf16.mxu0 %v7534_v18  ;;  %1774 = vmatprep.subr.bf16.mxu1 %v7537_v27  ;;  %v7623_v18 = vld [vmem:[%s10425_s1 + $0x3e0] ss:$16 sps:$4 sm:$0xff]   ;;  %v7626_v27 = vld [vmem:[%s10425_s1 + $0x3e8] ss:$16 sps:$4 sm:$0xff]  }
  0xa5   : > { %1386 = vmatprep.mubr.bf16.mxu0 %v8167_v2  ;;  %1459 = vmatprep.mubr.bf16.mxu1 %v8167_v2 }
  0xa7   : > { %1702 = vmatpush1.bf16.msra.mxu0 %v7532_v29  ;;  %1775 = vmatpush1.bf16.msra.mxu1 %v7535_v19  ;;  %v9027_v29 = vld [vmem:[%s8380_s23 + $0xc0] sm:$0xff]  ;;  %v9030_v19 = vld [vmem:[%s8380_s23 + $0xd0] sm:$0xff] }
  0xa8   : > { %1703 = vmatprep.subr.bf16.mxu0 %v7541_v20  ;;  %1776 = vmatprep.subr.bf16.mxu1 %v7544_v21  ;;  %v7634_v20 = vld [vmem:[%s10425_s1 + $0x404] ss:$16 sps:$4 sm:$0xff]   ;;  %v6366_v21 = vcombine.low %v9027_v29, %v9030_v19 }
  0xaa   : > { %1387 = vmatmul.mubr.bf16.gmra.mrb[4].mxu0 %v6231_v23  ;;  %1460 = vmatmul.mubr.bf16.gmra.mrb[4].mxu1 %v6231_v23  ;;  %v7632_v23 = vld [vmem:[%s10425_s1 + $0x400] ss:$16 sps:$4 sm:$0xff]  }
  0xab   : > { %1704 = vmatpush1.bf16.msra.mxu0 %v7539_v24  ;;  %1777 = vmatpush1.bf16.msra.mxu1 %v7542_v25  ;;  %v7635_v24 = vld [vmem:[%s10425_s1 + $0x408] ss:$16 sps:$4 sm:$0xff]   ;;  %v7640_v25 = vld [vmem:[%s10425_s1 + $0x424] ss:$16 sps:$4 sm:$0xff]  }
  0xac   : > { %1705 = vmatprep.subr.bf16.mxu0 %v7547_v26  ;;  %1778 = vmatprep.subr.bf16.mxu1 %v7550_v51  ;;  %v7643_v26 = vld [vmem:[%s10425_s1 + $0x42c] ss:$16 sps:$4 sm:$0xff]   ;;  %v7638_v51 = vld [vmem:[%s10425_s1 + $0x420] ss:$16 sps:$4 sm:$0xff]  }
  0xad   : > { %1396 = vmatprep.mubr.bf16.mxu0 %v8167_v2  ;;  %1469 = vmatprep.mubr.bf16.mxu1 %v8167_v2 }
  0xaf   : > { %1706 = vmatpush1.bf16.msra.mxu0 %v7545_v53  ;;  %1779 = vmatpush1.bf16.msra.mxu1 %v7548_v28  ;;  %v7641_v53 = vld [vmem:[%s10425_s1 + $0x428] ss:$16 sps:$4 sm:$0xff]   ;;  %v9061_v28 = vld [vmem:[%s8380_s23 + $0xe0] sm:$0xff] }
  0xb0   : > { %1707 = vmatprep.subr.bf16.mxu0 %v7554_v30  ;;  %1780 = vmatprep.subr.bf16.mxu1 %v7557_v31  ;;  %v9064_v30 = vld [vmem:[%s8380_s23 + $0xf0] sm:$0xff] }
  0xb1   : > { %v7649_v31 = vld [vmem:[%s10425_s1 + $0x444] ss:$16 sps:$4 sm:$0xff]  }
  0xb2   : > { %1397 = vmatmul.mubr.bf16.gmra.mrb[8].mxu0 %v6232_v32  ;;  %1470 = vmatmul.mubr.bf16.gmra.mrb[8].mxu1 %v6232_v32  ;;  %v7652_v32 = vld [vmem:[%s10425_s1 + $0x44c] ss:$16 sps:$4 sm:$0xff]  }
  0xb3   : > { %1708 = vmatpush1.bf16.msra.mxu0 %v7552_v33  ;;  %1781 = vmatpush1.bf16.msra.mxu1 %v7555_v35  ;;  %v6367_v33 = vcombine.low %v9061_v28, %v9064_v30  ;;  %v7647_v35 = vld [vmem:[%s10425_s1 + $0x440] ss:$16 sps:$4 sm:$0xff]  }
  0xb4   : > { %1709 = vmatprep.subr.bf16.mxu0 %v7560_v37  ;;  %1782 = vmatprep.subr.bf16.mxu1 %v7563_v11  ;;  %v7650_v37 = vld [vmem:[%s10425_s1 + $0x448] ss:$16 sps:$4 sm:$0xff]   ;;  %v7655_v11 = vld [vmem:[%s10425_s1 + $0x464] ss:$16 sps:$4 sm:$0xff]  }
  0xb5   : > { %1406 = vmatprep.mubr.bf16.mxu0 %v8167_v2  ;;  %1479 = vmatprep.mubr.bf16.mxu1 %v8167_v2 }
  0xb7   : > { %1710 = vmatpush1.bf16.msra.mxu0 %v7558_v13  ;;  %1783 = vmatpush1.bf16.msra.mxu1 %v7561_v38  ;;  %v7658_v13 = vld [vmem:[%s10425_s1 + $0x46c] ss:$16 sps:$4 sm:$0xff]   ;;  %v7653_v38 = vld [vmem:[%s10425_s1 + $0x460] ss:$16 sps:$4 sm:$0xff]  }
  0xb8   : > { %1711 = vmatprep.subr.bf16.mxu0 %v7567_v40  ;;  %1784 = vmatprep.subr.bf16.mxu1 %v7570_v41  ;;  %v7656_v40 = vld [vmem:[%s10425_s1 + $0x468] ss:$16 sps:$4 sm:$0xff]   ;;  %v9095_v41 = vld [vmem:[%s8380_s23 + $0x100] sm:$0xff] }
  0xba   : > { %1407 = vmatmul.mubr.bf16.gmra.mrb[12].mxu0 %v6233_v43  ;;  %1480 = vmatmul.mubr.bf16.gmra.mrb[12].mxu1 %v6233_v43  ;;  %v9098_v43 = vld [vmem:[%s8380_s23 + $0x110] sm:$0xff] }
  0xbb   : > { %1712 = vmatpush1.bf16.msra.mxu0 %v7565_v44  ;;  %1785 = vmatpush1.bf16.msra.mxu1 %v7568_v45  ;;  %v7664_v44 = vld [vmem:[%s10425_s1 + $0x484] ss:$16 sps:$4 sm:$0xff]   ;;  %v7667_v45 = vld [vmem:[%s10425_s1 + $0x48c] ss:$16 sps:$4 sm:$0xff]  }
  0xbc   : > { %1713 = vmatprep.subr.bf16.mxu0 %v7573_v46  ;;  %1786 = vmatprep.subr.bf16.mxu1 %v7576_v34  ;;  %v7662_v46 = vld [vmem:[%s10425_s1 + $0x480] ss:$16 sps:$4 sm:$0xff]   ;;  %v6368_v34 = vcombine.low %v9095_v41, %v9098_v43 }
  0xbd   : > { %1731 = vmatprep.mubr.bf16.mxu0 %v8167_v2  ;;  %1804 = vmatprep.mubr.bf16.mxu1 %v8167_v2 }
  0xbf   : > { %1714 = vmatpush1.bf16.msra.mxu0 %v7571_v39  ;;  %1787 = vmatpush1.bf16.msra.mxu1 %v7574_v47  ;;  %v7665_v39 = vld [vmem:[%s10425_s1 + $0x488] ss:$16 sps:$4 sm:$0xff]   ;;  %v7670_v47 = vld [vmem:[%s10425_s1 + $0x4a4] ss:$16 sps:$4 sm:$0xff]  }
  0xc0   : > { %2094 = vmatprep.subr.bf16.mxu0 %v7580_v49  ;;  %2167 = vmatprep.subr.bf16.mxu1 %v7583_v50  ;;  %v9120_v49 = vld [vmem:[%s8380_s23 + $0xc8] sm:$0xff] }
  0xc1   : > { %v7673_v50 = vld [vmem:[%s10425_s1 + $0x4ac] ss:$16 sps:$4 sm:$0xff]  }
  0xc2   : > { %1732 = vmatmul.mubr.bf16.vlgmr.msra.gmra.mrb[0].mxu0 %v8620_v36  ;;  %1805 = vmatmul.mubr.bf16.vlgmr.msra.gmra.mrb[0].mxu1 %v8620_v36  ;;  %v7596_v36 = vld [vmem:[%s10425_s1 + $0x34c] ss:$16 sps:$4 sm:$0xff]  }
  0xc3   : > { %2095 = vmatpush1.bf16.msra.mxu0 %v7578_v52  ;;  %2168 = vmatpush1.bf16.msra.mxu1 %v7581_v54  ;;  %v9126_v52 = vld [vmem:[%s8380_s23 + $0xd8] sm:$0xff]  ;;  %v6402_v54 = vcombine.high %v9027_v29, %v9027_v29  ;;  %v7693_v29 = vld [vmem:[%s10425_s1 + $0x504] ss:$16 sps:$4 sm:$0xff]  }
  0xc4   : > { %2096 = vmatprep.subr.bf16.mxu0 %v7586_v55  ;;  %2169 = vmatprep.subr.bf16.mxu1 %v7589_v56  ;;  %v7668_v55 = vld [vmem:[%s10425_s1 + $0x4a0] ss:$16 sps:$4 sm:$0xff]   ;;  %v6404_v56 = vcombine.high %v9030_v19, %v9030_v19  ;;  %v7696_v19 = vld [vmem:[%s10425_s1 + $0x50c] ss:$16 sps:$4 sm:$0xff]  }
  0xc5   : > { %1741 = vmatprep.mubr.bf16.mxu0 %v8167_v2  ;;  %1814 = vmatprep.mubr.bf16.mxu1 %v8167_v2 }
  0xc7   : > { %2097 = vmatpush1.bf16.msra.mxu0 %v7584_v57  ;;  %2170 = vmatpush1.bf16.msra.mxu1 %v7587_v58  ;;  %v7671_v57 = vld [vmem:[%s10425_s1 + $0x4a8] ss:$16 sps:$4 sm:$0xff]   ;;  %v6403_v58 = vcombine.low %v9120_v49, %v9120_v49 }
  0xc8   : > { %2098 = vmatprep.subr.bf16.mxu0 %v7593_v59  ;;  %2171 = vmatprep.subr.bf16.mxu1 %v7596_v36  ;;  %v9141_v59 = vld [vmem:[%s8380_s23 + $0x120] sm:$0xff]  ;;  %v9144_v36 = vld [vmem:[%s8380_s23 + $0x130] sm:$0xff] }
  0xca   : > { %1742 = vmatmul.mubr.bf16.gmra.mrb[4].mxu0 %v8667_v62  ;;  %1815 = vmatmul.mubr.bf16.gmra.mrb[4].mxu1 %v8667_v62  ;;  %v7609_v62 = vld [vmem:[%s10425_s1 + $0x38c] ss:$16 sps:$4 sm:$0xff]  }
  0xcb   : > { %2099 = vmatpush1.bf16.msra.mxu0 %v7591_v60  ;;  %2172 = vmatpush1.bf16.msra.mxu1 %v7594_v61  ;;  %v6405_v60 = vcombine.low %v9126_v52, %v9126_v52  ;;  %v7679_v61 = vld [vmem:[%s10425_s1 + $0x4c4] ss:$16 sps:$4 sm:$0xff]  }
  0xcc   : > { %2100 = vmatprep.subr.bf16.mxu0 %v7599_v63  ;;  %2173 = vmatprep.subr.bf16.mxu1 %v7602_v0  ;;  %v7682_v63 = vld [vmem:[%s10425_s1 + $0x4cc] ss:$16 sps:$4 sm:$0xff]   ;;  %v6418_v0 = vrot.slane %v6402_v54, 10 }
  0xcd   : > { %1751 = vmatprep.mubr.bf16.mxu0 %v8167_v2  ;;  %1824 = vmatprep.mubr.bf16.mxu1 %v8167_v2 }
  0xcf   : > { %2101 = vmatpush1.bf16.msra.mxu0 %v7597_v1  ;;  %2174 = vmatpush1.bf16.msra.mxu1 %v7600_v3  ;;  %v7677_v1 = vld [vmem:[%s10425_s1 + $0x4c0] ss:$16 sps:$4 sm:$0xff]   ;;  %v6419_v3 = vrot.slane %v6404_v56, 10  ;;  %v9262_v56 = vld [vmem:[%s8380_s23 + $0x138] sm:$0xff] }
  0xd0   : > { %2102 = vmatprep.subr.bf16.mxu0 %v7606_v4  ;;  %2175 = vmatprep.subr.bf16.mxu1 %v7609_v62  ;;  %v6369_v4 = vcombine.low %v9141_v59, %v9144_v36  ;;  %v7680_v62 = vld [vmem:[%s10425_s1 + $0x4c8] ss:$16 sps:$4 sm:$0xff]  }
  0xd2   : > { %1752 = vmatmul.mubr.bf16.gmra.mrb[8].mxu0 %v8711_v22  ;;  %1825 = vmatmul.mubr.bf16.gmra.mrb[8].mxu1 %v8711_v22  ;;  %v7622_v22 = vld [vmem:[%s10425_s1 + $0x3cc] ss:$16 sps:$4 sm:$0xff]  }
  0xd3   : > { %2103 = vmatpush1.bf16.msra.mxu0 %v7604_v5  ;;  %2176 = vmatpush1.bf16.msra.mxu1 %v7607_v6  ;;  %v2314_v5 = vrot.slane %v6403_v58, 6  ;;  %v7685_v6 = vld [vmem:[%s10425_s1 + $0x4e4] ss:$16 sps:$4 sm:$0xff]   ;;  %v6416_v58 = vcombine.high %v9144_v36, %v9144_v36 }
  0xd4   : > { %2104 = vmatprep.subr.bf16.mxu0 %v7612_v7  ;;  %2177 = vmatprep.subr.bf16.mxu1 %v7615_v8  ;;  %v7688_v7 = vld [vmem:[%s10425_s1 + $0x4ec] ss:$16 sps:$4 sm:$0xff]   ;;  %v2318_v8 = vrot.slane %v6405_v60, 6 }
  0xd5   : > { %1761 = vmatprep.mubr.bf16.mxu0 %v8167_v2  ;;  %1834 = vmatprep.mubr.bf16.mxu1 %v8167_v2 }
  0xd7   : > { %2105 = vmatpush1.bf16.msra.mxu0 %v7610_v9  ;;  %2178 = vmatpush1.bf16.msra.mxu1 %v7613_v10  ;;  %v9171_v9 = vld [vmem:[%s8380_s23 + $0xe8] sm:$0xff]  ;;  %v9174_v10 = vld [vmem:[%s8380_s23 + $0xf8] sm:$0xff] }
  0xd8   : > { %2106 = vmatprep.subr.bf16.mxu0 %v7619_v12  ;;  %2179 = vmatprep.subr.bf16.mxu1 %v7622_v22  ;;  %v6406_v12 = vcombine.high %v9061_v28, %v9061_v28  ;;  %v6408_v22 = vcombine.high %v9064_v30, %v9064_v30  ;;  %v7702_v28 = vld [vmem:[%s10425_s1 + $0x52c] ss:$16 sps:$4 sm:$0xff]  }
  0xd9   : > { %v9218_v30 = vld [vmem:[%s8380_s23 + $0x118] sm:$0xff] }
  0xda   : > { %1762 = vmatmul.mubr.bf16.gmra.mrb[12].mxu0 %v8750_v48  ;;  %1835 = vmatmul.mubr.bf16.gmra.mrb[12].mxu1 %v8750_v48  ;;  %v7637_v48 = vld [vmem:[%s10425_s1 + $0x40c] ss:$16 sps:$4 sm:$0xff]  }
  0xdb   : > { %2107 = vmatpush1.bf16.msra.mxu0 %v7617_v14  ;;  %2180 = vmatpush1.bf16.msra.mxu1 %v7620_v15  ;;  %v2315_v14 = vsel %vm8632_vm2, %v6418_v0, %v2314_v5  ;;  %v7683_v15 = vld [vmem:[%s10425_s1 + $0x4e0] ss:$16 sps:$4 sm:$0xff]   ;;  %v6417_v0 = vcombine.low %v9262_v56, %v9262_v56 }
  0xdc   : > { %2108 = vmatprep.subr.bf16.mxu0 %v7625_v16  ;;  %2181 = vmatprep.subr.bf16.mxu1 %v7628_v17  ;;  %v7686_v16 = vld [vmem:[%s10425_s1 + $0x4e8] ss:$16 sps:$4 sm:$0xff]   ;;  %v2319_v17 = vsel %vm8632_vm2, %v6419_v3, %v2318_v8  ;;  %v7724_v3 = vld [vmem:[%s10425_s1 + $0x58c] ss:$16 sps:$4 sm:$0xff]   ;;  %v7727_v8 = vld [vmem:[%s10425_s1 + $0x5a4] ss:$16 sps:$4 sm:$0xff]  }
  0xdd   : > { %2126 = vmatprep.mubr.bf16.mxu0 %v8167_v2  ;;  %2199 = vmatprep.mubr.bf16.mxu1 %v8167_v2 }
  0xdf   : > { %2109 = vmatpush1.bf16.msra.mxu0 %v7623_v18  ;;  %2182 = vmatpush1.bf16.msra.mxu1 %v7626_v27  ;;  %v6407_v18 = vcombine.low %v9171_v9, %v9171_v9  ;;  %v6409_v27 = vcombine.low %v9174_v10, %v9174_v10 }
  0xe0   : > { %2553 = vmatprep.subr.bf16.mxu0 %v7634_v20  ;;  %2626 = vmatprep.subr.bf16.mxu1 %v7637_v48  ;;  %v7691_v20 = vld [vmem:[%s10425_s1 + $0x500] ss:$16 sps:$4 sm:$0xff]   ;;  %v6420_v48 = vrot.slane %v6406_v12, 10 }
  0xe2   : > { %2127 = vmatmul.mubr.bf16.vlgmr.msra.gmra.mrb[0].mxu0 %v6366_v21  ;;  %2200 = vmatmul.mubr.bf16.vlgmr.msra.gmra.mrb[0].mxu1 %v6366_v21  ;;  %v6421_v21 = vrot.slane %v6408_v22, 10  ;;  %v2342_v22 = vrot.slane %v6417_v0, 6  ;;  %v9454_v0 = vld [vmem:[%s8380_s23 + $0x190] sm:$0xff] }
  0xe3   : > { %2554 = vmatpush1.bf16.msra.mxu0 %v7632_v23  ;;  %2627 = vmatpush1.bf16.msra.mxu1 %v7635_v24  ;;  %v6458_v23 = vcombine.low %v2315_v14, %v2319_v17  ;;  %v7694_v24 = vld [vmem:[%s10425_s1 + $0x508] ss:$16 sps:$4 sm:$0xff]   ;;  %v7730_v14 = vld [vmem:[%s10425_s1 + $0x5ac] ss:$16 sps:$4 sm:$0xff]  }
  0xe4   : > { %2555 = vmatprep.subr.bf16.mxu0 %v7640_v25  ;;  %2628 = vmatprep.subr.bf16.mxu1 %v7643_v26  ;;  %v7699_v25 = vld [vmem:[%s10425_s1 + $0x524] ss:$16 sps:$4 sm:$0xff]   ;;  %v2322_v26 = vrot.slane %v6407_v18, 6 }
  0xe5   : > { %2136 = vmatprep.mubr.bf16.mxu0 %v8167_v2  ;;  %2209 = vmatprep.mubr.bf16.mxu1 %v8167_v2 }
  0xe7   : > { %2556 = vmatpush1.bf16.msra.mxu0 %v7638_v51  ;;  %2629 = vmatpush1.bf16.msra.mxu1 %v7641_v53  ;;  %v2326_v51 = vrot.slane %v6409_v27, 6  ;;  %v9212_v53 = vld [vmem:[%s8380_s23 + $0x108] sm:$0xff]  ;;  %v7735_v27 = vld [vmem:[%s10425_s1 + $0x5c4] ss:$16 sps:$4 sm:$0xff]  }
  0xe8   : > { %2557 = vmatprep.subr.bf16.mxu0 %v7649_v31  ;;  %2630 = vmatprep.subr.bf16.mxu1 %v7652_v32  ;;  %v6410_v31 = vcombine.high %v9095_v41, %v9095_v41  ;;  %v6412_v32 = vcombine.high %v9098_v43, %v9098_v43  ;;  %v7710_v41 = vld [vmem:[%s10425_s1 + $0x54c] ss:$16 sps:$4 sm:$0xff]  }
  0xea   : > { %2137 = vmatmul.mubr.bf16.gmra.mrb[4].mxu0 %v6367_v33  ;;  %2210 = vmatmul.mubr.bf16.gmra.mrb[4].mxu1 %v6367_v33  ;;  %v7697_v33 = vld [vmem:[%s10425_s1 + $0x520] ss:$16 sps:$4 sm:$0xff]   ;;  %v6422_v43 = vrot.slane %v6410_v31, 10 }
  0xeb   : > { %2558 = vmatpush1.bf16.msra.mxu0 %v7647_v35  ;;  %2631 = vmatpush1.bf16.msra.mxu1 %v7650_v37  ;;  %v7700_v35 = vld [vmem:[%s10425_s1 + $0x528] ss:$16 sps:$4 sm:$0xff]   ;;  %v6411_v37 = vcombine.low %v9212_v53, %v9212_v53  ;;  %v7746_v31 = vld [vmem:[%s10425_s1 + $0x600] ss:$16 sps:$4 sm:$0xff]  }
  0xec   : > { %2559 = vmatprep.subr.bf16.mxu0 %v7655_v11  ;;  %2632 = vmatprep.subr.bf16.mxu1 %v7658_v13  ;;  %v2323_v11 = vsel %vm8632_vm2, %v6420_v48, %v2322_v26  ;;  %v2327_v13 = vsel %vm8632_vm2, %v6421_v21, %v2326_v51  ;;  %v7736_v48 = vld [vmem:[%s10425_s1 + $0x5c8] ss:$16 sps:$4 sm:$0xff]   ;;  %v7741_v21 = vld [vmem:[%s10425_s1 + $0x5e4] ss:$16 sps:$4 sm:$0xff]   ;;  %v7751_v51 = vld [vmem:[%s10425_s1 + $0x60c] ss:$16 sps:$4 sm:$0xff]  }
  0xed   : > { %2146 = vmatprep.mubr.bf16.mxu0 %v8167_v2  ;;  %2219 = vmatprep.mubr.bf16.mxu1 %v8167_v2  ;;  %v7748_v26 = vld [vmem:[%s10425_s1 + $0x604] ss:$16 sps:$4 sm:$0xff]  }
  0xef   : > { %2560 = vmatpush1.bf16.msra.mxu0 %v7653_v38  ;;  %2633 = vmatpush1.bf16.msra.mxu1 %v7656_v40  ;;  %v7707_v38 = vld [vmem:[%s10425_s1 + $0x544] ss:$16 sps:$4 sm:$0xff]   ;;  %v6413_v40 = vcombine.low %v9218_v30, %v9218_v30 }
  0xf0   : > { %2561 = vmatprep.subr.bf16.mxu0 %v7664_v44  ;;  %2634 = vmatprep.subr.bf16.mxu1 %v7667_v45  ;;  %v6423_v44 = vrot.slane %v6412_v32, 10  ;;  %v6459_v45 = vcombine.low %v2323_v11, %v2327_v13  ;;  %v7749_v32 = vld [vmem:[%s10425_s1 + $0x608] ss:$16 sps:$4 sm:$0xff]   ;;  %v7764_v11 = vld [vmem:[%s10425_s1 + $0x64c] ss:$16 sps:$4 sm:$0xff]   ;;  %v6527_v13 = vcombine.high %v9171_v9, %v9174_v10 }
  0xf1   : > { %v2334_v54 = vrot.slane %v6413_v40, 6  ;;  %v7762_v40 = vld [vmem:[%s10425_s1 + $0x648] ss:$16 sps:$4 sm:$0xff]   ;;  %v7770_v9 = vld [vmem:[%s10425_s1 + $0x66c] ss:$16 sps:$4 sm:$0xff]  }
  0xf2   : > { %2147 = vmatmul.mubr.bf16.gmra.mrb[8].mxu0 %v6368_v34  ;;  %2220 = vmatmul.mubr.bf16.gmra.mrb[8].mxu1 %v6368_v34  ;;  %v7708_v34 = vld [vmem:[%s10425_s1 + $0x548] ss:$16 sps:$4 sm:$0xff]   ;;  %v7765_v10 = vld [vmem:[%s10425_s1 + $0x660] ss:$16 sps:$4 sm:$0xff]  }
  0xf3   : > { %2562 = vmatpush1.bf16.msra.mxu0 %v7662_v46  ;;  %2635 = vmatpush1.bf16.msra.mxu1 %v7665_v39  ;;  %v7705_v46 = vld [vmem:[%s10425_s1 + $0x540] ss:$16 sps:$4 sm:$0xff]   ;;  %v2330_v39 = vrot.slane %v6411_v37, 6  ;;  %v7761_v37 = vld [vmem:[%s10425_s1 + $0x644] ss:$16 sps:$4 sm:$0xff]  }
  0xf4   : > { %2563 = vmatprep.subr.bf16.mxu0 %v7670_v47  ;;  %2636 = vmatprep.subr.bf16.mxu1 %v7673_v50  ;;  %v7713_v47 = vld [vmem:[%s10425_s1 + $0x564] ss:$16 sps:$4 sm:$0xff]   ;;  %v7716_v50 = vld [vmem:[%s10425_s1 + $0x56c] ss:$16 sps:$4 sm:$0xff]  }
  0xf5   : > { %2156 = vmatprep.mubr.bf16.mxu0 %v8167_v2  ;;  %2229 = vmatprep.mubr.bf16.mxu1 %v8167_v2  ;;  %v2331_v60 = vsel %vm8632_vm2, %v6422_v43, %v2330_v39  ;;  %v7768_v43 = vld [vmem:[%s10425_s1 + $0x668] ss:$16 sps:$4 sm:$0xff]  }
  0xf6   : > { %v7775_v39 = vld [vmem:[%s10425_s1 + $0x688] ss:$16 sps:$4 sm:$0xff]  }
  0xf7   : > { %2564 = vmatpush1.bf16.msra.mxu0 %v7668_v55  ;;  %2637 = vmatpush1.bf16.msra.mxu1 %v7671_v57  ;;  %v9259_v55 = vld [vmem:[%s8380_s23 + $0x128] sm:$0xff]  ;;  %v6414_v57 = vcombine.high %v9141_v59, %v9141_v59  ;;  %v2335_v59 = vsel %vm8632_vm2, %v6423_v44, %v2334_v54  ;;  %v7774_v44 = vld [vmem:[%s10425_s1 + $0x684] ss:$16 sps:$4 sm:$0xff]  }
  0xf8   : > { %2565 = vmatprep.subr.bf16.mxu0 %v7679_v61  ;;  %2638 = vmatprep.subr.bf16.mxu1 %v7682_v63  ;;  %v7711_v61 = vld [vmem:[%s10425_s1 + $0x560] ss:$16 sps:$4 sm:$0xff]   ;;  %v7714_v63 = vld [vmem:[%s10425_s1 + $0x568] ss:$16 sps:$4 sm:$0xff]   ;;  %v6415_v36 = vcombine.low %v9259_v55, %v9259_v55  ;;  %v6460_v5 = vcombine.low %v2331_v60, %v2335_v59  ;;  %v7787_v54 = vld [vmem:[%s10425_s1 + $0x6c4] ss:$16 sps:$4 sm:$0xff]  }
  0xf9   : > { %v7785_v60 = vld [vmem:[%s10425_s1 + $0x6c0] ss:$16 sps:$4 sm:$0xff]   ;;  %v7794_v59 = vld [vmem:[%s10425_s1 + $0x6e8] ss:$16 sps:$4 sm:$0xff]  }
  0xfa   : > { %2157 = vmatmul.mubr.bf16.gmra.mrb[12].mxu0 %v6369_v4  ;;  %2230 = vmatmul.mubr.bf16.gmra.mrb[12].mxu1 %v6369_v4  ;;  %v6424_v4 = vrot.slane %v6414_v57, 10  ;;  %v2338_v12 = vrot.slane %v6415_v36, 6  ;;  %v7790_v57 = vld [vmem:[%s10425_s1 + $0x6cc] ss:$16 sps:$4 sm:$0xff]   ;;  %v9451_v36 = vld [vmem:[%s8380_s23 + $0x180] sm:$0xff] }
  0xfb   : > { %2566 = vmatpush1.bf16.msra.mxu0 %v7677_v1  ;;  %2639 = vmatpush1.bf16.msra.mxu1 %v7680_v62  ;;  %v7721_v1 = vld [vmem:[%s10425_s1 + $0x584] ss:$16 sps:$4 sm:$0xff]   ;;  %v6425_v62 = vrot.slane %v6416_v58, 10  ;;  %v6529_v58 = vcombine.high %v9259_v55, %v9262_v56  ;;  %v7796_v55 = vld [vmem:[%s10425_s1 + $0x6ec] ss:$16 sps:$4 sm:$0xff]  }
  0xfc   : > { %2567 = vmatprep.subr.bf16.mxu0 %v7685_v6  ;;  %2640 = vmatprep.subr.bf16.mxu1 %v7688_v7  ;;  %v7719_v6 = vld [vmem:[%s10425_s1 + $0x580] ss:$16 sps:$4 sm:$0xff]   ;;  %v7722_v7 = vld [vmem:[%s10425_s1 + $0x588] ss:$16 sps:$4 sm:$0xff]   ;;  %v2339_v17 = vsel %vm8632_vm2, %v6424_v4, %v2338_v12  ;;  %v6594_v4 = vcombine.low %v9451_v36, %v9454_v0 }
  0xfd   : > { %2585 = vmatprep.mubr.bf16.mxu0 %v8167_v2  ;;  %2658 = vmatprep.mubr.bf16.mxu1 %v8167_v2  ;;  %v2343_v18 = vsel %vm8632_vm2, %v6425_v62, %v2342_v22  ;;  %v7791_v56 = vld [vmem:[%s10425_s1 + $0x6e0] ss:$16 sps:$4 sm:$0xff]   ;;  %v7809_v12 = vld [vmem:[%s10425_s1 + $0x728] ss:$16 sps:$4 sm:$0xff]  }
  0xfe   : > { %v7800_v62 = vld [vmem:[%s10425_s1 + $0x700] ss:$16 sps:$4 sm:$0xff]  }
  0xff   : > { %2568 = vmatpush1.bf16.msra.mxu0 %v7683_v15  ;;  %2641 = vmatpush1.bf16.msra.mxu1 %v7686_v16  ;;  %v7725_v15 = vld [vmem:[%s10425_s1 + $0x5a0] ss:$16 sps:$4 sm:$0xff]   ;;  %v7728_v16 = vld [vmem:[%s10425_s1 + $0x5a8] ss:$16 sps:$4 sm:$0xff]  }
 0x100   : > { %2940 = vmatprep.subr.bf16.mxu0 %v7693_v29  ;;  %3013 = vmatprep.subr.bf16.mxu1 %v7696_v19  ;;  %v7738_v29 = vld [vmem:[%s10425_s1 + $0x5cc] ss:$16 sps:$4 sm:$0xff]   ;;  %v6461_v19 = vcombine.low %v2339_v17, %v2343_v18  ;;  %v9485_v22 = vld [vmem:[%s8380_s23 + $0x1a0] sm:$0xff] }
 0x101   : > { %v7815_v18 = vld [vmem:[%s10425_s1 + $0x740] ss:$16 sps:$4 sm:$0xff]  }
 0x102   : > { %2586 = vmatmul.mubr.bf16.vlgmr.msra.gmra.mrb[0].mxu0 %v6458_v23  ;;  %2659 = vmatmul.mubr.bf16.vlgmr.msra.gmra.mrb[0].mxu1 %v6458_v23  ;;  %v7744_v23 = vld [vmem:[%s10425_s1 + $0x5ec] ss:$16 sps:$4 sm:$0xff]  }
 0x103   : > { %2941 = vmatpush1.bf16.msra.mxu0 %v7691_v20  ;;  %3014 = vmatpush1.bf16.msra.mxu1 %v7694_v24  ;;  %v7733_v20 = vld [vmem:[%s10425_s1 + $0x5c0] ss:$16 sps:$4 sm:$0xff]  }
 0x104   : > { %2942 = vmatprep.subr.bf16.mxu0 %v7699_v25  ;;  %3015 = vmatprep.subr.bf16.mxu1 %v7702_v28  ;;  %v7739_v24 = vld [vmem:[%s10425_s1 + $0x5e0] ss:$16 sps:$4 sm:$0xff]   ;;  %v7742_v25 = vld [vmem:[%s10425_s1 + $0x5e8] ss:$16 sps:$4 sm:$0xff]   ;;  %v6526_v28 = vcombine.high %v9120_v49, %v9126_v52  ;;  %v7757_v49 = vld [vmem:[%s10425_s1 + $0x62c] ss:$16 sps:$4 sm:$0xff]  }
 0x105   : > { %2595 = vmatprep.mubr.bf16.mxu0 %v8167_v2  ;;  %2668 = vmatprep.mubr.bf16.mxu1 %v8167_v2  ;;  %v7752_v52 = vld [vmem:[%s10425_s1 + $0x620] ss:$16 sps:$4 sm:$0xff]  }
 0x107   : > { %2943 = vmatpush1.bf16.msra.mxu0 %v7697_v33  ;;  %3016 = vmatpush1.bf16.msra.mxu1 %v7700_v35  ;;  %v7754_v33 = vld [vmem:[%s10425_s1 + $0x624] ss:$16 sps:$4 sm:$0xff]   ;;  %v7755_v35 = vld [vmem:[%s10425_s1 + $0x628] ss:$16 sps:$4 sm:$0xff]  }
 0x108   : > { %2944 = vmatprep.subr.bf16.mxu0 %v7707_v38  ;;  %3017 = vmatprep.subr.bf16.mxu1 %v7710_v41  ;;  %v7759_v38 = vld [vmem:[%s10425_s1 + $0x640] ss:$16 sps:$4 sm:$0xff]   ;;  %v7767_v41 = vld [vmem:[%s10425_s1 + $0x664] ss:$16 sps:$4 sm:$0xff]  }
 0x10a   : > { %2596 = vmatmul.mubr.bf16.gmra.mrb[4].mxu0 %v6459_v45  ;;  %2669 = vmatmul.mubr.bf16.gmra.mrb[4].mxu1 %v6459_v45  ;;  %v7777_v45 = vld [vmem:[%s10425_s1 + $0x68c] ss:$16 sps:$4 sm:$0xff]  }
 0x10b   : > { %2945 = vmatpush1.bf16.msra.mxu0 %v7705_v46  ;;  %3018 = vmatpush1.bf16.msra.mxu1 %v7708_v34  ;;  %v6528_v46 = vcombine.high %v9212_v53, %v9218_v30  ;;  %v7772_v34 = vld [vmem:[%s10425_s1 + $0x680] ss:$16 sps:$4 sm:$0xff]   ;;  %v7783_v53 = vld [vmem:[%s10425_s1 + $0x6ac] ss:$16 sps:$4 sm:$0xff]  }
 0x10c   : > { %2946 = vmatprep.subr.bf16.mxu0 %v7713_v47  ;;  %3019 = vmatprep.subr.bf16.mxu1 %v7716_v50  ;;  %v7780_v47 = vld [vmem:[%s10425_s1 + $0x6a4] ss:$16 sps:$4 sm:$0xff]   ;;  %v7778_v30 = vld [vmem:[%s10425_s1 + $0x6a0] ss:$16 sps:$4 sm:$0xff]   ;;  %v7781_v50 = vld [vmem:[%s10425_s1 + $0x6a8] ss:$16 sps:$4 sm:$0xff]  }
 0x10d   : > { %2605 = vmatprep.mubr.bf16.mxu0 %v8167_v2  ;;  %2678 = vmatprep.mubr.bf16.mxu1 %v8167_v2 }
 0x10f   : > { %2947 = vmatpush1.bf16.msra.mxu0 %v7711_v61  ;;  %3020 = vmatpush1.bf16.msra.mxu1 %v7714_v63  ;;  %v7788_v61 = vld [vmem:[%s10425_s1 + $0x6c8] ss:$16 sps:$4 sm:$0xff]   ;;  %v7793_v63 = vld [vmem:[%s10425_s1 + $0x6e4] ss:$16 sps:$4 sm:$0xff]  }
 0x110   : > { %2948 = vmatprep.subr.bf16.mxu0 %v7721_v1  ;;  %3021 = vmatprep.subr.bf16.mxu1 %v7724_v3  ;;  %v7802_v1 = vld [vmem:[%s10425_s1 + $0x704] ss:$16 sps:$4 sm:$0xff]   ;;  %v7805_v3 = vld [vmem:[%s10425_s1 + $0x70c] ss:$16 sps:$4 sm:$0xff]  }
 0x112   : > { %2606 = vmatmul.mubr.bf16.gmra.mrb[8].mxu0 %v6460_v5  ;;  %2679 = vmatmul.mubr.bf16.gmra.mrb[8].mxu1 %v6460_v5  ;;  %v7803_v5 = vld [vmem:[%s10425_s1 + $0x708] ss:$16 sps:$4 sm:$0xff]  }
 0x113   : > { %2949 = vmatpush1.bf16.msra.mxu0 %v7719_v6  ;;  %3022 = vmatpush1.bf16.msra.mxu1 %v7722_v7  ;;  %v7808_v6 = vld [vmem:[%s10425_s1 + $0x724] ss:$16 sps:$4 sm:$0xff]   ;;  %v7811_v7 = vld [vmem:[%s10425_s1 + $0x72c] ss:$16 sps:$4 sm:$0xff]  }
 0x114   : > { %2950 = vmatprep.subr.bf16.mxu0 %v7727_v8  ;;  %3023 = vmatprep.subr.bf16.mxu1 %v7730_v14  ;;  %v7806_v8 = vld [vmem:[%s10425_s1 + $0x720] ss:$16 sps:$4 sm:$0xff]  }
 0x115   : > { %2615 = vmatprep.mubr.bf16.mxu0 %v8167_v2  ;;  %2688 = vmatprep.mubr.bf16.mxu1 %v8167_v2  ;;  %v9488_v14 = vld [vmem:[%s8380_s23 + $0x1b0] sm:$0xff] }
 0x116   : > { %v6595_v17 = vcombine.low %v9485_v22, %v9488_v14 }
 0x117   : > { %2951 = vmatpush1.bf16.msra.mxu0 %v7725_v15  ;;  %3024 = vmatpush1.bf16.msra.mxu1 %v7728_v16  ;;  %v7817_v15 = vld [vmem:[%s10425_s1 + $0x744] ss:$16 sps:$4 sm:$0xff]   ;;  %v7820_v16 = vld [vmem:[%s10425_s1 + $0x74c] ss:$16 sps:$4 sm:$0xff]  }
 0x118   : > { %2952 = vmatprep.subr.bf16.mxu0 %v7735_v27  ;;  %3025 = vmatprep.subr.bf16.mxu1 %v7738_v29  ;;  %v7818_v27 = vld [vmem:[%s10425_s1 + $0x748] ss:$16 sps:$4 sm:$0xff]   ;;  %v7823_v29 = vld [vmem:[%s10425_s1 + $0x764] ss:$16 sps:$4 sm:$0xff]  }
 0x11a   : > { %2616 = vmatmul.mubr.bf16.gmra.mrb[12].mxu0 %v6461_v19  ;;  %2689 = vmatmul.mubr.bf16.gmra.mrb[12].mxu1 %v6461_v19  ;;  %v7826_v19 = vld [vmem:[%s10425_s1 + $0x76c] ss:$16 sps:$4 sm:$0xff]  }
 0x11b   : > { %2953 = vmatpush1.bf16.msra.mxu0 %v7733_v20  ;;  %3026 = vmatpush1.bf16.msra.mxu1 %v7736_v48  ;;  %v7821_v20 = vld [vmem:[%s10425_s1 + $0x760] ss:$16 sps:$4 sm:$0xff]   ;;  %v7824_v48 = vld [vmem:[%s10425_s1 + $0x768] ss:$16 sps:$4 sm:$0xff]  }
 0x11c   : > { %2954 = vmatprep.subr.bf16.mxu0 %v7741_v21  ;;  %3027 = vmatprep.subr.bf16.mxu1 %v7744_v23  ;;  %v9519_v21 = vld [vmem:[%s8380_s23 + $0x1c0] sm:$0xff]  ;;  %v9522_v23 = vld [vmem:[%s8380_s23 + $0x1d0] sm:$0xff] }
 0x11d   : > { %2972 = vmatprep.mubr.bf16.mxu0 %v8167_v2  ;;  %3045 = vmatprep.mubr.bf16.mxu1 %v8167_v2 }
 0x11f   : > { %2955 = vmatpush1.bf16.msra.mxu0 %v7739_v24  ;;  %3028 = vmatpush1.bf16.msra.mxu1 %v7742_v25  ;;  %v7832_v24 = vld [vmem:[%s10425_s1 + $0x784] ss:$16 sps:$4 sm:$0xff]   ;;  %v7835_v25 = vld [vmem:[%s10425_s1 + $0x78c] ss:$16 sps:$4 sm:$0xff]  }
 0x120   : > { %3335 = vmatprep.subr.bf16.mxu0 %v7748_v26  ;;  %3408 = vmatprep.subr.bf16.mxu1 %v7751_v51  ;;  %v7830_v26 = vld [vmem:[%s10425_s1 + $0x780] ss:$16 sps:$4 sm:$0xff]   ;;  %v6596_v51 = vcombine.low %v9519_v21, %v9522_v23 }
 0x122   : > { %2973 = vmatmul.mubr.bf16.vlgmr.msra.gmra.mrb[0].mxu0 %v6526_v28  ;;  %3046 = vmatmul.mubr.bf16.vlgmr.msra.gmra.mrb[0].mxu1 %v6526_v28  ;;  %v7833_v28 = vld [vmem:[%s10425_s1 + $0x788] ss:$16 sps:$4 sm:$0xff]  }
 0x123   : > { %3336 = vmatpush1.bf16.msra.mxu0 %v7746_v31  ;;  %3409 = vmatpush1.bf16.msra.mxu1 %v7749_v32  ;;  %v7838_v31 = vld [vmem:[%s10425_s1 + $0x7a4] ss:$16 sps:$4 sm:$0xff]   ;;  %v7841_v32 = vld [vmem:[%s10425_s1 + $0x7ac] ss:$16 sps:$4 sm:$0xff]  }
 0x124   : > { %3337 = vmatprep.subr.bf16.mxu0 %v7754_v33  ;;  %3410 = vmatprep.subr.bf16.mxu1 %v7757_v49  ;;  %v9547_v33 = vld [vmem:[%s8380_s23 + $0x188] sm:$0xff]  ;;  %v9550_v49 = vld [vmem:[%s8380_s23 + $0x198] sm:$0xff] }
 0x125   : > { %2982 = vmatprep.mubr.bf16.mxu0 %v8167_v2  ;;  %3055 = vmatprep.mubr.bf16.mxu1 %v8167_v2 }
 0x127   : > { %3338 = vmatpush1.bf16.msra.mxu0 %v7752_v52  ;;  %3411 = vmatpush1.bf16.msra.mxu1 %v7755_v35  ;;  %v7836_v52 = vld [vmem:[%s10425_s1 + $0x7a0] ss:$16 sps:$4 sm:$0xff]   ;;  %v6630_v35 = vcombine.high %v9451_v36, %v9451_v36 }
 0x128   : > { %3339 = vmatprep.subr.bf16.mxu0 %v7761_v37  ;;  %3412 = vmatprep.subr.bf16.mxu1 %v7764_v11  ;;  %v7839_v37 = vld [vmem:[%s10425_s1 + $0x7a8] ss:$16 sps:$4 sm:$0xff]   ;;  %v6632_v11 = vcombine.high %v9454_v0, %v9454_v0 }
 0x12a   : > { %2983 = vmatmul.mubr.bf16.gmra.mrb[4].mxu0 %v6527_v13  ;;  %3056 = vmatmul.mubr.bf16.gmra.mrb[4].mxu1 %v6527_v13  ;;  %v9563_v13 = vld [vmem:[%s8380_s23 + $0x1e0] sm:$0xff] }
 0x12b   : > { %3340 = vmatpush1.bf16.msra.mxu0 %v7759_v38  ;;  %3413 = vmatpush1.bf16.msra.mxu1 %v7762_v40  ;;  %v9566_v38 = vld [vmem:[%s8380_s23 + $0x1f0] sm:$0xff]  ;;  %v6631_v40 = vcombine.low %v9547_v33, %v9547_v33 }
 0x12c   : > { %3341 = vmatprep.subr.bf16.mxu0 %v7767_v41  ;;  %3414 = vmatprep.subr.bf16.mxu1 %v7770_v9  ;;  %v6633_v41 = vcombine.low %v9550_v49, %v9550_v49  ;;  %v7847_v9 = vld [vmem:[%s10425_s1 + $0x7c4] ss:$16 sps:$4 sm:$0xff]  }
 0x12d   : > { %2992 = vmatprep.mubr.bf16.mxu0 %v8167_v2  ;;  %3065 = vmatprep.mubr.bf16.mxu1 %v8167_v2 }
 0x12f   : > { %3342 = vmatpush1.bf16.msra.mxu0 %v7765_v10  ;;  %3415 = vmatpush1.bf16.msra.mxu1 %v7768_v43  ;;  %v7850_v10 = vld [vmem:[%s10425_s1 + $0x7cc] ss:$16 sps:$4 sm:$0xff]   ;;  %v7845_v43 = vld [vmem:[%s10425_s1 + $0x7c0] ss:$16 sps:$4 sm:$0xff]  }
 0x130   : > { %3343 = vmatprep.subr.bf16.mxu0 %v7774_v44  ;;  %3416 = vmatprep.subr.bf16.mxu1 %v7777_v45  ;;  %v7848_v44 = vld [vmem:[%s10425_s1 + $0x7c8] ss:$16 sps:$4 sm:$0xff]  }
 0x131   : > { %v9587_v45 = vld [vmem:[%s8380_s23 + $0x1a8] sm:$0xff] }
 0x132   : > { %2993 = vmatmul.mubr.bf16.gmra.mrb[8].mxu0 %v6528_v46  ;;  %3066 = vmatmul.mubr.bf16.gmra.mrb[8].mxu1 %v6528_v46  ;;  %v6646_v46 = vrot.slane %v6630_v35, 10 }
 0x133   : > { %3344 = vmatpush1.bf16.msra.mxu0 %v7772_v34  ;;  %3417 = vmatpush1.bf16.msra.mxu1 %v7775_v39  ;;  %v6597_v34 = vcombine.low %v9563_v13, %v9566_v38  ;;  %v7853_v39 = vld [vmem:[%s10425_s1 + $0x7e4] ss:$16 sps:$4 sm:$0xff]  }
 0x134   : > { %3345 = vmatprep.subr.bf16.mxu0 %v7780_v47  ;;  %3418 = vmatprep.subr.bf16.mxu1 %v7783_v53  ;;  %v7856_v47 = vld [vmem:[%s10425_s1 + $0x7ec] ss:$16 sps:$4 sm:$0xff]  }
 0x135   : > { %3002 = vmatprep.mubr.bf16.mxu0 %v8167_v2  ;;  %3075 = vmatprep.mubr.bf16.mxu1 %v8167_v2  ;;  %v9598_v53 = vld [vmem:[%s8380_s23 + $0x1b8] sm:$0xff] }
 0x136   : > { %v6637_v0 = vcombine.low %v9598_v53, %v9598_v53 }
 0x137   : > { %3346 = vmatpush1.bf16.msra.mxu0 %v7778_v30  ;;  %3419 = vmatpush1.bf16.msra.mxu1 %v7781_v50  ;;  %v6647_v30 = vrot.slane %v6632_v11, 10  ;;  %v3555_v50 = vrot.slane %v6631_v40, 6  ;;  %v6642_v11 = vcombine.high %v9563_v13, %v9563_v13  ;;  %v6644_v40 = vcombine.high %v9566_v38, %v9566_v38  ;;  %v7889_v13 = vld [vmem:[%s10425_s1 + $0x884] ss:$16 sps:$4 sm:$0xff]   ;;  %v7892_v38 = vld [vmem:[%s10425_s1 + $0x88c] ss:$16 sps:$4 sm:$0xff]  }
 0x138   : > { %3347 = vmatprep.subr.bf16.mxu0 %v7787_v54  ;;  %3420 = vmatprep.subr.bf16.mxu1 %v7790_v57  ;;  %v3559_v54 = vrot.slane %v6633_v41, 6  ;;  %v7851_v57 = vld [vmem:[%s10425_s1 + $0x7e0] ss:$16 sps:$4 sm:$0xff]  }
 0x139   : > { %v7879_v41 = vld [vmem:[%s10425_s1 + $0x860] ss:$16 sps:$4 sm:$0xff]  }
 0x13a   : > { %3003 = vmatmul.mubr.bf16.gmra.mrb[12].mxu0 %v6529_v58  ;;  %3076 = vmatmul.mubr.bf16.gmra.mrb[12].mxu1 %v6529_v58  ;;  %v7854_v58 = vld [vmem:[%s10425_s1 + $0x7e8] ss:$16 sps:$4 sm:$0xff]   ;;  %v3560_v36 = vsel %vm8632_vm2, %v6647_v30, %v3559_v54 }
 0x13b   : > { %3348 = vmatpush1.bf16.msra.mxu0 %v7785_v60  ;;  %3421 = vmatpush1.bf16.msra.mxu1 %v7788_v61  ;;  %v6634_v60 = vcombine.high %v9485_v22, %v9485_v22  ;;  %v6636_v61 = vcombine.high %v9488_v14, %v9488_v14  ;;  %v3567_v14 = vrot.slane %v6637_v0, 6  ;;  %v7890_v30 = vld [vmem:[%s10425_s1 + $0x888] ss:$16 sps:$4 sm:$0xff]   ;;  %v7901_v0 = vld [vmem:[%s10425_s1 + $0x8c0] ss:$16 sps:$4 sm:$0xff]  }
 0x13c   : > { %3349 = vmatprep.subr.bf16.mxu0 %v7793_v63  ;;  %3422 = vmatprep.subr.bf16.mxu1 %v7796_v55  ;;  %v7861_v63 = vld [vmem:[%s10425_s1 + $0x804] ss:$16 sps:$4 sm:$0xff]   ;;  %v7864_v55 = vld [vmem:[%s10425_s1 + $0x80c] ss:$16 sps:$4 sm:$0xff]  }
 0x13d   : > { %3367 = vmatprep.mubr.bf16.mxu0 %v8167_v2  ;;  %3440 = vmatprep.mubr.bf16.mxu1 %v8167_v2  ;;  %v6649_v22 = vrot.slane %v6636_v61, 10  ;;  %v7893_v61 = vld [vmem:[%s10425_s1 + $0x8a0] ss:$16 sps:$4 sm:$0xff]  }
 0x13f   : > { %3350 = vmatpush1.bf16.msra.mxu0 %v7791_v56  ;;  %3423 = vmatpush1.bf16.msra.mxu1 %v7794_v59  ;;  %v6635_v56 = vcombine.low %v9587_v45, %v9587_v45  ;;  %v3556_v59 = vsel %vm8632_vm2, %v6646_v46, %v3555_v50 }
 0x140   : > { %3794 = vmatprep.subr.bf16.mxu0 %v7802_v1  ;;  %3867 = vmatprep.subr.bf16.mxu1 %v7805_v3  ;;  %v7859_v1 = vld [vmem:[%s10425_s1 + $0x800] ss:$16 sps:$4 sm:$0xff]   ;;  %v7862_v3 = vld [vmem:[%s10425_s1 + $0x808] ss:$16 sps:$4 sm:$0xff]  }
 0x142   : > { %3368 = vmatmul.mubr.bf16.vlgmr.msra.gmra.mrb[0].mxu0 %v6594_v4  ;;  %3441 = vmatmul.mubr.bf16.vlgmr.msra.gmra.mrb[0].mxu1 %v6594_v4  ;;  %v6648_v4 = vrot.slane %v6634_v60, 10 }
 0x143   : > { %3795 = vmatpush1.bf16.msra.mxu0 %v7800_v62  ;;  %3868 = vmatpush1.bf16.msra.mxu1 %v7803_v5  ;;  %v6686_v62 = vcombine.low %v3556_v59, %v3560_v36  ;;  %v7867_v5 = vld [vmem:[%s10425_s1 + $0x824] ss:$16 sps:$4 sm:$0xff]  }
 0x144   : > { %3796 = vmatprep.subr.bf16.mxu0 %v7808_v6  ;;  %3869 = vmatprep.subr.bf16.mxu1 %v7811_v7  ;;  %v7870_v6 = vld [vmem:[%s10425_s1 + $0x82c] ss:$16 sps:$4 sm:$0xff]   ;;  %v3563_v7 = vrot.slane %v6635_v56, 6 }
 0x145   : > { %3377 = vmatprep.mubr.bf16.mxu0 %v8167_v2  ;;  %3450 = vmatprep.mubr.bf16.mxu1 %v8167_v2  ;;  %v7906_v56 = vld [vmem:[%s10425_s1 + $0x8cc] ss:$16 sps:$4 sm:$0xff]  }
 0x147   : > { %3797 = vmatpush1.bf16.msra.mxu0 %v7806_v8  ;;  %3870 = vmatpush1.bf16.msra.mxu1 %v7809_v12  ;;  %v9639_v8 = vld [vmem:[%s8380_s23 + $0x1c8] sm:$0xff]  ;;  %v9642_v12 = vld [vmem:[%s8380_s23 + $0x1d8] sm:$0xff] }
 0x148   : > { %3798 = vmatprep.subr.bf16.mxu0 %v7817_v15  ;;  %3871 = vmatprep.subr.bf16.mxu1 %v7820_v16  ;;  %v7865_v15 = vld [vmem:[%s10425_s1 + $0x820] ss:$16 sps:$4 sm:$0xff]   ;;  %v7868_v16 = vld [vmem:[%s10425_s1 + $0x828] ss:$16 sps:$4 sm:$0xff]  }
 0x14a   : > { %3378 = vmatmul.mubr.bf16.gmra.mrb[4].mxu0 %v6595_v17  ;;  %3451 = vmatmul.mubr.bf16.gmra.mrb[4].mxu1 %v6595_v17  ;;  %v6638_v17 = vcombine.high %v9519_v21, %v9519_v21  ;;  %v6641_v21 = vcombine.low %v9642_v12, %v9642_v12 }
 0x14b   : > { %3799 = vmatpush1.bf16.msra.mxu0 %v7815_v18  ;;  %3872 = vmatpush1.bf16.msra.mxu1 %v7818_v27  ;;  %v6640_v18 = vcombine.high %v9522_v23, %v9522_v23  ;;  %v3564_v27 = vsel %vm8632_vm2, %v6648_v4, %v3563_v7  ;;  %v9669_v23 = vld [vmem:[%s8380_s23 + $0x1e8] sm:$0xff] }
 0x14c   : > { %3800 = vmatprep.subr.bf16.mxu0 %v7823_v29  ;;  %3873 = vmatprep.subr.bf16.mxu1 %v7826_v19  ;;  %v7875_v29 = vld [vmem:[%s10425_s1 + $0x844] ss:$16 sps:$4 sm:$0xff]   ;;  %v7878_v19 = vld [vmem:[%s10425_s1 + $0x84c] ss:$16 sps:$4 sm:$0xff]  }
 0x14d   : > { %3387 = vmatprep.mubr.bf16.mxu0 %v8167_v2  ;;  %3460 = vmatprep.mubr.bf16.mxu1 %v8167_v2  ;;  %v7912_v4 = vld [vmem:[%s10425_s1 + $0x8ec] ss:$16 sps:$4 sm:$0xff]  }
 0x14e   : > { %v7922_v7 = vld [vmem:[%s10427_s3 + $0xc] ss:$16 sps:$4 sm:$0xff]  }
 0x14f   : > { %3801 = vmatpush1.bf16.msra.mxu0 %v7821_v20  ;;  %3874 = vmatpush1.bf16.msra.mxu1 %v7824_v48  ;;  %v3568_v20 = vsel %vm8632_vm2, %v6649_v22, %v3567_v14  ;;  %v6639_v48 = vcombine.low %v9639_v8, %v9639_v8  ;;  %v6754_v22 = vcombine.high %v9547_v33, %v9550_v49  ;;  %v7917_v14 = vld [vmem:[%s10427_s3] ss:$16 sps:$4 sm:$0xff]   ;;  %v7926_v49 = vld [vmem:[%s10427_s3 + $0x28] ss:$16 sps:$4 sm:$0xff]  }
 0x150   : > { %3802 = vmatprep.subr.bf16.mxu0 %v7832_v24  ;;  %3875 = vmatprep.subr.bf16.mxu1 %v7835_v25  ;;  %v7873_v24 = vld [vmem:[%s10425_s1 + $0x840] ss:$16 sps:$4 sm:$0xff]   ;;  %v7876_v25 = vld [vmem:[%s10425_s1 + $0x848] ss:$16 sps:$4 sm:$0xff]  }
 0x151   : > { %v3571_v35 = vrot.slane %v6639_v48, 6  ;;  %v7923_v33 = vld [vmem:[%s10427_s3 + $0x20] ss:$16 sps:$4 sm:$0xff]   ;;  %v7937_v48 = vld [vmem:[%s10427_s3 + $0x64] ss:$16 sps:$4 sm:$0xff]  }
 0x152   : > { %3388 = vmatmul.mubr.bf16.gmra.mrb[8].mxu0 %v6596_v51  ;;  %3461 = vmatmul.mubr.bf16.gmra.mrb[8].mxu1 %v6596_v51  ;;  %v6650_v51 = vrot.slane %v6638_v17, 10  ;;  %v7928_v17 = vld [vmem:[%s10427_s3 + $0x2c] ss:$16 sps:$4 sm:$0xff]  }
 0x153   : > { %3803 = vmatpush1.bf16.msra.mxu0 %v7830_v26  ;;  %3876 = vmatpush1.bf16.msra.mxu1 %v7833_v28  ;;  %v9680_v26 = vld [vmem:[%s8380_s23 + $0x1f8] sm:$0xff]  ;;  %v6687_v28 = vcombine.low %v3564_v27, %v3568_v20 }
 0x154   : > { %3804 = vmatprep.subr.bf16.mxu0 %v7838_v31  ;;  %3877 = vmatprep.subr.bf16.mxu1 %v7841_v32  ;;  %v7881_v31 = vld [vmem:[%s10425_s1 + $0x864] ss:$16 sps:$4 sm:$0xff]   ;;  %v7884_v32 = vld [vmem:[%s10425_s1 + $0x86c] ss:$16 sps:$4 sm:$0xff]   ;;  %v7932_v20 = vld [vmem:[%s10427_s3 + $0x48] ss:$16 sps:$4 sm:$0xff]  }
 0x155   : > { %3397 = vmatprep.mubr.bf16.mxu0 %v8167_v2  ;;  %3470 = vmatprep.mubr.bf16.mxu1 %v8167_v2  ;;  %v7934_v27 = vld [vmem:[%s10427_s3 + $0x4c] ss:$16 sps:$4 sm:$0xff]  }
 0x157   : > { %3805 = vmatpush1.bf16.msra.mxu0 %v7836_v52  ;;  %3878 = vmatpush1.bf16.msra.mxu1 %v7839_v37  ;;  %v6651_v52 = vrot.slane %v6640_v18, 10  ;;  %v3575_v37 = vrot.slane %v6641_v21, 6  ;;  %v7931_v18 = vld [vmem:[%s10427_s3 + $0x44] ss:$16 sps:$4 sm:$0xff]   ;;  %v7938_v21 = vld [vmem:[%s10427_s3 + $0x68] ss:$16 sps:$4 sm:$0xff]  }
 0x158   : > { %3806 = vmatprep.subr.bf16.mxu0 %v7847_v9  ;;  %3879 = vmatprep.subr.bf16.mxu1 %v7850_v10  ;;  %v7882_v9 = vld [vmem:[%s10425_s1 + $0x868] ss:$16 sps:$4 sm:$0xff]   ;;  %v6643_v10 = vcombine.low %v9669_v23, %v9669_v23 }
 0x159   : > { %v3576_v46 = vsel %vm8632_vm2, %v6651_v52, %v3575_v37  ;;  %v7950_v52 = vld [vmem:[%s10427_s3 + $0xa8] ss:$16 sps:$4 sm:$0xff]   ;;  %v6757_v37 = vcombine.high %v9669_v23, %v9680_v26  ;;  %v7964_v23 = vld [vmem:[%s10427_s3 + $0xec] ss:$16 sps:$4 sm:$0xff]  }
 0x15a   : > { %3398 = vmatmul.mubr.bf16.gmra.mrb[12].mxu0 %v6597_v34  ;;  %3471 = vmatmul.mubr.bf16.gmra.mrb[12].mxu1 %v6597_v34  ;;  %v6652_v34 = vrot.slane %v6642_v11, 10  ;;  %v3579_v50 = vrot.slane %v6643_v10, 6  ;;  %v7953_v11 = vld [vmem:[%s10427_s3 + $0xc0] ss:$16 sps:$4 sm:$0xff]   ;;  %v7967_v10 = vld [vmem:[%s10427_s3 + $0x104] ss:$16 sps:$4 sm:$0xff]  }
 0x15b   : > { %3807 = vmatpush1.bf16.msra.mxu0 %v7845_v43  ;;  %3880 = vmatpush1.bf16.msra.mxu1 %v7848_v44  ;;  %v6645_v43 = vcombine.low %v9680_v26, %v9680_v26  ;;  %v3572_v44 = vsel %vm8632_vm2, %v6650_v51, %v3571_v35  ;;  %v6756_v51 = vcombine.high %v9639_v8, %v9642_v12  ;;  %v7952_v8 = vld [vmem:[%s10427_s3 + $0xac] ss:$16 sps:$4 sm:$0xff]   ;;  %v7947_v12 = vld [vmem:[%s10427_s3 + $0xa0] ss:$16 sps:$4 sm:$0xff]   ;;  %v7955_v35 = vld [vmem:[%s10427_s3 + $0xc4] ss:$16 sps:$4 sm:$0xff]  }
 0x15c   : > { %3808 = vmatprep.subr.bf16.mxu0 %v7853_v39  ;;  %3881 = vmatprep.subr.bf16.mxu1 %v7856_v47  ;;  %v6653_v39 = vrot.slane %v6644_v40, 10  ;;  %v7887_v47 = vld [vmem:[%s10425_s1 + $0x880] ss:$16 sps:$4 sm:$0xff]   ;;  %v6688_v54 = vcombine.low %v3572_v44, %v3576_v46  ;;  %v3580_v59 = vsel %vm8632_vm2, %v6652_v34, %v3579_v50  ;;  %v7956_v40 = vld [vmem:[%s10427_s3 + $0xc8] ss:$16 sps:$4 sm:$0xff]  }
 0x15d   : > { %3826 = vmatprep.mubr.bf16.mxu0 %v8167_v2  ;;  %3899 = vmatprep.mubr.bf16.mxu1 %v8167_v2  ;;  %v3583_v60 = vrot.slane %v6645_v43, 6  ;;  %v7959_v26 = vld [vmem:[%s10427_s3 + $0xe0] ss:$16 sps:$4 sm:$0xff]   ;;  %v7968_v43 = vld [vmem:[%s10427_s3 + $0x108] ss:$16 sps:$4 sm:$0xff]  }
 0x15e   : > { %v7973_v44 = vld [vmem:[%s10427_s3 + $0x124] ss:$16 sps:$4 sm:$0xff]   ;;  %v7976_v46 = vld [vmem:[%s10427_s3 + $0x12c] ss:$16 sps:$4 sm:$0xff]   ;;  %v7971_v34 = vld [vmem:[%s10427_s3 + $0x120] ss:$16 sps:$4 sm:$0xff]  }
 0x15f   : > { %3809 = vmatpush1.bf16.msra.mxu0 %v7851_v57  ;;  %3882 = vmatpush1.bf16.msra.mxu1 %v7854_v58  ;;  %v7895_v57 = vld [vmem:[%s10425_s1 + $0x8a4] ss:$16 sps:$4 sm:$0xff]   ;;  %v7898_v58 = vld [vmem:[%s10425_s1 + $0x8ac] ss:$16 sps:$4 sm:$0xff]   ;;  %v3584_v36 = vsel %vm8632_vm2, %v6653_v39, %v3583_v60  ;;  %v7974_v39 = vld [vmem:[%s10427_s3 + $0x128] ss:$16 sps:$4 sm:$0xff]  }
 0x160   : > { %4181 = vmatprep.subr.bf16.mxu0 %v7861_v63  ;;  %4254 = vmatprep.subr.bf16.mxu1 %v7864_v55  ;;  %v7896_v63 = vld [vmem:[%s10425_s1 + $0x8a8] ss:$16 sps:$4 sm:$0xff]   ;;  %v7903_v55 = vld [vmem:[%s10425_s1 + $0x8c4] ss:$16 sps:$4 sm:$0xff]   ;;  %v7977_v50 = vld [vmem:[%s10427_s3 + $0x140] ss:$16 sps:$4 sm:$0xff]  }
 0x161   : > { %v7983_v60 = vld [vmem:[%s10427_s3 + $0x160] ss:$16 sps:$4 sm:$0xff]  }
 0x162   : > { %3827 = vmatmul.mubr.bf16.vlgmr.msra.gmra.mrb[0].mxu0 %v6686_v62  ;;  %3900 = vmatmul.mubr.bf16.vlgmr.msra.gmra.mrb[0].mxu1 %v6686_v62  ;;  %v7907_v62 = vld [vmem:[%s10425_s1 + $0x8e0] ss:$16 sps:$4 sm:$0xff]  }
 0x163   : > { %4182 = vmatpush1.bf16.msra.mxu0 %v7859_v1  ;;  %4255 = vmatpush1.bf16.msra.mxu1 %v7862_v3  ;;  %v7904_v1 = vld [vmem:[%s10425_s1 + $0x8c8] ss:$16 sps:$4 sm:$0xff]   ;;  %v6689_v3 = vcombine.low %v3580_v59, %v3584_v36  ;;  %v7997_v36 = vld [vmem:[%s10427_s3 + $0x1a4] ss:$16 sps:$4 sm:$0xff]  }
 0x164   : > { %4183 = vmatprep.subr.bf16.mxu0 %v7867_v5  ;;  %4256 = vmatprep.subr.bf16.mxu1 %v7870_v6  ;;  %v7910_v5 = vld [vmem:[%s10425_s1 + $0x8e8] ss:$16 sps:$4 sm:$0xff]   ;;  %v7919_v6 = vld [vmem:[%s10427_s3 + $0x4] ss:$16 sps:$4 sm:$0xff]  }
 0x165   : > { %3836 = vmatprep.mubr.bf16.mxu0 %v8167_v2  ;;  %3909 = vmatprep.mubr.bf16.mxu1 %v8167_v2  ;;  %v7992_v59 = vld [vmem:[%s10427_s3 + $0x188] ss:$16 sps:$4 sm:$0xff]  }
 0x167   : > { %4184 = vmatpush1.bf16.msra.mxu0 %v7865_v15  ;;  %4257 = vmatpush1.bf16.msra.mxu1 %v7868_v16  ;;  %v7920_v15 = vld [vmem:[%s10427_s3 + $0x8] ss:$16 sps:$4 sm:$0xff]   ;;  %v7925_v16 = vld [vmem:[%s10427_s3 + $0x24] ss:$16 sps:$4 sm:$0xff]  }
 0x168   : > { %4185 = vmatprep.subr.bf16.mxu0 %v7875_v29  ;;  %4258 = vmatprep.subr.bf16.mxu1 %v7878_v19  ;;  %v6755_v29 = vcombine.high %v9587_v45, %v9598_v53  ;;  %v7929_v19 = vld [vmem:[%s10427_s3 + $0x40] ss:$16 sps:$4 sm:$0xff]   ;;  %v7940_v45 = vld [vmem:[%s10427_s3 + $0x6c] ss:$16 sps:$4 sm:$0xff]  }
 0x169   : > { %v7935_v53 = vld [vmem:[%s10427_s3 + $0x60] ss:$16 sps:$4 sm:$0xff]  }
 0x16a   : > { %3837 = vmatmul.mubr.bf16.gmra.mrb[4].mxu0 %v6687_v28  ;;  %3910 = vmatmul.mubr.bf16.gmra.mrb[4].mxu1 %v6687_v28  ;;  %v7941_v28 = vld [vmem:[%s10427_s3 + $0x80] ss:$16 sps:$4 sm:$0xff]  }
 0x16b   : > { %4186 = vmatpush1.bf16.msra.mxu0 %v7873_v24  ;;  %4259 = vmatpush1.bf16.msra.mxu1 %v7876_v25  ;;  %v7943_v24 = vld [vmem:[%s10427_s3 + $0x84] ss:$16 sps:$4 sm:$0xff]   ;;  %v7946_v25 = vld [vmem:[%s10427_s3 + $0x8c] ss:$16 sps:$4 sm:$0xff]  }
 0x16c   : > { %4187 = vmatprep.subr.bf16.mxu0 %v7881_v31  ;;  %4260 = vmatprep.subr.bf16.mxu1 %v7884_v32  ;;  %v7944_v31 = vld [vmem:[%s10427_s3 + $0x88] ss:$16 sps:$4 sm:$0xff]   ;;  %v7949_v32 = vld [vmem:[%s10427_s3 + $0xa4] ss:$16 sps:$4 sm:$0xff]  }
 0x16d   : > { %3846 = vmatprep.mubr.bf16.mxu0 %v8167_v2  ;;  %3919 = vmatprep.mubr.bf16.mxu1 %v8167_v2 }
 0x16f   : > { %4188 = vmatpush1.bf16.msra.mxu0 %v7879_v41  ;;  %4261 = vmatpush1.bf16.msra.mxu1 %v7882_v9  ;;  %v7961_v41 = vld [vmem:[%s10427_s3 + $0xe4] ss:$16 sps:$4 sm:$0xff]   ;;  %v7962_v9 = vld [vmem:[%s10427_s3 + $0xe8] ss:$16 sps:$4 sm:$0xff]  }
 0x170   : > { %4189 = vmatprep.subr.bf16.mxu0 %v7889_v13  ;;  %4262 = vmatprep.subr.bf16.mxu1 %v7892_v38  ;;  %v7970_v13 = vld [vmem:[%s10427_s3 + $0x10c] ss:$16 sps:$4 sm:$0xff]   ;;  %v7965_v38 = vld [vmem:[%s10427_s3 + $0x100] ss:$16 sps:$4 sm:$0xff]  }
 0x172   : > { %3847 = vmatmul.mubr.bf16.gmra.mrb[8].mxu0 %v6688_v54  ;;  %3920 = vmatmul.mubr.bf16.gmra.mrb[8].mxu1 %v6688_v54  ;;  %v7980_v54 = vld [vmem:[%s10427_s3 + $0x148] ss:$16 sps:$4 sm:$0xff]  }
 0x173   : > { %4190 = vmatpush1.bf16.msra.mxu0 %v7887_v47  ;;  %4263 = vmatpush1.bf16.msra.mxu1 %v7890_v30  ;;  %v7979_v47 = vld [vmem:[%s10427_s3 + $0x144] ss:$16 sps:$4 sm:$0xff]   ;;  %v7982_v30 = vld [vmem:[%s10427_s3 + $0x14c] ss:$16 sps:$4 sm:$0xff]  }
 0x174   : > { %4191 = vmatprep.subr.bf16.mxu0 %v7895_v57  ;;  %4264 = vmatprep.subr.bf16.mxu1 %v7898_v58  ;;  %v7985_v57 = vld [vmem:[%s10427_s3 + $0x164] ss:$16 sps:$4 sm:$0xff]   ;;  %v7988_v58 = vld [vmem:[%s10427_s3 + $0x16c] ss:$16 sps:$4 sm:$0xff]  }
 0x175   : > { %3856 = vmatprep.mubr.bf16.mxu0 %v8167_v2  ;;  %3929 = vmatprep.mubr.bf16.mxu1 %v8167_v2 }
 0x177   : > { %4192 = vmatpush1.bf16.msra.mxu0 %v7893_v61  ;;  %4265 = vmatpush1.bf16.msra.mxu1 %v7896_v63  ;;  %v7986_v61 = vld [vmem:[%s10427_s3 + $0x168] ss:$16 sps:$4 sm:$0xff]   ;;  %v7991_v63 = vld [vmem:[%s10427_s3 + $0x184] ss:$16 sps:$4 sm:$0xff]  }
 0x178   : > { %4193 = vmatprep.subr.bf16.mxu0 %v7903_v55  ;;  %4266 = vmatprep.subr.bf16.mxu1 %v7906_v56  ;;  %v7994_v55 = vld [vmem:[%s10427_s3 + $0x18c] ss:$16 sps:$4 sm:$0xff]   ;;  %v7989_v56 = vld [vmem:[%s10427_s3 + $0x180] ss:$16 sps:$4 sm:$0xff]  }
 0x17a   : > { %3857 = vmatmul.mubr.bf16.gmra.mrb[12].mxu0 %v6689_v3  ;;  %3930 = vmatmul.mubr.bf16.gmra.mrb[12].mxu1 %v6689_v3  ;;  %v7998_v3 = vld [vmem:[%s10427_s3 + $0x1a8] ss:$16 sps:$4 sm:$0xff]  }
 0x17b   : > { %4194 = vmatpush1.bf16.msra.mxu0 %v7901_v0  ;;  %4267 = vmatpush1.bf16.msra.mxu1 %v7904_v1  ;;  %v8000_v0 = vld [vmem:[%s10427_s3 + $0x1ac] ss:$16 sps:$4 sm:$0xff]   ;;  %v7995_v1 = vld [vmem:[%s10427_s3 + $0x1a0] ss:$16 sps:$4 sm:$0xff]  }
 0x17c   : > { %4195 = vmatprep.subr.bf16.mxu0 %v7909_v42  ;;  %4268 = vmatprep.subr.bf16.mxu1 %v7912_v4  ;;  %v8003_v42 = vld [vmem:[%s10427_s3 + $0x1c4] ss:$16 sps:$4 sm:$0xff]   ;;  %v8006_v4 = vld [vmem:[%s10427_s3 + $0x1cc] ss:$16 sps:$4 sm:$0xff]  }
 0x17d   : > { %4213 = vmatprep.mubr.bf16.mxu0 %v8167_v2  ;;  %4286 = vmatprep.mubr.bf16.mxu1 %v8167_v2 }
 0x17f   : > { %4196 = vmatpush1.bf16.msra.mxu0 %v7907_v62  ;;  %4269 = vmatpush1.bf16.msra.mxu1 %v7910_v5  ;;  %v8001_v62 = vld [vmem:[%s10427_s3 + $0x1c0] ss:$16 sps:$4 sm:$0xff]   ;;  %v8004_v5 = vld [vmem:[%s10427_s3 + $0x1c8] ss:$16 sps:$4 sm:$0xff]  }
 0x180   : > { %5251 = vmatprep.subr.bf16.mxu0 %v7919_v6  ;;  %5397 = vmatprep.subr.bf16.mxu1 %v7922_v7  ;;  %v8009_v6 = vld [vmem:[%s10427_s3 + $0x1e4] ss:$16 sps:$4 sm:$0xff]   ;;  %v8012_v7 = vld [vmem:[%s10427_s3 + $0x1ec] ss:$16 sps:$4 sm:$0xff]  }
 0x182   : > { %4214 = vmatmul.mubr.bf16.vlgmr.msra.gmra.mrb[0].mxu0 %v6754_v22  ;;  %4287 = vmatmul.mubr.bf16.vlgmr.msra.gmra.mrb[0].mxu1 %v6754_v22  ;;  %v8007_v22 = vld [vmem:[%s10427_s3 + $0x1e0] ss:$16 sps:$4 sm:$0xff]  }
 0x183   : > { %4223 = vmatprep.mubr.bf16.mxu0 %v8167_v2  ;;  %4296 = vmatprep.mubr.bf16.mxu1 %v8167_v2 }
 0x184   : > { %5252 = vmatpush1.bf16.msra.mxu0 %v7917_v14  ;;  %5398 = vmatpush1.bf16.msra.mxu1 %v7920_v15  ;;  %v8010_v14 = vld [vmem:[%s10427_s3 + $0x1e8] ss:$16 sps:$4 sm:$0xff]   ;;  %v8015_v15 = vld [vmem:[%s10427_s3 + $0x204] ss:$16 sps:$4 sm:$0xff]  }
 0x185   : > { %5253 = vmatprep.subr.bf16.mxu0 %v7925_v16  ;;  %5399 = vmatprep.subr.bf16.mxu1 %v7928_v17  ;;  %v8018_v16 = vld [vmem:[%s10427_s3 + $0x20c] ss:$16 sps:$4 sm:$0xff]   ;;  %v4361_v17 = vlaneseq }
 0x188   : > { %5254 = vmatpush1.bf16.msra.mxu0 %v7923_v33  ;;  %5400 = vmatpush1.bf16.msra.mxu1 %v7926_v49  ;;  %v9976_v33 = vshrl.u32 %v4361_v17, 7 }
 0x189   : > { %5255 = vmatprep.subr.bf16.mxu0 %v7931_v18  ;;  %5401 = vmatprep.subr.bf16.mxu1 %v7934_v27  ;;  %v4359_v27 = vld [vmem:[%s10426_s2] sm:$0xf] }
 0x18a   : > { %4224 = vmatmul.mubr.bf16.gmra.mrb[4].mxu0 %v6755_v29  ;;  %4297 = vmatmul.mubr.bf16.gmra.mrb[4].mxu1 %v6755_v29  ;;  %v4363_v49 = vsub.s32 0, %v9976_v33  ;;  %v4371_v18 = vsub.s32 2, %v9976_v33  ;;  %v4367_v29 = vsub.s32 1, %v9976_v33 }
 0x18b   : > { %4233 = vmatprep.mubr.bf16.mxu0 %v8167_v2  ;;  %4306 = vmatprep.mubr.bf16.mxu1 %v8167_v2 }
 0x18c   : > { %5256 = vmatpush1.bf16.msra.mxu0 %v7929_v19  ;;  %5402 = vmatpush1.bf16.msra.mxu1 %v7932_v20  ;;  %v4375_v19 = vsub.s32 3, %v9976_v33  ;;  %v9987_v20 = vrot.slane %v4359_v27, %v4363_v49 }
 0x18d   : > { %5257 = vmatprep.subr.bf16.mxu0 %v7937_v48  ;;  %5403 = vmatprep.subr.bf16.mxu1 %v7940_v45  ;;  %v9991_v48 = vrot.slane %v4359_v27, %v4371_v18  ;;  %v9995_v45 = vrot.slane %v4359_v27, %v4367_v29 }
 0x190   : > { %5258 = vmatpush1.bf16.msra.mxu0 %v7935_v53  ;;  %5404 = vmatpush1.bf16.msra.mxu1 %v7938_v21  ;;  %v9999_v53 = vrot.slane %v4359_v27, %v4375_v19 }
 0x191   : > { %5259 = vmatprep.subr.bf16.mxu0 %v7943_v24  ;;  %5405 = vmatprep.subr.bf16.mxu1 %v7946_v25 }
 0x192   : > { %4234 = vmatmul.mubr.bf16.gmra.mrb[8].mxu0 %v6756_v51  ;;  %4307 = vmatmul.mubr.bf16.gmra.mrb[8].mxu1 %v6756_v51 }
 0x193   : > { %4243 = vmatprep.mubr.bf16.mxu0 %v8167_v2  ;;  %4316 = vmatprep.mubr.bf16.mxu1 %v8167_v2  ;;  %v7958_v2 = vld [vmem:[%s10427_s3 + $0xcc] ss:$16 sps:$4 sm:$0xff]  }
 0x194   : > { %5260 = vmatpush1.bf16.msra.mxu0 %v7941_v28  ;;  %5406 = vmatpush1.bf16.msra.mxu1 %v7944_v31 }
 0x195   : > { %5261 = vmatprep.subr.bf16.mxu0 %v7949_v32  ;;  %5407 = vmatprep.subr.bf16.mxu1 %v7952_v8 }
 0x198   : > { %5262 = vmatpush1.bf16.msra.mxu0 %v7947_v12  ;;  %5408 = vmatpush1.bf16.msra.mxu1 %v7950_v52 }
 0x199   : > { %5263 = vmatprep.subr.bf16.mxu0 %v7955_v35  ;;  %5409 = vmatprep.subr.bf16.mxu1 %v7958_v2 }
 0x19a   : > { %4244 = vmatmul.mubr.bf16.gmra.mrb[12].mxu0 %v6757_v37  ;;  %4317 = vmatmul.mubr.bf16.gmra.mrb[12].mxu1 %v6757_v37 }
 0x19c   : > { %5264 = vmatpush1.bf16.msra.mxu0 %v7953_v11  ;;  %5410 = vmatpush1.bf16.msra.mxu1 %v7956_v40 }
 0x19d   : > { %5265 = vmatprep.subr.bf16.mxu0 %v7961_v41  ;;  %5411 = vmatprep.subr.bf16.mxu1 %v7964_v23 }
 0x1a0   : > { %5266 = vmatpush1.bf16.msra.mxu0 %v7959_v26  ;;  %5412 = vmatpush1.bf16.msra.mxu1 %v7962_v9 }
 0x1a1   : > { %5267 = vmatprep.subr.bf16.mxu0 %v7967_v10  ;;  %5413 = vmatprep.subr.bf16.mxu1 %v7970_v13 }
 0x1a4   : > { %5268 = vmatpush1.bf16.msra.mxu0 %v7965_v38  ;;  %5414 = vmatpush1.bf16.msra.mxu1 %v7968_v43 }
 0x1a5   : > { %5269 = vmatprep.subr.bf16.mxu0 %v7973_v44  ;;  %5415 = vmatprep.subr.bf16.mxu1 %v7976_v46 }
 0x1a8   : > { %5270 = vmatpush1.bf16.msra.mxu0 %v7971_v34  ;;  %5416 = vmatpush1.bf16.msra.mxu1 %v7974_v39 }
 0x1a9   : > { %5271 = vmatprep.subr.bf16.mxu0 %v7979_v47  ;;  %5417 = vmatprep.subr.bf16.mxu1 %v7982_v30 }
 0x1ac   : > { %5272 = vmatpush1.bf16.msra.mxu0 %v7977_v50  ;;  %5418 = vmatpush1.bf16.msra.mxu1 %v7980_v54  ;;  %v8013_v54 = vld [vmem:[%s10427_s3 + $0x200] ss:$16 sps:$4 sm:$0xff]  }
 0x1ad   : > { %5273 = vmatprep.subr.bf16.mxu0 %v7985_v57  ;;  %5419 = vmatprep.subr.bf16.mxu1 %v7988_v58  ;;  %v8016_v57 = vld [vmem:[%s10427_s3 + $0x208] ss:$16 sps:$4 sm:$0xff]  }
 0x1b0   : > { %5274 = vmatpush1.bf16.msra.mxu0 %v7983_v60  ;;  %5420 = vmatpush1.bf16.msra.mxu1 %v7986_v61 }
 0x1b1   : > { %5275 = vmatprep.subr.bf16.mxu0 %v7991_v63  ;;  %5421 = vmatprep.subr.bf16.mxu1 %v7994_v55  ;;  %v8021_v55 = vld [vmem:[%s10427_s3 + $0x224] ss:$16 sps:$4 sm:$0xff]  }
 0x1b4   : > { %5276 = vmatpush1.bf16.msra.mxu0 %v7989_v56  ;;  %5422 = vmatpush1.bf16.msra.mxu1 %v7992_v59  ;;  %v8024_v56 = vld [vmem:[%s10427_s3 + $0x22c] ss:$16 sps:$4 sm:$0xff]  }
 0x1b5   : > { %5277 = vmatprep.subr.bf16.mxu0 %v7997_v36  ;;  %5423 = vmatprep.subr.bf16.mxu1 %v8000_v0 }
 0x1b8   : > { %5278 = vmatpush1.bf16.msra.mxu0 %v7995_v1  ;;  %5424 = vmatpush1.bf16.msra.mxu1 %v7998_v3 }
 0x1b9   : > { %5279 = vmatprep.subr.bf16.mxu0 %v8003_v42  ;;  %5425 = vmatprep.subr.bf16.mxu1 %v8006_v4 }
 0x1bc   : > { %5280 = vmatpush1.bf16.msra.mxu0 %v8001_v62  ;;  %5426 = vmatpush1.bf16.msra.mxu1 %v8004_v5 }
 0x1bd   : > { %5281 = vmatprep.subr.bf16.mxu0 %v8009_v6  ;;  %5427 = vmatprep.subr.bf16.mxu1 %v8012_v7  ;;  %v8019_v7 = vld [vmem:[%s10427_s3 + $0x220] ss:$16 sps:$4 sm:$0xff]  }
 0x1c0   : > { %5282 = vmatpush1.bf16.msra.mxu0 %v8007_v22  ;;  %5428 = vmatpush1.bf16.msra.mxu1 %v8010_v14  ;;  %v8022_v22 = vld [vmem:[%s10427_s3 + $0x228] ss:$16 sps:$4 sm:$0xff]   ;;  %v8027_v14 = vld [vmem:[%s10427_s3 + $0x244] ss:$16 sps:$4 sm:$0xff]  }
 0x1c1   : > { %5324 = vmatprep.subr.bf16.mxu0 %v8015_v15  ;;  %5470 = vmatprep.subr.bf16.mxu1 %v8018_v16 }
 0x255   : > { %v4215_v21 = vpop.f32.mrb[0].mxu0  ;;  %v4288_v24 = vpop.f32.mrb[0].mxu1 }
 0x256   : > { %v4381_v25 = vadd.f32 %v9987_v20, %v4215_v21  ;;  %v4383_v51 = vadd.f32 %v9991_v48, %v4288_v24  ;;  %v4217_v28 = vpop.f32.mrb[1].mxu0  ;;  %v4290_v31 = vpop.f32.mrb[1].mxu1  ;;  %v8030_v21 = vld [vmem:[%s10427_s3 + $0x24c] ss:$16 sps:$4 sm:$0xff]  }
 0x257   : > { %v4382_v32 = vadd.f32 %v9995_v45, %v4217_v28  ;;  %v4384_v8 = vadd.f32 %v9999_v53, %v4290_v31  ;;  %v4219_v12 = vpop.f32.mrb[2].mxu0  ;;  %v4292_v52 = vpop.f32.mrb[2].mxu1 }
 0x258   : > { %v4385_v35 = vadd.f32 %v9987_v20, %v4219_v12  ;;  %v4387_v2 = vadd.f32 %v9991_v48, %v4292_v52  ;;  %v4221_v37 = vpop.f32.mrb[3].mxu0  ;;  %v4294_v11 = vpop.f32.mrb[3].mxu1  ;;  %v4413_v23 = vmax.f32 %v4381_v25, 0.0  ;;  %v4415_v26 = vmax.f32 %v4383_v51, 0.0 }
 0x259   : > { %v4386_v40 = vadd.f32 %v9995_v45, %v4221_v37  ;;  %v4388_v41 = vadd.f32 %v9999_v53, %v4294_v11  ;;  %v4414_v13 = vmax.f32 %v4382_v32, 0.0  ;;  %v4416_v38 = vmax.f32 %v4384_v8, 0.0  ;;  %v8028_v37 = vld [vmem:[%s10427_s3 + $0x248] ss:$16 sps:$4 sm:$0xff]  }
 0x25a   : > { %v4417_v9 = vmax.f32 %v4385_v35, 0.0  ;;  %v4419_v10 = vmax.f32 %v4387_v2, 0.0  ;;  %v8025_v2 = vld [vmem:[%s10427_s3 + $0x240] ss:$16 sps:$4 sm:$0xff]  }
 0x25b   : > { %v4418_v43 = vmax.f32 %v4386_v40, 0.0  ;;  %v4420_v44 = vmax.f32 %v4388_v41, 0.0 }
 0x25c   : > { %v4445_v46 = vpack.c.bf16 %v4417_v9, %v4413_v23  ;;  %v10009_v34 = vpack.c.bf16 %v4419_v10, %v4415_v26  ;;  %v8033_v26 = vld [vmem:[%s10427_s3 + $0x264] ss:$16 sps:$4 sm:$0xff]   ;;  %v8036_v9 = vld [vmem:[%s10427_s3 + $0x26c] ss:$16 sps:$4 sm:$0xff]  }
 0x25d   : > { %v4446_v39 = vpack.c.bf16 %v4418_v43, %v4414_v13  ;;  %v10011_v47 = vpack.c.bf16 %v4420_v44, %v4416_v38  ;;  %v4225_v30 = vpop.f32.mrb[4].mxu0  ;;  %v4298_v50 = vpop.f32.mrb[4].mxu1 }
 0x25e   : > { %v4389_v58 = vadd.f32 %v9987_v20, %v4225_v30  ;;  %v4391_v60 = vadd.f32 %v9991_v48, %v4298_v50  ;;  %v4227_v61 = vpop.f32.mrb[5].mxu0  ;;  %v4300_v63 = vpop.f32.mrb[5].mxu1 }
 0x25f   : > { %v4390_v59 = vadd.f32 %v9995_v45, %v4227_v61  ;;  %v4392_v36 = vadd.f32 %v9999_v53, %v4300_v63  ;;  %v4229_v0 = vpop.f32.mrb[6].mxu0  ;;  %v4302_v1 = vpop.f32.mrb[6].mxu1  ;;  %5283 = vmatprep.mubr.bf16.mxu0 %v4446_v39  ;;  %5429 = vmatprep.mubr.bf16.mxu1 %v4446_v39 }
 0x260   : > { %v4393_v3 = vadd.f32 %v9987_v20, %v4229_v0  ;;  %v4395_v42 = vadd.f32 %v9991_v48, %v4302_v1  ;;  %v4231_v4 = vpop.f32.mrb[7].mxu0  ;;  %v4304_v62 = vpop.f32.mrb[7].mxu1  ;;  %5284 = vmatmul.mubr.bf16.vlgmr.msra.gmra.mrb[16].mxu0 %v4445_v46  ;;  %5430 = vmatmul.mubr.bf16.vlgmr.msra.gmra.mrb[16].mxu1 %v4445_v46  ;;  %v4421_v15 = vmax.f32 %v4389_v58, 0.0  ;;  %v4423_v16 = vmax.f32 %v4391_v60, 0.0  ;;  %v8034_v58 = vld [vmem:[%s10427_s3 + $0x268] ss:$16 sps:$4 sm:$0xff]  }
 0x261   : > { %v4394_v5 = vadd.f32 %v9995_v45, %v4231_v4  ;;  %v4396_v6 = vadd.f32 %v9999_v53, %v4304_v62  ;;  %5325 = vmatpush1.bf16.msra.mxu0 %v8013_v54  ;;  %5471 = vmatpush1.bf16.msra.mxu1 %v8016_v57  ;;  %v4422_v24 = vmax.f32 %v4390_v59, 0.0  ;;  %v4424_v25 = vmax.f32 %v4392_v36, 0.0  ;;  %v8031_v57 = vld [vmem:[%s10427_s3 + $0x260] ss:$16 sps:$4 sm:$0xff]   ;;  %v8039_v60 = vld [vmem:[%s10427_s3 + $0x284] ss:$16 sps:$4 sm:$0xff]  }
 0x262   : > { %v4425_v17 = vmax.f32 %v4393_v3, 0.0  ;;  %v4427_v27 = vmax.f32 %v4395_v42, 0.0  ;;  %5326 = vmatprep.subr.bf16.mxu0 %v8021_v55  ;;  %5472 = vmatprep.subr.bf16.mxu1 %v8024_v56  ;;  %v8042_v59 = vld [vmem:[%s10427_s3 + $0x28c] ss:$16 sps:$4 sm:$0xff]  }
 0x263   : > { %v4426_v51 = vmax.f32 %v4394_v5, 0.0  ;;  %v4428_v28 = vmax.f32 %v4396_v6, 0.0 }
 0x264   : > { %v4449_v31 = vpack.c.bf16 %v4425_v17, %v4421_v15  ;;  %v10045_v32 = vpack.c.bf16 %v4427_v27, %v4423_v16 }
 0x265   : > { %v4450_v8 = vpack.c.bf16 %v4426_v51, %v4422_v24  ;;  %v10047_v12 = vpack.c.bf16 %v4428_v28, %v4424_v25  ;;  %5327 = vmatpush1.bf16.msra.mxu0 %v8019_v7  ;;  %5473 = vmatpush1.bf16.msra.mxu1 %v8022_v22  ;;  %v4235_v52 = vpop.f32.mrb[8].mxu0  ;;  %v4308_v35 = vpop.f32.mrb[8].mxu1  ;;  %v8037_v22 = vld [vmem:[%s10427_s3 + $0x280] ss:$16 sps:$4 sm:$0xff]   ;;  %v8048_v24 = vld [vmem:[%s10427_s3 + $0x2ac] ss:$16 sps:$4 sm:$0xff]  }
 0x266   : > { %v4397_v11 = vadd.f32 %v9987_v20, %v4235_v52  ;;  %v4399_v40 = vadd.f32 %v9991_v48, %v4308_v35  ;;  %v4237_v41 = vpop.f32.mrb[9].mxu0  ;;  %v4310_v23 = vpop.f32.mrb[9].mxu1  ;;  %5328 = vmatprep.subr.bf16.mxu0 %v8027_v14  ;;  %5474 = vmatprep.subr.bf16.mxu1 %v8030_v21  ;;  %v8040_v14 = vld [vmem:[%s10427_s3 + $0x288] ss:$16 sps:$4 sm:$0xff]   ;;  %v8045_v21 = vld [vmem:[%s10427_s3 + $0x2a4] ss:$16 sps:$4 sm:$0xff]  }
 0x267   : > { %v4398_v10 = vadd.f32 %v9995_v45, %v4237_v41  ;;  %v4400_v13 = vadd.f32 %v9999_v53, %v4310_v23  ;;  %v4239_v38 = vpop.f32.mrb[10].mxu0  ;;  %v4312_v43 = vpop.f32.mrb[10].mxu1  ;;  %5293 = vmatprep.mubr.bf16.mxu0 %v4450_v8  ;;  %5439 = vmatprep.mubr.bf16.mxu1 %v4450_v8 }
 0x268   : > { %v4401_v44 = vadd.f32 %v9987_v20, %v4239_v38  ;;  %v4403_v46 = vadd.f32 %v9991_v48, %v4312_v43  ;;  %v4241_v39 = vpop.f32.mrb[11].mxu0  ;;  %v4314_v30 = vpop.f32.mrb[11].mxu1  ;;  %5294 = vmatmul.mubr.bf16.gmra.mrb[20].mxu0 %v4449_v31  ;;  %5440 = vmatmul.mubr.bf16.gmra.mrb[20].mxu1 %v4449_v31  ;;  %v4429_v61 = vmax.f32 %v4397_v11, 0.0  ;;  %v4431_v63 = vmax.f32 %v4399_v40, 0.0  ;;  %v8043_v40 = vld [vmem:[%s10427_s3 + $0x2a0] ss:$16 sps:$4 sm:$0xff]  }
 0x269   : > { %v4402_v50 = vadd.f32 %v9995_v45, %v4241_v39  ;;  %v4404_v54 = vadd.f32 %v9999_v53, %v4314_v30  ;;  %5329 = vmatpush1.bf16.msra.mxu0 %v8025_v2  ;;  %5475 = vmatpush1.bf16.msra.mxu1 %v8028_v37  ;;  %v4430_v36 = vmax.f32 %v4398_v10, 0.0  ;;  %v4432_v0 = vmax.f32 %v4400_v13, 0.0  ;;  %v8049_v30 = vld [vmem:[%s10427_s3 + $0x2c0] ss:$16 sps:$4 sm:$0xff]  }
 0x26a   : > { %v4433_v55 = vmax.f32 %v4401_v44, 0.0  ;;  %v4435_v56 = vmax.f32 %v4403_v46, 0.0  ;;  %5330 = vmatprep.subr.bf16.mxu0 %v8033_v26  ;;  %5476 = vmatprep.subr.bf16.mxu1 %v8036_v9 }
 0x26b   : > { %v4434_v1 = vmax.f32 %v4402_v50, 0.0  ;;  %v4436_v3 = vmax.f32 %v4404_v54, 0.0  ;;  %v8052_v50 = vld [vmem:[%s10427_s3 + $0x2c8] ss:$16 sps:$4 sm:$0xff]   ;;  %v8057_v54 = vld [vmem:[%s10427_s3 + $0x2e4] ss:$16 sps:$4 sm:$0xff]  }
 0x26c   : > { %v4453_v42 = vpack.c.bf16 %v4433_v55, %v4429_v61  ;;  %v10081_v4 = vpack.c.bf16 %v4435_v56, %v4431_v63  ;;  %v8063_v61 = vld [vmem:[%s10427_s3 + $0x304] ss:$16 sps:$4 sm:$0xff]   ;;  %v8066_v63 = vld [vmem:[%s10427_s3 + $0x30c] ss:$16 sps:$4 sm:$0xff]   ;;  %v8061_v55 = vld [vmem:[%s10427_s3 + $0x300] ss:$16 sps:$4 sm:$0xff]  }
 0x26d   : > { %v4454_v62 = vpack.c.bf16 %v4434_v1, %v4430_v36  ;;  %v10083_v5 = vpack.c.bf16 %v4436_v3, %v4432_v0  ;;  %5331 = vmatpush1.bf16.msra.mxu0 %v8031_v57  ;;  %5477 = vmatpush1.bf16.msra.mxu1 %v8034_v58  ;;  %v4245_v6 = vpop.f32.mrb[12].mxu0  ;;  %v4318_v7 = vpop.f32.mrb[12].mxu1  ;;  %v8060_v57 = vld [vmem:[%s10427_s3 + $0x2ec] ss:$16 sps:$4 sm:$0xff]   ;;  %v8055_v58 = vld [vmem:[%s10427_s3 + $0x2e0] ss:$16 sps:$4 sm:$0xff]  }
 0x26e   : > { %v4405_v15 = vadd.f32 %v9987_v20, %v4245_v6  ;;  %v4407_v16 = vadd.f32 %v9991_v48, %v4318_v7  ;;  %v4247_v17 = vpop.f32.mrb[13].mxu0  ;;  %v4320_v27 = vpop.f32.mrb[13].mxu1  ;;  %5332 = vmatprep.subr.bf16.mxu0 %v8039_v60  ;;  %5478 = vmatprep.subr.bf16.mxu1 %v8042_v59  ;;  %v8058_v60 = vld [vmem:[%s10427_s3 + $0x2e8] ss:$16 sps:$4 sm:$0xff]   ;;  %v8069_v56 = vld [vmem:[%s10427_s3 + $0x324] ss:$16 sps:$4 sm:$0xff]  }
 0x26f   : > { %v4406_v25 = vadd.f32 %v9995_v45, %v4247_v17  ;;  %v4408_v51 = vadd.f32 %v9999_v53, %v4320_v27  ;;  %v4249_v28 = vpop.f32.mrb[14].mxu0  ;;  %v4322_v31 = vpop.f32.mrb[14].mxu1  ;;  %5303 = vmatprep.mubr.bf16.mxu0 %v4454_v62  ;;  %5449 = vmatprep.mubr.bf16.mxu1 %v4454_v62  ;;  %v8072_v59 = vld [vmem:[%s10427_s3 + $0x32c] ss:$16 sps:$4 sm:$0xff]   ;;  %v8067_v36 = vld [vmem:[%s10427_s3 + $0x320] ss:$16 sps:$4 sm:$0xff]  }
 0x270   : > { %v4409_v8 = vadd.f32 %v9987_v20, %v4249_v28  ;;  %v4411_v52 = vadd.f32 %v9991_v48, %v4322_v31  ;;  %v4251_v35 = vpop.f32.mrb[15].mxu0  ;;  %v4324_v2 = vpop.f32.mrb[15].mxu1  ;;  %5304 = vmatmul.mubr.bf16.gmra.mrb[24].mxu0 %v4453_v42  ;;  %5450 = vmatmul.mubr.bf16.gmra.mrb[24].mxu1 %v4453_v42  ;;  %v8046_v20 = vld [vmem:[%s10427_s3 + $0x2a8] ss:$16 sps:$4 sm:$0xff]   ;;  %v8051_v48 = vld [vmem:[%s10427_s3 + $0x2c4] ss:$16 sps:$4 sm:$0xff]  }
 0x271   : > { %v4410_v37 = vadd.f32 %v9995_v45, %v4251_v35  ;;  %v4412_v11 = vadd.f32 %v9999_v53, %v4324_v2  ;;  %5333 = vmatpush1.bf16.msra.mxu0 %v8037_v22  ;;  %5479 = vmatpush1.bf16.msra.mxu1 %v8040_v14  ;;  %v4437_v41 = vmax.f32 %v4405_v15, 0.0  ;;  %v4439_v23 = vmax.f32 %v4407_v16, 0.0  ;;  %v8054_v53 = vld [vmem:[%s10427_s3 + $0x2cc] ss:$16 sps:$4 sm:$0xff]   ;;  %v8070_v0 = vld [vmem:[%s10427_s3 + $0x328] ss:$16 sps:$4 sm:$0xff]  }
 0x272   : > { %v4441_v26 = vmax.f32 %v4409_v8, 0.0  ;;  %v4443_v45 = vmax.f32 %v4411_v52, 0.0  ;;  %5334 = vmatprep.subr.bf16.mxu0 %v8045_v21  ;;  %5480 = vmatprep.subr.bf16.mxu1 %v8048_v24  ;;  %v4438_v9 = vmax.f32 %v4406_v25, 0.0  ;;  %v4440_v10 = vmax.f32 %v4408_v51, 0.0  ;;  %v8075_v1 = vld [vmem:[%s10427_s3 + $0x344] ss:$16 sps:$4 sm:$0xff]  }
 0x273   : > { %v4442_v13 = vmax.f32 %v4410_v37, 0.0  ;;  %v4444_v38 = vmax.f32 %v4412_v11, 0.0  ;;  %v8078_v3 = vld [vmem:[%s10427_s3 + $0x34c] ss:$16 sps:$4 sm:$0xff]   ;;  %v8073_v42 = vld [vmem:[%s10427_s3 + $0x340] ss:$16 sps:$4 sm:$0xff]  }
 0x274   : > { %v4457_v43 = vpack.c.bf16 %v4441_v26, %v4437_v41  ;;  %v10117_v44 = vpack.c.bf16 %v4443_v45, %v4439_v23  ;;  %v8076_v62 = vld [vmem:[%s10427_s3 + $0x348] ss:$16 sps:$4 sm:$0xff]   ;;  %v8081_v6 = vld [vmem:[%s10427_s3 + $0x364] ss:$16 sps:$4 sm:$0xff]   ;;  %v8084_v7 = vld [vmem:[%s10427_s3 + $0x36c] ss:$16 sps:$4 sm:$0xff]  }
 0x275   : > { %v4458_v46 = vpack.c.bf16 %v4442_v13, %v4438_v9  ;;  %v10119_v39 = vpack.c.bf16 %v4444_v38, %v4440_v10  ;;  %5335 = vmatpush1.bf16.msra.mxu0 %v8043_v40  ;;  %5481 = vmatpush1.bf16.msra.mxu1 %v8046_v20  ;;  %v8079_v22 = vld [vmem:[%s10427_s3 + $0x360] ss:$16 sps:$4 sm:$0xff]   ;;  %v8082_v14 = vld [vmem:[%s10427_s3 + $0x368] ss:$16 sps:$4 sm:$0xff]   ;;  %v8087_v15 = vld [vmem:[%s10427_s3 + $0x384] ss:$16 sps:$4 sm:$0xff]  }
 0x276   : > { %5336 = vmatprep.subr.bf16.mxu0 %v8051_v48  ;;  %5482 = vmatprep.subr.bf16.mxu1 %v8054_v53  ;;  %v8090_v16 = vld [vmem:[%s10427_s3 + $0x38c] ss:$16 sps:$4 sm:$0xff]   ;;  %v8085_v17 = vld [vmem:[%s10427_s3 + $0x380] ss:$16 sps:$4 sm:$0xff]   ;;  %v8088_v27 = vld [vmem:[%s10427_s3 + $0x388] ss:$16 sps:$4 sm:$0xff]  }
 0x277   : > { %5313 = vmatprep.mubr.bf16.mxu0 %v4458_v46  ;;  %5459 = vmatprep.mubr.bf16.mxu1 %v4458_v46  ;;  %v8093_v21 = vld [vmem:[%s10427_s3 + $0x3a4] ss:$16 sps:$4 sm:$0xff]   ;;  %v8096_v24 = vld [vmem:[%s10427_s3 + $0x3ac] ss:$16 sps:$4 sm:$0xff]   ;;  %v8091_v25 = vld [vmem:[%s10427_s3 + $0x3a0] ss:$16 sps:$4 sm:$0xff]  }
 0x278   : > { %5314 = vmatmul.mubr.bf16.gmra.mrb[28].mxu0 %v4457_v43  ;;  %5460 = vmatmul.mubr.bf16.gmra.mrb[28].mxu1 %v4457_v43  ;;  %v8094_v51 = vld [vmem:[%s10427_s3 + $0x3a8] ss:$16 sps:$4 sm:$0xff]   ;;  %v8099_v28 = vld [vmem:[%s10427_s3 + $0x3c4] ss:$16 sps:$4 sm:$0xff]   ;;  %v8102_v31 = vld [vmem:[%s10427_s3 + $0x3cc] ss:$16 sps:$4 sm:$0xff]  }
 0x279   : > { %5337 = vmatpush1.bf16.msra.mxu0 %v8049_v30  ;;  %5483 = vmatpush1.bf16.msra.mxu1 %v8052_v50  ;;  %v8097_v8 = vld [vmem:[%s10427_s3 + $0x3c0] ss:$16 sps:$4 sm:$0xff]   ;;  %v8100_v52 = vld [vmem:[%s10427_s3 + $0x3c8] ss:$16 sps:$4 sm:$0xff]   ;;  %v8105_v35 = vld [vmem:[%s10427_s3 + $0x3e4] ss:$16 sps:$4 sm:$0xff]  }
 0x27a   : > { %5356 = vmatprep.mubr.bf16.mxu0 %v10011_v47  ;;  %5502 = vmatprep.mubr.bf16.mxu1 %v10011_v47  ;;  %v8064_v47 = vld [vmem:[%s10427_s3 + $0x308] ss:$16 sps:$4 sm:$0xff]   ;;  %v8108_v2 = vld [vmem:[%s10427_s3 + $0x3ec] ss:$16 sps:$4 sm:$0xff]   ;;  %v8103_v37 = vld [vmem:[%s10427_s3 + $0x3e0] ss:$16 sps:$4 sm:$0xff]  }
 0x27b   : > { %5338 = vmatprep.subr.bf16.mxu0 %v8057_v54  ;;  %5484 = vmatprep.subr.bf16.mxu1 %v8060_v57  ;;  %v8106_v11 = vld [vmem:[%s10427_s3 + $0x3e8] ss:$16 sps:$4 sm:$0xff]   ;;  %v8109_v40 = vld [vmem:[%s10429_s5 + $0x40] sm:$0xff]   ;;  %v8119_v9 = vld [vmem:[%s10429_s5 + $0x10] sm:$0xff]  }
 0x27c   : > { %v8110_v20 = vld [vmem:[%s10429_s5 + $0xc0] sm:$0xff]   ;;  %v8113_v23 = vld [vmem:[%s10429_s5 + $0x48] sm:$0xff]   ;;  %v8120_v10 = vld [vmem:[%s10429_s5 + $0x90] sm:$0xff]  }
 0x27d   : > { %5339 = vmatpush1.bf16.msra.mxu0 %v8055_v58  ;;  %5485 = vmatpush1.bf16.msra.mxu1 %v8058_v60  ;;  %v8111_v48 = vld [vmem:[%s10429_s5] sm:$0xff]   ;;  %v8114_v26 = vld [vmem:[%s10429_s5 + $0xc8] sm:$0xff]   ;;  %v8121_v13 = vld [vmem:[%s10429_s5 + $0x58] sm:$0xff]  }
 0x27e   : > { %5340 = vmatprep.subr.bf16.mxu0 %v8063_v61  ;;  %5486 = vmatprep.subr.bf16.mxu1 %v8066_v63  ;;  %v8112_v41 = vld [vmem:[%s10429_s5 + $0x80] sm:$0xff]   ;;  %v8115_v45 = vld [vmem:[%s10429_s5 + $0x8] sm:$0xff]   ;;  %v8122_v38 = vld [vmem:[%s10429_s5 + $0xd8] sm:$0xff]  }
 0x27f   : > { %v8116_v53 = vld [vmem:[%s10429_s5 + $0x88] sm:$0xff]   ;;  %v8123_v43 = vld [vmem:[%s10429_s5 + $0x18] sm:$0xff]   ;;  %v8127_v30 = vld [vmem:[%s10429_s5 + $0x20] sm:$0xff]  }
 0x280   : > { %v8124_v46 = vld [vmem:[%s10429_s5 + $0x98] sm:$0xff]   ;;  %v8128_v50 = vld [vmem:[%s10429_s5 + $0xa0] sm:$0xff]   ;;  %v8129_v54 = vld [vmem:[%s10429_s5 + $0x68] sm:$0xff]  }
 0x281   : > { %5341 = vmatpush1.bf16.msra.mxu0 %v8061_v55  ;;  %5487 = vmatpush1.bf16.msra.mxu1 %v8064_v47  ;;  %v8130_v57 = vld [vmem:[%s10429_s5 + $0xe8] sm:$0xff]   ;;  %v8134_v60 = vld [vmem:[%s10429_s5 + $0xf0] sm:$0xff]   ;;  %v8137_v63 = vld [vmem:[%s10429_s5 + $0x78] sm:$0xff]  }
 0x282   : > { %5342 = vmatprep.subr.bf16.mxu0 %v8069_v56  ;;  %5488 = vmatprep.subr.bf16.mxu1 %v8072_v59  ;;  %v8131_v58 = vld [vmem:[%s10429_s5 + $0x28] sm:$0xff]   ;;  %v8136_v61 = vld [vmem:[%s10429_s5 + $0xb0] sm:$0xff]   ;;  %v8138_v55 = vld [vmem:[%s10429_s5 + $0xf8] sm:$0xff]  }
 0x283   : > { %v8139_v47 = vld [vmem:[%s10429_s5 + $0x38] sm:$0xff]   ;;  %v4589_v59 = vld [vmem:[%s10428_s4] sm:$0xf] }
 0x284   : > { %v8140_v56 = vld [vmem:[%s10429_s5 + $0xb8] sm:$0xff]  }
 0x285   : > { %5343 = vmatpush1.bf16.msra.mxu0 %v8067_v36  ;;  %5489 = vmatpush1.bf16.msra.mxu1 %v8070_v0  ;;  %v10352_v36 = vrot.slane %v4589_v59, %v4363_v49  ;;  %v10356_v0 = vrot.slane %v4589_v59, %v4371_v18 }
 0x286   : > { %5344 = vmatprep.subr.bf16.mxu0 %v8075_v1  ;;  %5490 = vmatprep.subr.bf16.mxu1 %v8078_v3  ;;  %v10360_v1 = vrot.slane %v4589_v59, %v4367_v29  ;;  %v10364_v3 = vrot.slane %v4589_v59, %v4375_v19 }
 0x289   : > { %5345 = vmatpush1.bf16.msra.mxu0 %v8073_v42  ;;  %5491 = vmatpush1.bf16.msra.mxu1 %v8076_v62 }
 0x28a   : > { %5346 = vmatprep.subr.bf16.mxu0 %v8081_v6  ;;  %5492 = vmatprep.subr.bf16.mxu1 %v8084_v7 }
 0x28d   : > { %5347 = vmatpush1.bf16.msra.mxu0 %v8079_v22  ;;  %5493 = vmatpush1.bf16.msra.mxu1 %v8082_v14 }
 0x28e   : > { %5348 = vmatprep.subr.bf16.mxu0 %v8087_v15  ;;  %5494 = vmatprep.subr.bf16.mxu1 %v8090_v16 }
 0x291   : > { %5349 = vmatpush1.bf16.msra.mxu0 %v8085_v17  ;;  %5495 = vmatpush1.bf16.msra.mxu1 %v8088_v27 }
 0x292   : > { %5350 = vmatprep.subr.bf16.mxu0 %v8093_v21  ;;  %5496 = vmatprep.subr.bf16.mxu1 %v8096_v24 }
 0x295   : > { %5351 = vmatpush1.bf16.msra.mxu0 %v8091_v25  ;;  %5497 = vmatpush1.bf16.msra.mxu1 %v8094_v51 }
 0x296   : > { %5352 = vmatprep.subr.bf16.mxu0 %v8099_v28  ;;  %5498 = vmatprep.subr.bf16.mxu1 %v8102_v31 }
 0x299   : > { %5353 = vmatpush1.bf16.msra.mxu0 %v8097_v8  ;;  %5499 = vmatpush1.bf16.msra.mxu1 %v8100_v52 }
 0x29a   : > { %5354 = vmatprep.subr.bf16.mxu0 %v8105_v35  ;;  %5500 = vmatprep.subr.bf16.mxu1 %v8108_v2 }
 0x29d   : > { %5355 = vmatpush1.bf16.msra.mxu0 %v8103_v37  ;;  %5501 = vmatpush1.bf16.msra.mxu1 %v8106_v11 }
 0x29e   : > { %6988 = vmatprep.subr.bf16.mxu0 %v8109_v40  ;;  %7028 = vmatprep.subr.bf16.mxu1 %v8110_v20 }
 0x2a0   : > { %5357 = vmatmul.mubr.bf16.vlgmr.msra.gmra.mrb[16].mxu0 %v10009_v34  ;;  %5503 = vmatmul.mubr.bf16.vlgmr.msra.gmra.mrb[16].mxu1 %v10009_v34  ;;  %v8117_v34 = vld [vmem:[%s10429_s5 + $0x50] sm:$0xff]  }
 0x2a1   : > { %5366 = vmatprep.mubr.bf16.mxu0 %v10047_v12  ;;  %5512 = vmatprep.mubr.bf16.mxu1 %v10047_v12  ;;  %v8118_v12 = vld [vmem:[%s10429_s5 + $0xd0] sm:$0xff]  }
 0x2a2   : > { %6989 = vmatpush3.bf16.msra.mxu0 %v8111_v48  ;;  %7029 = vmatpush3.bf16.msra.mxu1 %v8112_v41 }
 0x2a3   : > { %6990 = vmatprep.subr.bf16.mxu0 %v8113_v23  ;;  %7030 = vmatprep.subr.bf16.mxu1 %v8114_v26 }
 0x2a6   : > { %6991 = vmatpush3.bf16.msra.mxu0 %v8115_v45  ;;  %7031 = vmatpush3.bf16.msra.mxu1 %v8116_v53 }
 0x2a7   : > { %6992 = vmatprep.subr.bf16.mxu0 %v8117_v34  ;;  %7032 = vmatprep.subr.bf16.mxu1 %v8118_v12 }
 0x2a8   : > { %5367 = vmatmul.mubr.bf16.gmra.mrb[20].mxu0 %v10045_v32  ;;  %5513 = vmatmul.mubr.bf16.gmra.mrb[20].mxu1 %v10045_v32  ;;  %v8125_v32 = vld [vmem:[%s10429_s5 + $0x60] sm:$0xff]  }
 0x2a9   : > { %5376 = vmatprep.mubr.bf16.mxu0 %v10083_v5  ;;  %5522 = vmatprep.mubr.bf16.mxu1 %v10083_v5  ;;  %v8126_v5 = vld [vmem:[%s10429_s5 + $0xe0] sm:$0xff]  }
 0x2aa   : > { %6993 = vmatpush3.bf16.msra.mxu0 %v8119_v9  ;;  %7033 = vmatpush3.bf16.msra.mxu1 %v8120_v10 }
 0x2ab   : > { %6994 = vmatprep.subr.bf16.mxu0 %v8121_v13  ;;  %7034 = vmatprep.subr.bf16.mxu1 %v8122_v38 }
 0x2ae   : > { %6995 = vmatpush3.bf16.msra.mxu0 %v8123_v43  ;;  %7035 = vmatpush3.bf16.msra.mxu1 %v8124_v46 }
 0x2af   : > { %6996 = vmatprep.subr.bf16.mxu0 %v8125_v32  ;;  %7036 = vmatprep.subr.bf16.mxu1 %v8126_v5 }
 0x2b0   : > { %5377 = vmatmul.mubr.bf16.gmra.mrb[24].mxu0 %v10081_v4  ;;  %5523 = vmatmul.mubr.bf16.gmra.mrb[24].mxu1 %v10081_v4  ;;  %v8132_v4 = vld [vmem:[%s10429_s5 + $0xa8] sm:$0xff]  }
 0x2b1   : > { %5386 = vmatprep.mubr.bf16.mxu0 %v10119_v39  ;;  %5532 = vmatprep.mubr.bf16.mxu1 %v10119_v39  ;;  %v8133_v39 = vld [vmem:[%s10429_s5 + $0x70] sm:$0xff]  }
 0x2b2   : > { %6997 = vmatpush3.bf16.msra.mxu0 %v8127_v30  ;;  %7037 = vmatpush3.bf16.msra.mxu1 %v8128_v50 }
 0x2b3   : > { %6998 = vmatprep.subr.bf16.mxu0 %v8129_v54  ;;  %7038 = vmatprep.subr.bf16.mxu1 %v8130_v57 }
 0x2b6   : > { %6999 = vmatpush3.bf16.msra.mxu0 %v8131_v58  ;;  %7039 = vmatpush3.bf16.msra.mxu1 %v8132_v4 }
 0x2b7   : > { %7000 = vmatprep.subr.bf16.mxu0 %v8133_v39  ;;  %7040 = vmatprep.subr.bf16.mxu1 %v8134_v60 }
 0x2b8   : > { %5387 = vmatmul.mubr.bf16.gmra.mrb[28].mxu0 %v10117_v44  ;;  %5533 = vmatmul.mubr.bf16.gmra.mrb[28].mxu1 %v10117_v44  ;;  %v8135_v44 = vld [vmem:[%s10429_s5 + $0x30] sm:$0xff]  }
 0x2ba   : > { %7001 = vmatpush3.bf16.msra.mxu0 %v8135_v44  ;;  %7041 = vmatpush3.bf16.msra.mxu1 %v8136_v61 }
 0x2bb   : > { %7002 = vmatprep.subr.bf16.mxu0 %v8137_v63  ;;  %7042 = vmatprep.subr.bf16.mxu1 %v8138_v55 }
 0x2be   : > { %7003 = vmatpush3.bf16.msra.mxu0 %v8139_v47  ;;  %7043 = vmatpush3.bf16.msra.mxu1 %v8140_v56 }
 0x373   : > { %v5358_v42 = vpop.f32.mrb[16].mxu0  ;;  %v5504_v62 = vpop.f32.mrb[16].mxu1 }
 0x374   : > { %v7068_v6 = vadd.f32 %v5358_v42, %v10352_v36  ;;  %v7084_v7 = vadd.f32 %v5504_v62, %v10356_v0  ;;  %v5360_v49 = vpop.f32.mrb[17].mxu0  ;;  %v5506_v22 = vpop.f32.mrb[17].mxu1 }
 0x375   : > { %v7069_v14 = vadd.f32 %v5360_v49, %v10360_v1  ;;  %v7085_v18 = vadd.f32 %v5506_v22, %v10364_v3  ;;  %v5362_v15 = vpop.f32.mrb[18].mxu0  ;;  %v5508_v16 = vpop.f32.mrb[18].mxu1 }
 0x376   : > { %v7070_v29 = vadd.f32 %v5362_v15, %v10352_v36  ;;  %v7086_v33 = vadd.f32 %v5508_v16, %v10356_v0  ;;  %v5364_v19 = vpop.f32.mrb[19].mxu0  ;;  %v5510_v17 = vpop.f32.mrb[19].mxu1  ;;  %v5543_v24 = vmax.f32 %v7068_v6, 0.0  ;;  %v5545_v25 = vmax.f32 %v7084_v7, 0.0 }
 0x377   : > { %v7071_v27 = vadd.f32 %v5364_v19, %v10360_v1  ;;  %v7087_v21 = vadd.f32 %v5510_v17, %v10364_v3  ;;  %v5544_v31 = vmax.f32 %v7069_v14, 0.0  ;;  %v5546_v8 = vmax.f32 %v7085_v18, 0.0 }
 0x378   : > { %v5547_v51 = vmax.f32 %v7070_v29, 0.0  ;;  %v5549_v28 = vmax.f32 %v7086_v33, 0.0 }
 0x379   : > { %v5548_v52 = vmax.f32 %v7071_v27, 0.0  ;;  %v5550_v35 = vmax.f32 %v7087_v21, 0.0 }
 0x37a   : > { %v5575_v2 = vpack.c.bf16 %v5547_v51, %v5543_v24  ;;  %v5577_v37 = vpack.c.bf16 %v5549_v28, %v5545_v25 }
 0x37b   : > { %v5576_v11 = vpack.c.bf16 %v5548_v52, %v5544_v31  ;;  %v5578_v40 = vpack.c.bf16 %v5550_v35, %v5546_v8  ;;  %v5368_v20 = vpop.f32.mrb[20].mxu0  ;;  %v5514_v48 = vpop.f32.mrb[20].mxu1 }
 0x37c   : > { %v7072_v41 = vadd.f32 %v5368_v20, %v10352_v36  ;;  %v7088_v23 = vadd.f32 %v5514_v48, %v10356_v0  ;;  %v5370_v26 = vpop.f32.mrb[21].mxu0  ;;  %v5516_v45 = vpop.f32.mrb[21].mxu1 }
 0x37d   : > { %v7073_v53 = vadd.f32 %v5370_v26, %v10360_v1  ;;  %v7089_v34 = vadd.f32 %v5516_v45, %v10364_v3  ;;  %v5372_v12 = vpop.f32.mrb[22].mxu0  ;;  %v5518_v9 = vpop.f32.mrb[22].mxu1  ;;  %5886 = vmatprep.mubr.bf16.mxu0 %v5576_v11  ;;  %5951 = vmatprep.mubr.bf16.mxu1 %v5578_v40 }
 0x37e   : > { %v7074_v10 = vadd.f32 %v5372_v12, %v10352_v36  ;;  %v7090_v13 = vadd.f32 %v5518_v9, %v10356_v0  ;;  %v5374_v38 = vpop.f32.mrb[23].mxu0  ;;  %v5520_v43 = vpop.f32.mrb[23].mxu1  ;;  %5887 = vmatmul.mubr.bf16.vlgmr.msra.gmra.mrb[32].mxu0 %v5575_v2  ;;  %5952 = vmatmul.mubr.bf16.vlgmr.msra.gmra.mrb[32].mxu1 %v5577_v37  ;;  %v5551_v5 = vmax.f32 %v7072_v41, 0.0  ;;  %v5553_v30 = vmax.f32 %v7088_v23, 0.0 }
 0x37f   : > { %v7075_v46 = vadd.f32 %v5374_v38, %v10360_v1  ;;  %v7091_v32 = vadd.f32 %v5520_v43, %v10364_v3  ;;  %v5552_v57 = vmax.f32 %v7073_v53, 0.0  ;;  %v5554_v58 = vmax.f32 %v7089_v34, 0.0 }
 0x380   : > { %v5555_v50 = vmax.f32 %v7074_v10, 0.0  ;;  %v5557_v54 = vmax.f32 %v7090_v13, 0.0 }
 0x381   : > { %v5556_v4 = vmax.f32 %v7075_v46, 0.0  ;;  %v5558_v39 = vmax.f32 %v7091_v32, 0.0 }
 0x382   : > { %v5579_v60 = vpack.c.bf16 %v5555_v50, %v5551_v5  ;;  %v5581_v44 = vpack.c.bf16 %v5557_v54, %v5553_v30 }
 0x383   : > { %v5580_v61 = vpack.c.bf16 %v5556_v4, %v5552_v57  ;;  %v5582_v63 = vpack.c.bf16 %v5558_v39, %v5554_v58  ;;  %v5378_v55 = vpop.f32.mrb[24].mxu0  ;;  %v5524_v47 = vpop.f32.mrb[24].mxu1 }
 0x384   : > { %v7076_v56 = vadd.f32 %v5378_v55, %v10352_v36  ;;  %v7092_v59 = vadd.f32 %v5524_v47, %v10356_v0  ;;  %v5380_v42 = vpop.f32.mrb[25].mxu0  ;;  %v5526_v62 = vpop.f32.mrb[25].mxu1 }
 0x385   : > { %v7077_v6 = vadd.f32 %v5380_v42, %v10360_v1  ;;  %v7093_v7 = vadd.f32 %v5526_v62, %v10364_v3  ;;  %v5382_v49 = vpop.f32.mrb[26].mxu0  ;;  %v5528_v22 = vpop.f32.mrb[26].mxu1  ;;  %5894 = vmatprep.mubr.bf16.mxu0 %v5580_v61  ;;  %5959 = vmatprep.mubr.bf16.mxu1 %v5582_v63 }
 0x386   : > { %v7078_v14 = vadd.f32 %v5382_v49, %v10352_v36  ;;  %v7094_v18 = vadd.f32 %v5528_v22, %v10356_v0  ;;  %v5384_v15 = vpop.f32.mrb[27].mxu0  ;;  %v5530_v16 = vpop.f32.mrb[27].mxu1  ;;  %5895 = vmatmul.mubr.bf16.gmra.mrb[36].mxu0 %v5579_v60  ;;  %5960 = vmatmul.mubr.bf16.gmra.mrb[36].mxu1 %v5581_v44  ;;  %v5559_v19 = vmax.f32 %v7076_v56, 0.0  ;;  %v5561_v17 = vmax.f32 %v7092_v59, 0.0 }
 0x387   : > { %v7079_v29 = vadd.f32 %v5384_v15, %v10360_v1  ;;  %v7095_v33 = vadd.f32 %v5530_v16, %v10364_v3  ;;  %v5560_v24 = vmax.f32 %v7077_v6, 0.0  ;;  %v5562_v25 = vmax.f32 %v7093_v7, 0.0 }
 0x388   : > { %v5563_v27 = vmax.f32 %v7078_v14, 0.0  ;;  %v5565_v21 = vmax.f32 %v7094_v18, 0.0 }
 0x389   : > { %v5564_v51 = vmax.f32 %v7079_v29, 0.0  ;;  %v5566_v28 = vmax.f32 %v7095_v33, 0.0 }
 0x38a   : > { %v5583_v31 = vpack.c.bf16 %v5563_v27, %v5559_v19  ;;  %v5585_v8 = vpack.c.bf16 %v5565_v21, %v5561_v17 }
 0x38b   : > { %v5584_v52 = vpack.c.bf16 %v5564_v51, %v5560_v24  ;;  %v5586_v35 = vpack.c.bf16 %v5566_v28, %v5562_v25  ;;  %v5388_v2 = vpop.f32.mrb[28].mxu0  ;;  %v5534_v37 = vpop.f32.mrb[28].mxu1 }
 0x38c   : > { %v7080_v11 = vadd.f32 %v5388_v2, %v10352_v36  ;;  %v7096_v40 = vadd.f32 %v5534_v37, %v10356_v0  ;;  %v5390_v20 = vpop.f32.mrb[29].mxu0  ;;  %v5536_v48 = vpop.f32.mrb[29].mxu1 }
 0x38d   : > { %v7081_v41 = vadd.f32 %v5390_v20, %v10360_v1  ;;  %v7097_v23 = vadd.f32 %v5536_v48, %v10364_v3  ;;  %v5392_v26 = vpop.f32.mrb[30].mxu0  ;;  %v5538_v45 = vpop.f32.mrb[30].mxu1  ;;  %5902 = vmatprep.mubr.bf16.mxu0 %v5584_v52  ;;  %5967 = vmatprep.mubr.bf16.mxu1 %v5586_v35 }
 0x38e   : > { %v7082_v53 = vadd.f32 %v5392_v26, %v10352_v36  ;;  %v7098_v34 = vadd.f32 %v5538_v45, %v10356_v0  ;;  %v5394_v12 = vpop.f32.mrb[31].mxu0  ;;  %v5540_v9 = vpop.f32.mrb[31].mxu1  ;;  %5903 = vmatmul.mubr.bf16.gmra.mrb[40].mxu0 %v5583_v31  ;;  %5968 = vmatmul.mubr.bf16.gmra.mrb[40].mxu1 %v5585_v8  ;;  %v5567_v38 = vmax.f32 %v7080_v11, 0.0  ;;  %v5569_v43 = vmax.f32 %v7096_v40, 0.0 }
 0x38f   : > { %v7083_v10 = vadd.f32 %v5394_v12, %v10360_v1  ;;  %v7099_v13 = vadd.f32 %v5540_v9, %v10364_v3  ;;  %v5568_v5 = vmax.f32 %v7081_v41, 0.0  ;;  %v5570_v30 = vmax.f32 %v7097_v23, 0.0  ;;  %v10401_v3 = vld [vmem:[%s10430_s6] ss:$0 sm:$0xff] }
 0x390   : > { %v5571_v46 = vmax.f32 %v7082_v53, 0.0  ;;  %v5573_v32 = vmax.f32 %v7098_v34, 0.0 }
 0x391   : > { %v5572_v50 = vmax.f32 %v7083_v10, 0.0  ;;  %v5574_v54 = vmax.f32 %v7099_v13, 0.0 }
 0x392   : > { %v5587_v57 = vpack.c.bf16 %v5571_v46, %v5567_v38  ;;  %v5589_v36 = vpack.c.bf16 %v5573_v32, %v5569_v43 }
 0x393   : > { %v5588_v58 = vpack.c.bf16 %v5572_v50, %v5568_v5  ;;  %v5590_v0 = vpack.c.bf16 %v5574_v54, %v5570_v30 }
 0x395   : > { %5910 = vmatprep.mubr.bf16.mxu0 %v5588_v58  ;;  %5975 = vmatprep.mubr.bf16.mxu1 %v5590_v0 }
 0x396   : > { %5911 = vmatmul.mubr.bf16.gmra.mrb[44].mxu0 %v5587_v57  ;;  %5976 = vmatmul.mubr.bf16.gmra.mrb[44].mxu1 %v5589_v36 }
 0x451   : > { %v7004_v4 = vpop.f32.mrb[32].mxu0  ;;  %v7044_v1 = vpop.f32.mrb[32].mxu1 }
 0x452   : > { %v7005_v39 = vpop.f32.mrb[33].mxu0  ;;  %v7045_v60 = vpop.f32.mrb[33].mxu1 }
 0x453   : > { %v7006_v44 = vadd.f32 %v7005_v39, %v7004_v4  ;;  %v7046_v61 = vadd.f32 %v7045_v60, %v7044_v1  ;;  %v7007_v63 = vpop.f32.mrb[34].mxu0  ;;  %v7047_v55 = vpop.f32.mrb[34].mxu1 }
 0x454   : > { %v7008_v47 = vpop.f32.mrb[35].mxu0  ;;  %v7048_v56 = vpop.f32.mrb[35].mxu1 }
 0x455   : > { %v5889_v59 = vadd.f32 %v7006_v44, %v10401_v3  ;;  %v7009_v42 = vadd.f32 %v7008_v47, %v7007_v63  ;;  %v7049_v62 = vadd.f32 %v7048_v56, %v7047_v55 }
 0x457   : > { %v5954_v6 = vadd.f32 %v7046_v61, %v5889_v59  ;;  %v5892_v7 = vadd.f32 %v7009_v42, %v10401_v3 }
 0x459   : > { %v5957_v49 = vadd.f32 %v7049_v62, %v5892_v7  ;;  %v7010_v22 = vpop.f32.mrb[36].mxu0  ;;  %v7050_v14 = vpop.f32.mrb[36].mxu1 }
 0x45a   : > { %v7011_v18 = vpop.f32.mrb[37].mxu0  ;;  %v7051_v15 = vpop.f32.mrb[37].mxu1 }
 0x45b   : > { %v6966_v16 = vpack.c.bf16 %v5957_v49, %v5954_v6  ;;  %v7012_v29 = vadd.f32 %v7011_v18, %v7010_v22  ;;  %v7052_v33 = vadd.f32 %v7051_v15, %v7050_v14  ;;  %v7013_v19 = vpop.f32.mrb[38].mxu0  ;;  %v7053_v17 = vpop.f32.mrb[38].mxu1 }
 0x45c   : > { %v7014_v27 = vpop.f32.mrb[39].mxu0  ;;  %v7054_v21 = vpop.f32.mrb[39].mxu1 }
 0x45d   : > { %6967 = vst [vmem:[%s8236_s12] sm:$0xff] %v6966_v16   ;;  %v5897_v24 = vadd.f32 %v7012_v29, %v10401_v3  ;;  %v7015_v25 = vadd.f32 %v7014_v27, %v7013_v19  ;;  %v7055_v51 = vadd.f32 %v7054_v21, %v7053_v17 }
 0x45f   : > { %v5962_v28 = vadd.f32 %v7052_v33, %v5897_v24  ;;  %v5900_v31 = vadd.f32 %v7015_v25, %v10401_v3 }
 0x461   : > { %v5965_v8 = vadd.f32 %v7055_v51, %v5900_v31  ;;  %v7016_v52 = vpop.f32.mrb[40].mxu0  ;;  %v7056_v35 = vpop.f32.mrb[40].mxu1 }
 0x462   : > { %v7017_v2 = vpop.f32.mrb[41].mxu0  ;;  %v7057_v37 = vpop.f32.mrb[41].mxu1 }
 0x463   : > { %v6971_v11 = vpack.c.bf16 %v5965_v8, %v5962_v28  ;;  %v7018_v40 = vadd.f32 %v7017_v2, %v7016_v52  ;;  %v7058_v20 = vadd.f32 %v7057_v37, %v7056_v35  ;;  %v7019_v48 = vpop.f32.mrb[42].mxu0  ;;  %v7059_v41 = vpop.f32.mrb[42].mxu1 }
 0x464   : > { %v7020_v23 = vpop.f32.mrb[43].mxu0  ;;  %v7060_v26 = vpop.f32.mrb[43].mxu1 }
 0x465   : > { %6985 = vst [vmem:[%s8236_s12 + $0x8] sm:$0xff] %v6971_v11   ;;  %v5905_v45 = vadd.f32 %v7018_v40, %v10401_v3  ;;  %v7021_v53 = vadd.f32 %v7020_v23, %v7019_v48  ;;  %v7061_v34 = vadd.f32 %v7060_v26, %v7059_v41 }
 0x467   : > { %v5970_v12 = vadd.f32 %v7058_v20, %v5905_v45  ;;  %v5908_v9 = vadd.f32 %v7021_v53, %v10401_v3 }
 0x469   : > { %v5973_v10 = vadd.f32 %v7061_v34, %v5908_v9  ;;  %v7022_v13 = vpop.f32.mrb[44].mxu0  ;;  %v7062_v38 = vpop.f32.mrb[44].mxu1 }
 0x46a   : > { %v7023_v43 = vpop.f32.mrb[45].mxu0  ;;  %v7063_v46 = vpop.f32.mrb[45].mxu1 }
 0x46b   : > { %v6976_v32 = vpack.c.bf16 %v5973_v10, %v5970_v12  ;;  %v7024_v5 = vadd.f32 %v7023_v43, %v7022_v13  ;;  %v7064_v30 = vadd.f32 %v7063_v46, %v7062_v38  ;;  %v7025_v50 = vpop.f32.mrb[46].mxu0  ;;  %v7065_v54 = vpop.f32.mrb[46].mxu1 }
 0x46c   : > { %v7026_v57 = vpop.f32.mrb[47].mxu0  ;;  %v7066_v36 = vpop.f32.mrb[47].mxu1 }
 0x46d   : > { %6986 = vst [vmem:[%s8236_s12 + $0x10] sm:$0xff] %v6976_v32   ;;  %v5913_v58 = vadd.f32 %v7024_v5, %v10401_v3  ;;  %v7027_v0 = vadd.f32 %v7026_v57, %v7025_v50  ;;  %v7067_v4 = vadd.f32 %v7066_v36, %v7065_v54 }
 0x46f   : > { %v5978_v1 = vadd.f32 %v7064_v30, %v5913_v58  ;;  %v5916_v39 = vadd.f32 %v7027_v0, %v10401_v3 }
 0x471   : > { %v5981_v60 = vadd.f32 %v7067_v4, %v5916_v39 }
 0x473   : > { %v6981_v44 = vpack.c.bf16 %v5981_v60, %v5978_v1 }
 0x475   : > { %6987 = vst [vmem:[%s8236_s12 + $0x18] sm:$0xff] %v6981_v44  }
 0x476 PF: > { %s17_s26 = sadd.s32 1, %s8165_s26   ;;  %s10434_s24 = smov %s8161_s25 }
 0x477   : > { %p14_p9 = scmp.ge.s32.totalorder %s17_s26, 4   ;;  %s10435_s25 = smov %s10437_s27 }
 0x479   :  { %16 = sbr.rel (!%p14_p9) target bundleno = 2 (0x2), region = 180 }
 0x480   :  { %6030 = vsyncmov [#allocation3] }
 0x483   :  { %s6031_s17 = vpop.sfrf %6030 }
 0x484   :  { %p6953_p10 = scmp.ne.s32.totalorder %s6031_s17, 0 }
 0x486   :  { %6035 = shalt.err (%p6953_p10)  }
 0x487   :  { %6037 = vsyncmov [#allocation3 + $0x1] }
 0x48a   :  { %s6038_s18 = vpop.sfrf %6037 }
 0x48b   :  { %p6954_p11 = scmp.ne.s32.totalorder %s6038_s18, 0 }
 0x48d   :  { %6042 = shalt.err (%p6954_p11)  }

</bundles_post_ra>
